<compile_context>
chip_gen: v7x
topology: tpu7x:2x2x1
jax: 0.10.0
libtpu: 0.0.40
codegen_flags: <defaults>
</compile_context>

<pallas_src>
import functools
from typing import NamedTuple

import jax
import jax.numpy as jnp
from jax.experimental import pallas as pl
from jax.experimental.pallas import tpu as pltpu

D_IN = 2048     # fc1 input dim (fixed by the module)
D_HID = 1024    # fc1 output / fc2 input dim (fixed by the module)
H_HALF = D_HID // 2


# ---------------------------------------------------------------------------
# Kernels
# ---------------------------------------------------------------------------
def _mlp_kernel_single(x_ref, w1_ref, b1_ref, w2_ref, b2_ref, o_ref, acc_ref,
                       *, block_k):
    """Full-width forward: out = (x @ W1 + b1) @ W2 + b2.

    Grid: (n_k,) -- reduction over K blocks of the fc1 contraction.  fc1
    partials accumulate in a f32 VMEM scratch; the final K step adds b1, runs
    the small fc2 matmul in f32 and writes the b2-biased output directly.
    """
    k = pl.program_id(0)

    @pl.when(k == 0)
    def _():
        acc_ref[...] = jnp.zeros_like(acc_ref)

    x_chunk = x_ref[:, pl.ds(pl.multiple_of(k * block_k, block_k), block_k)]
    acc_ref[...] += jnp.dot(x_chunk.astype(jnp.bfloat16), w1_ref[...],
                            preferred_element_type=jnp.float32)

    @pl.when(k == pl.num_programs(0) - 1)
    def _():
        h = acc_ref[...] + b1_ref[...]                        # f32 activations
        out = jnp.dot(h, w2_ref[...].astype(jnp.float32),     # fc2 in f32 (tiny)
                      preferred_element_type=jnp.float32) + b2_ref[...]
        o_ref[...] = out.astype(o_ref.dtype)


def _mlp_kernel_split(x_ref, w1_ref, b1_ref, w2_ref, b2_ref, o_ref, acc_ref,
                      *, block_k):
    """One D_HID-half of the forward (for 2-TensorCore chips, e.g. v7x).

    Grid: (2, n_k).  Axis 0 ("parallel") picks a contiguous 512-wide half of
    the hidden dim (sharded across the two TensorCores); axis 1 ("arbitrary")
    reduces over K blocks.  b2 is fused into half 0 so the host epilogue is a
    single add of the two (B, D_out) partials.
    """
    half = pl.program_id(0)
    k = pl.program_id(1)

    @pl.when(k == 0)
    def _():
        acc_ref[...] = jnp.zeros_like(acc_ref)

    x_chunk = x_ref[:, pl.ds(pl.multiple_of(k * block_k, block_k), block_k)]
    acc_ref[...] += jnp.dot(x_chunk.astype(jnp.bfloat16), w1_ref[0],
                            preferred_element_type=jnp.float32)

    @pl.when(k == pl.num_programs(1) - 1)
    def _():
        h = acc_ref[...] + b1_ref[0]                          # f32 activations
        partial = jnp.dot(h, w2_ref[0].astype(jnp.float32),
                          preferred_element_type=jnp.float32)
        partial += b2_ref[...] * (half == 0).astype(jnp.float32)  # fuse b2 once
        o_ref[0] = partial.astype(o_ref.dtype)


# ---------------------------------------------------------------------------
# Jitted forward wrappers (weights arrive already in bf16 / pre-split)
# ---------------------------------------------------------------------------
@functools.partial(jax.jit, static_argnames=("block_k", "d_out"))
def _forward_single(x, w1, b1, w2, b2, *, block_k, d_out):
    B = x.shape[0]
    d_pad = w2.shape[1]
    n_k = D_IN // block_k
    out = pl.pallas_call(
        functools.partial(_mlp_kernel_single, block_k=block_k),
        out_shape=jax.ShapeDtypeStruct((B, d_pad), jnp.float32),
        grid=(n_k,),
        in_specs=[
            pl.BlockSpec((B, D_IN), lambda k: (0, 0)),         # x (VMEM-resident)
            pl.BlockSpec((block_k, D_HID), lambda k: (k, 0)),  # W1 K-block
            pl.BlockSpec((1, D_HID), lambda k: (0, 0)),        # b1
            pl.BlockSpec((D_HID, d_pad), lambda k: (0, 0)),    # W2 (resident)
            pl.BlockSpec((1, d_pad), lambda k: (0, 0)),        # b2
        ],
        out_specs=pl.BlockSpec((B, d_pad), lambda k: (0, 0)),
        scratch_shapes=[pltpu.VMEM((B, D_HID), jnp.float32)],
        compiler_params=pltpu.CompilerParams(
            dimension_semantics=("arbitrary",)),
    )(x, w1, b1, w2, b2)
    return out[:, :d_out] if d_pad != d_out else out


@functools.partial(jax.jit, static_argnames=("block_k", "d_out"))
def _forward_split(x, w1, b1, w2, b2, *, block_k, d_out):
    B = x.shape[0]
    d_pad = w2.shape[2]
    n_k = D_IN // block_k
    partials = pl.pallas_call(
        functools.partial(_mlp_kernel_split, block_k=block_k),
        out_shape=jax.ShapeDtypeStruct((2, B, d_pad), jnp.float32),
        grid=(2, n_k),
        in_specs=[
            pl.BlockSpec((B, D_IN), lambda h, k: (0, 0)),              # x
            pl.BlockSpec((1, block_k, H_HALF), lambda h, k: (h, k, 0)),  # W1 half
            pl.BlockSpec((1, 1, H_HALF), lambda h, k: (h, 0, 0)),        # b1 half
            pl.BlockSpec((1, H_HALF, d_pad), lambda h, k: (h, 0, 0)),    # W2 half
            pl.BlockSpec((1, d_pad), lambda h, k: (0, 0)),               # b2
        ],
        out_specs=pl.BlockSpec((1, B, d_pad), lambda h, k: (h, 0, 0)),
        scratch_shapes=[pltpu.VMEM((B, H_HALF), jnp.float32)],
        compiler_params=pltpu.CompilerParams(
            dimension_semantics=("parallel", "arbitrary")),
    )(x, w1, b1, w2, b2)
    out = partials[0] + partials[1]        # tiny epilogue; b2 already fused
    return out[:, :d_out] if d_pad != d_out else out


# ---------------------------------------------------------------------------
# Parameter preparation (runs ONCE, outside jit)
# ---------------------------------------------------------------------------
class ImageTransformerParams(NamedTuple):
    w1: jax.Array       # bf16: (2048, 1024) or, pre-split, (2, 2048, 512)
    b1: jax.Array       # f32:  (1, 1024)    or (2, 1, 512)
    w2: jax.Array       # bf16: (1024, Dp)   or (2, 512, Dp)
    b2: jax.Array       # f32:  (1, Dp)
    num_halves: int     # 1 (single-TC chips) or 2 (v7x half split)
    d_out: int          # logical fc2 output dim (before lane padding)


def _tensorcores_per_chip():
    """2 on v7x (2 TensorCores / chip), 1 otherwise.  Conservative fallback."""
    try:
        kind = jax.devices()[0].device_kind.lower()
    except Exception:
        return 1
    return 2 if ("v7" in kind or "7x" in kind) else 1


def prepare_params(w1, b1, w2, b2, *, num_halves=None):
    """One-time weight prep: bf16 cast, output lane padding, optional half split.

    w1: (2048, 1024)  b1: (1, 1024)  w2: (1024, D)  b2: (1, D)  -- all f32,
    already transposed from PyTorch's (out, in) nn.Linear layout.
    """
    assert w1.shape == (D_IN, D_HID) and w2.shape[0] == D_HID
    d_out = int(w2.shape[1])
    d_pad = ((d_out + 127) // 128) * 128       # lane-dense output stores
    if d_pad != d_out:
        w2 = jnp.pad(w2, ((0, 0), (0, d_pad - d_out)))
        b2 = jnp.pad(jnp.reshape(b2, (1, d_out)), ((0, 0), (0, d_pad - d_out)))
    if num_halves is None:
        num_halves = _tensorcores_per_chip()

    b1 = jnp.asarray(b1, jnp.float32).reshape(1, D_HID)
    b2 = jnp.asarray(b2, jnp.float32).reshape(1, d_pad)
    w1_bf = jnp.asarray(w1, jnp.bfloat16)
    w2_bf = jnp.asarray(w2, jnp.bfloat16)

    if num_halves == 2:
        # Contiguous-per-half layout so each core's W1/W2 DMA is one flat slab.
        w1_bf = jnp.transpose(w1_bf.reshape(D_IN, 2, H_HALF), (1, 0, 2))
        w2_bf = w2_bf.reshape(2, H_HALF, d_pad)
        b1 = b1.reshape(2, 1, H_HALF)

    return ImageTransformerParams(
        jax.block_until_ready(w1_bf), jax.block_until_ready(b1),
        jax.block_until_ready(w2_bf), jax.block_until_ready(b2),
        num_halves, d_out)


def image_transformer_forward(x, params: ImageTransformerParams, *, block_k=2048):
    """x: (B, 2048) f32 -> (B, dimension) f32, matching fc2(fc1(x))."""
    assert x.shape[1] == D_IN and D_IN % block_k == 0
    if params.num_halves == 2:
        return _forward_split(x, params.w1, params.b1, params.w2, params.b2,
                              block_k=block_k, d_out=params.d_out)
    return _forward_single(x, params.w1, params.b1, params.w2, params.b2,
                           block_k=block_k, d_out=params.d_out)


def init_params(key, dimension):
    """Deterministic init mimicking nn.Linear (uniform +/- 1/sqrt(fan_in))."""
    k1, k2, k3, k4 = jax.random.split(key, 4)
    bound1 = 1.0 / (D_IN ** 0.5)
    bound2 = 1.0 / (D_HID ** 0.5)
    w1 = jax.random.uniform(k1, (D_IN, D_HID), jnp.float32, -bound1, bound1)
    b1 = jax.random.uniform(k2, (1, D_HID), jnp.float32, -bound1, bound1)
    w2 = jax.random.uniform(k3, (D_HID, dimension), jnp.float32, -bound2, bound2)
    b2 = jax.random.uniform(k4, (1, dimension), jnp.float32, -bound2, bound2)
    return w1, b1, w2, b2


if __name__ == "__main__":
    key = jax.random.PRNGKey(0)
    k_x, k_p = jax.random.split(key)

    batch = 8
    dimension = 256            # module arg `dimension` (fc2 output width)

    x = jax.random.normal(k_x, (batch, D_IN), jnp.float32)
    w1, b1, w2, b2 = init_params(k_p, dimension)

    params = prepare_params(w1, b1, w2, b2)   # bf16 cast / split happens ONCE
    out = image_transformer_forward(x, params)
    out = jax.block_until_ready(out)

    # Plain-JAX reference (same math as the PyTorch module).  Tolerance covers
    # the bf16 streaming of x / W1 / W2 (all accumulation is f32).
    ref = (x @ w1 + b1) @ w2 + b2
    assert out.shape == (batch, dimension)
    assert out.dtype == jnp.float32
    assert jnp.allclose(out, ref, atol=2e-2, rtol=2e-2)

    print("KERNEL_OK")
</pallas_src>

<mosaic_0001>
module attributes {stable_mosaic.version = 11 : i64} {
  func.func @_mlp_kernel_single(%arg0: i32, %arg1: memref<8x2048xf32, #tpu.memory_space<vmem>>, %arg2: memref<2048x1024xbf16, #tpu.memory_space<vmem>>, %arg3: memref<1x1024xf32, #tpu.memory_space<vmem>>, %arg4: memref<1024x256xbf16, #tpu.memory_space<vmem>>, %arg5: memref<1x256xf32, #tpu.memory_space<vmem>>, %arg6: memref<8x256xf32, #tpu.memory_space<vmem>>, %arg7: memref<8x1024xf32, #tpu.memory_space<vmem>>) attributes {dimension_semantics = [#tpu.dimension_semantics<arbitrary>], iteration_bounds = array<i64: 1>, scalar_prefetch = 0 : i64, scratch_operands = 1 : i64, tpu.core_type = #tpu.core_type<tc>, window_params = [{pipeline_mode = #tpu.pipeline_mode<synchronous>, transform_indices = @transform_0, window_bounds = array<i64: 8, 2048>}, {transform_indices = @transform_1, window_bounds = array<i64: 2048, 1024>}, {pipeline_mode = #tpu.pipeline_mode<synchronous>, transform_indices = @transform_2, window_bounds = array<i64: 1, 1024>}, {pipeline_mode = #tpu.pipeline_mode<synchronous>, transform_indices = @transform_3, window_bounds = array<i64: 1024, 256>}, {pipeline_mode = #tpu.pipeline_mode<synchronous>, transform_indices = @transform_4, window_bounds = array<i64: 1, 256>}, {pipeline_mode = #tpu.pipeline_mode<synchronous>, transform_indices = @transform_5, window_bounds = array<i64: 8, 256>}]} {
    %c0_i32 = arith.constant 0 : i32
    %0 = arith.cmpi eq, %arg0, %c0_i32 : i32
    %1 = arith.extui %0 : i1 to i32
    %c0_i32_0 = arith.constant 0 : i32
    %2 = arith.cmpi ne, %1, %c0_i32_0 : i32
    scf.if %2 {
      %cst_9 = arith.constant 0.000000e+00 : f32
      %16 = vector.broadcast %cst_9 : f32 to vector<8x1024xf32>
      %c0_10 = arith.constant 0 : index
      %c0_11 = arith.constant 0 : index
      %17 = vector.load %arg7[%c0_10, %c0_11] : memref<8x1024xf32, #tpu.memory_space<vmem>>, vector<8x1024xf32>
      tpu.vector_store %arg7[%c0_10, %c0_11], %16 {strides = array<i32>} : memref<8x1024xf32, #tpu.memory_space<vmem>>, vector<8x1024xf32>,
    } else {
    }
    %c2048_i32 = arith.constant 2048 : i32
    %3 = arith.muli %arg0, %c2048_i32 : i32
    %4 = tpu.assume_multiple %3, 2048 : i32
    %c0 = arith.constant 0 : index
    %5 = arith.index_cast %4 : i32 to index
    %6 = vector.load %arg1[%c0, %5] : memref<8x2048xf32, #tpu.memory_space<vmem>>, vector<8x2048xf32>
    %c0_1 = arith.constant 0 : index
    %c0_2 = arith.constant 0 : index
    %7 = vector.load %arg7[%c0_1, %c0_2] : memref<8x1024xf32, #tpu.memory_space<vmem>>, vector<8x1024xf32>
    %8 = arith.truncf %6 : vector<8x2048xf32> to vector<8x2048xbf16>
    %c0_3 = arith.constant 0 : index
    %c0_4 = arith.constant 0 : index
    %9 = vector.load %arg2[%c0_3, %c0_4] : memref<2048x1024xbf16, #tpu.memory_space<vmem>>, vector<2048x1024xbf16>
    %cst = arith.constant dense<0.000000e+00> : vector<8x1024xf32>
    %10 = tpu.matmul %8, %9, %cst {dimension_numbers = #tpu.dot_dimension_numbers<[1], [0], [0], [1], [0, 0, 1, 1], [], []>} : vector<8x2048xbf16>, vector<2048x1024xbf16>, vector<8x1024xf32> -> vector<8x1024xf32>
    %11 = arith.addf %7, %10 : vector<8x1024xf32>
    %c0_5 = arith.constant 0 : index
    %c0_6 = arith.constant 0 : index
    %12 = vector.load %arg7[%c0_5, %c0_6] : memref<8x1024xf32, #tpu.memory_space<vmem>>, vector<8x1024xf32>
    tpu.vector_store %arg7[%c0_5, %c0_6], %11 {strides = array<i32>} : memref<8x1024xf32, #tpu.memory_space<vmem>>, vector<8x1024xf32>,
    %c0_i32_7 = arith.constant 0 : i32
    %13 = arith.cmpi eq, %arg0, %c0_i32_7 : i32
    %14 = arith.extui %13 : i1 to i32
    %c0_i32_8 = arith.constant 0 : i32
    %15 = arith.cmpi ne, %14, %c0_i32_8 : i32
    scf.if %15 {
      %c0_9 = arith.constant 0 : index
      %c0_10 = arith.constant 0 : index
      %16 = vector.load %arg7[%c0_9, %c0_10] : memref<8x1024xf32, #tpu.memory_space<vmem>>, vector<8x1024xf32>
      %c0_11 = arith.constant 0 : index
      %c0_12 = arith.constant 0 : index
      %17 = vector.load %arg3[%c0_11, %c0_12] : memref<1x1024xf32, #tpu.memory_space<vmem>>, vector<1x1024xf32>
      %18 = vector.broadcast %17 : vector<1x1024xf32> to vector<8x1024xf32>
      %19 = arith.addf %16, %18 : vector<8x1024xf32>
      %c0_13 = arith.constant 0 : index
      %c0_14 = arith.constant 0 : index
      %20 = vector.load %arg4[%c0_13, %c0_14] : memref<1024x256xbf16, #tpu.memory_space<vmem>>, vector<1024x256xbf16>
      %21 = arith.extf %20 : vector<1024x256xbf16> to vector<1024x256xf32>
      %cst_15 = arith.constant dense<0.000000e+00> : vector<8x256xf32>
      %22 = tpu.matmul %19, %21, %cst_15 {dimension_numbers = #tpu.dot_dimension_numbers<[1], [0], [0], [1], [0, 0, 1, 1], [], []>} : vector<8x1024xf32>, vector<1024x256xf32>, vector<8x256xf32> -> vector<8x256xf32>
      %c0_16 = arith.constant 0 : index
      %c0_17 = arith.constant 0 : index
      %23 = vector.load %arg5[%c0_16, %c0_17] : memref<1x256xf32, #tpu.memory_space<vmem>>, vector<1x256xf32>
      %24 = vector.broadcast %23 : vector<1x256xf32> to vector<8x256xf32>
      %25 = arith.addf %22, %24 : vector<8x256xf32>
      %c0_18 = arith.constant 0 : index
      %c0_19 = arith.constant 0 : index
      %26 = vector.load %arg6[%c0_18, %c0_19] : memref<8x256xf32, #tpu.memory_space<vmem>>, vector<8x256xf32>
      tpu.vector_store %arg6[%c0_18, %c0_19], %25 {strides = array<i32>} : memref<8x256xf32, #tpu.memory_space<vmem>>, vector<8x256xf32>,
    } else {
    }
    return
  }
  func.func @transform_0(%arg0: i32) -> (i32, i32) {
    %c0_i32 = arith.constant 0 : i32
    %c0_i32_0 = arith.constant 0 : i32
    %c0_i32_1 = arith.constant 0 : i32
    return %c0_i32, %c0_i32_0 : i32, i32
  }
  func.func @transform_1(%arg0: i32) -> (i32, i32) {
    %c0_i32 = arith.constant 0 : i32
    %c0_i32_0 = arith.constant 0 : i32
    return %arg0, %c0_i32 : i32, i32
  }
  func.func @transform_2(%arg0: i32) -> (i32, i32) {
    %c0_i32 = arith.constant 0 : i32
    %c0_i32_0 = arith.constant 0 : i32
    %c0_i32_1 = arith.constant 0 : i32
    return %c0_i32, %c0_i32_0 : i32, i32
  }
  func.func @transform_3(%arg0: i32) -> (i32, i32) {
    %c0_i32 = arith.constant 0 : i32
    %c0_i32_0 = arith.constant 0 : i32
    %c0_i32_1 = arith.constant 0 : i32
    return %c0_i32, %c0_i32_0 : i32, i32
  }
  func.func @transform_4(%arg0: i32) -> (i32, i32) {
    %c0_i32 = arith.constant 0 : i32
    %c0_i32_0 = arith.constant 0 : i32
    %c0_i32_1 = arith.constant 0 : i32
    return %c0_i32, %c0_i32_0 : i32, i32
  }
  func.func @transform_5(%arg0: i32) -> (i32, i32) {
    %c0_i32 = arith.constant 0 : i32
    %c0_i32_0 = arith.constant 0 : i32
    %c0_i32_1 = arith.constant 0 : i32
    return %c0_i32, %c0_i32_0 : i32, i32
  }
}

</mosaic_0001>

<bundles_post_ra>
// kernel: _forward_single.1
= control target key start
LH: loop header
LB: loop body
LE: loop exit
PB: predicated region body
PF: predicated region fallthrough
CT: control target
= control target key end

     0   :  { %10 = vsyncpa [#allocation4], 0  ;;  %s10532_s0 = inlined_call_operand.hbm [shape: f32[8,2048], index: 0, kind: input, shape index: {}]   ;;  %s10533_s1 = inlined_call_operand.hbm [shape: bf16[2048,1024], index: 1, kind: input, shape index: {}]   ;;  %s10534_s2 = inlined_call_operand.hbm [shape: f32[1,1024], index: 2, kind: input, shape index: {}]   ;;  %s10535_s3 = inlined_call_operand.hbm [shape: bf16[1024,256], index: 3, kind: input, shape index: {}]   ;;  %s10536_s4 = inlined_call_operand.hbm [shape: f32[1,256], index: 4, kind: input, shape index: {}]   ;;  %s10537_s5 = inlined_call_operand.hbm [shape: f32[8,256], index: 5, kind: output, shape index: {}]  }
   0x1   :  { %11 = vsyncpa [#allocation7], 0 }
   0x2   :  { %12 = vsyncpa [#allocation10], 0 }
   0x3   :  { %13 = vsyncpa [#allocation5], 0  ;;  %s10133_s18 = smov [#allocation6]   ;;  %s9993_s22 = scalar_lea.hbm %s10533_s1, 131072 }
   0x4   :  { %s29_s19 = sshll.u32 %s10133_s18, 4  ;;  %p9994_p0 = scmp.ne.s32.totalorder %s10533_s1, %s9993_s22  ;;  %s30_s19 = int_to_ptr.vmem [resolvable:$true] %s29_s19 }
   0x5   :  { %p9997_p1 = scmp.lt.u32.totalorder %s9993_s22, %s10533_s1 }
   0x7   :  { %p9999_p2 = pnand %p9997_p1, %p9994_p0 }
   0x9   :  { %10002 = shalt.err (!%p9999_p2)
}
   0xa   :  { %s10003_s27 = scalar_lea.vmem %s30_s19, 131072  ;;  %p10008_p4 = scmp.lt.s32.totalorder %s30_s19, %s30_s19 }
   0xb   :  { %p10004_p3 = scmp.ne.s32.totalorder %s30_s19, %s10003_s27  ;;  %p10009_p5 = scmp.lt.s32.totalorder %s10003_s27, %s10003_s27 }
   0xd   :  { %p10010_p6 = por %p10009_p5, %p10008_p4 }
   0xf   :  { %p10011_p7 = pnand %p10010_p6, %p10004_p3 }
  0x11   :  { %10014 = shalt.err (!%p10011_p7)
}
  0x12   :  { %s10134_s28 = smov 512   ;;  %s10135_s29 = smov 32  }
  0x13   :  { %35 = dma.hbm_to_vmem [thread:$0]  %s10533_s1, 131072, %s30_s19, [#allocation7], %s10134_s28, %s10134_s28, %s10135_s29  }
  0x14   :  { %s10136_s7 = smov [#allocation9]   ;;  %s10015_s11 = scalar_lea.hbm %s10535_s3, 16384 }
  0x15   :  { %s51_s8 = sshll.u32 %s10136_s7, 4  ;;  %p10016_p8 = scmp.ne.s32.totalorder %s10535_s3, %s10015_s11  ;;  %s52_s8 = int_to_ptr.vmem [resolvable:$true] %s51_s8 }
  0x16   :  { %p10019_p9 = scmp.lt.u32.totalorder %s10015_s11, %s10535_s3 }
  0x18   :  { %p10021_p10 = pnand %p10019_p9, %p10016_p8 }
  0x1a   :  { %10024 = shalt.err (!%p10021_p10)
}
  0x1b   :  { %s10025_s16 = scalar_lea.vmem %s52_s8, 16384  ;;  %p10030_p12 = scmp.lt.s32.totalorder %s52_s8, %s52_s8 }
  0x1c   :  { %p10026_p11 = scmp.ne.s32.totalorder %s52_s8, %s10025_s16  ;;  %p10031_p13 = scmp.lt.s32.totalorder %s10025_s16, %s10025_s16 }
  0x1e   :  { %p10032_p0 = por %p10031_p13, %p10030_p12 }
  0x20   :  { %p10033_p1 = pnand %p10032_p0, %p10026_p11 }
  0x22   :  { %10036 = shalt.err (!%p10033_p1)
}
  0x23   :  { %s10137_s1 = smov 128   ;;  %s10138_s17 = smov 8  }
  0x24   :  { %57 = dma.hbm_to_vmem [thread:$0]  %s10535_s3, 16384, %s52_s8, [#allocation10], %s10137_s1, %s10137_s1, %s10138_s17  }
  0x25   :  { %s10139_s20 = smov [#allocation3]   ;;  %s10140_s22 = smov [#allocation8]  }
  0x26   :  { %s20_s21 = sshll.u32 %s10139_s20, 4  ;;  %s42_s23 = sshll.u32 %s10140_s22, 4  ;;  %s21_s21 = int_to_ptr.vmem [resolvable:$true] %s20_s21  ;;  %s43_s23 = int_to_ptr.vmem [resolvable:$true] %s42_s23 }
  0x27   :  { %s10037_s26 = scalar_lea.hbm %s10532_s0, 2048 }
  0x28   :  { %p10038_p2 = scmp.ne.s32.totalorder %s10532_s0, %s10037_s26  ;;  %p10041_p3 = scmp.lt.u32.totalorder %s10037_s26, %s10532_s0 }
  0x2a   :  { %p10043_p4 = pnand %p10041_p3, %p10038_p2 }
  0x2c   :  { %10046 = shalt.err (!%p10043_p4)
}
  0x2d   :  { %s10047_s3 = scalar_lea.vmem %s21_s21, 2048  ;;  %p10052_p6 = scmp.lt.s32.totalorder %s21_s21, %s21_s21 }
  0x2e   :  { %p10048_p5 = scmp.ne.s32.totalorder %s21_s21, %s10047_s3  ;;  %p10053_p7 = scmp.lt.s32.totalorder %s10047_s3, %s10047_s3 }
  0x30   :  { %p10054_p8 = por %p10053_p7, %p10052_p6 }
  0x32   :  { %p10055_p9 = pnand %p10054_p8, %p10048_p5 }
  0x34   :  { %10058 = shalt.err (!%p10055_p9)
}
  0x35   :  { %23 = dma.hbm_to_vmem [thread:$0]  %s10532_s0, 2048, %s21_s21, [#allocation4]  }
  0x36   :  { %s10059_s10 = scalar_lea.hbm %s10534_s2, 128 }
  0x37   :  { %p10060_p10 = scmp.ne.s32.totalorder %s10534_s2, %s10059_s10  ;;  %p10063_p11 = scmp.lt.u32.totalorder %s10059_s10, %s10534_s2 }
  0x39   :  { %p10065_p12 = pnand %p10063_p11, %p10060_p10 }
  0x3b   :  { %10068 = shalt.err (!%p10065_p12)
}
  0x3c   :  { %s10069_s15 = scalar_lea.vmem %s43_s23, 128  ;;  %p10074_p0 = scmp.lt.s32.totalorder %s43_s23, %s43_s23 }
  0x3d   :  { %p10070_p13 = scmp.ne.s32.totalorder %s43_s23, %s10069_s15  ;;  %p10075_p1 = scmp.lt.s32.totalorder %s10069_s15, %s10069_s15 }
  0x3f   :  { %p10076_p2 = por %p10075_p1, %p10074_p0 }
  0x41   :  { %p10077_p3 = pnand %p10076_p2, %p10070_p13 }
  0x43   :  { %10080 = shalt.err (!%p10077_p3)
}
  0x44   :  { %45 = dma.hbm_to_vmem [thread:$0]  %s10534_s2, 128, %s43_s23, [#allocation7]  }
  0x45   :  { %s10141_s1 = smov [#allocation11]   ;;  %s10081_s20 = scalar_lea.hbm %s10536_s4, 32 }
  0x46   :  { %s64_s17 = sshll.u32 %s10141_s1, 4  ;;  %p10082_p4 = scmp.ne.s32.totalorder %s10536_s4, %s10081_s20  ;;  %s65_s17 = int_to_ptr.vmem [resolvable:$true] %s64_s17 }
  0x47   :  { %p10085_p5 = scmp.lt.u32.totalorder %s10081_s20, %s10536_s4 }
  0x49   :  { %p10087_p6 = pnand %p10085_p5, %p10082_p4 }
  0x4b   :  { %10090 = shalt.err (!%p10087_p6)
}
  0x4c   :  { %s10091_s26 = scalar_lea.vmem %s65_s17, 32  ;;  %p10096_p8 = scmp.lt.s32.totalorder %s65_s17, %s65_s17 }
  0x4d   :  { %p10092_p7 = scmp.ne.s32.totalorder %s65_s17, %s10091_s26  ;;  %p10097_p9 = scmp.lt.s32.totalorder %s10091_s26, %s10091_s26 }
  0x4f   :  { %p10098_p10 = por %p10097_p9, %p10096_p8 }
  0x51   :  { %p10099_p11 = pnand %p10098_p10, %p10092_p7 }
  0x53   :  { %10102 = shalt.err (!%p10099_p11)
}
  0x54   :  { %67 = dma.hbm_to_vmem [thread:$0]  %s10536_s4, 32, %s65_s17, [#allocation10]  }
  0x55   :  { %10125 = dma.done.wait [#allocation4], 2048  }
  0x56   :  { %10126 = vsyncadd [#allocation4], 4294965248 }
  0x57   :  { %10127 = dma.done.wait [#allocation7], 131200  }
  0x58   :  { %10128 = vsyncadd [#allocation7], 4294836096 }
  0x59   :  { %10129 = dma.done.wait [#allocation10], 16416  }
  0x5a   :  { %10130 = vsyncadd [#allocation10], 4294950880  ;;  %v140_v0 = vld [vmem:[#allocation6] sm:$0xff]  ;;  %v101_v53 = vld [vmem:[#allocation3 + $0x8] sm:$0xff]  ;;  %s10142_s4 = smov [#allocation12]  }
  0x5b   :  { %v144_v1 = vld [vmem:[#allocation6 + $0x20] sm:$0xff]  ;;  %v10233_v57 = vpack.c.bf16 %v101_v53, %v101_v53  ;;  %v105_v58 = vld [vmem:[#allocation3 + $0x28] sm:$0xff]  ;;  %s8361_s27 = sshll.u32 %s10142_s4, 4  ;;  %s8362_s27 = int_to_ptr.vmem [resolvable:$true] %s8361_s27 }
  0x5c   :  { %v396_v2 = vld [vmem:[#allocation6 + $0x800] sm:$0xff]  ;;  %v8375_v3 = vcombine.high %v140_v0, %v144_v1  ;;  %v8374_v5 = vcombine.low %v140_v0, %v144_v1  ;;  %v10235_v61 = vpack.c.bf16 %v105_v58, %v105_v58  ;;  %s10103_s28 = scalar_lea.vmem %s8362_s27, 256  ;;  %p10108_p13 = scmp.lt.s32.totalorder %s8362_s27, %s8362_s27 }
  0x5d   :  { %v400_v4 = vld [vmem:[#allocation6 + $0x820] sm:$0xff]  ;;  %6316 = vmatprep.mubr.bf16.mxu1 %v10233_v57  ;;  %p10104_p12 = scmp.ne.s32.totalorder %s8362_s27, %s10103_s28  ;;  %p10109_p0 = scmp.lt.s32.totalorder %s10103_s28, %s10103_s28 }
  0x5e   :  { %v148_v6 = vld [vmem:[#allocation6 + $0x40] sm:$0xff]  ;;  %v8631_v8 = vcombine.high %v396_v2, %v400_v4  ;;  %v8630_v9 = vcombine.low %v396_v2, %v400_v4  ;;  %6284 = vmatprep.subr.bf16.mxu1 %v8375_v3  ;;  %6398 = vmatprep.mubr.bf16.mxu0 %v10235_v61 }
  0x5f   :  { %v152_v7 = vld [vmem:[#allocation6 + $0x60] sm:$0xff]  ;;  %6285 = vmatpush1.bf16.msra.mxu1 %v8374_v5  ;;  %p10110_p1 = por %p10109_p0, %p10108_p13 }
  0x60   :  { %v8383_v10 = vcombine.high %v148_v6, %v152_v7  ;;  %v404_v11 = vld [vmem:[#allocation6 + $0x840] sm:$0xff]  ;;  %6366 = vmatprep.subr.bf16.mxu0 %v8631_v8  ;;  %v8382_v18 = vcombine.low %v148_v6, %v152_v7 }
  0x61   :  { %v408_v12 = vld [vmem:[#allocation6 + $0x860] sm:$0xff]  ;;  %6367 = vmatpush1.bf16.msra.mxu0 %v8630_v9  ;;  %p10111_p2 = pnand %p10110_p1, %p10104_p12 }
  0x62   :  { %v156_v13 = vld [vmem:[#allocation6 + $0x80] sm:$0xff]  ;;  %v8639_v14 = vcombine.high %v404_v11, %v408_v12  ;;  %6286 = vmatprep.subr.bf16.mxu1 %v8383_v10  ;;  %v8638_v19 = vcombine.low %v404_v11, %v408_v12 }
  0x63   :  { %v160_v15 = vld [vmem:[#allocation6 + $0xa0] sm:$0xff]  ;;  %6287 = vmatpush1.bf16.msra.mxu1 %v8382_v18 }
  0x64   :  { %v412_v16 = vld [vmem:[#allocation6 + $0x880] sm:$0xff]  ;;  %v8391_v20 = vcombine.high %v156_v13, %v160_v15  ;;  %6368 = vmatprep.subr.bf16.mxu0 %v8639_v14  ;;  %v8390_v26 = vcombine.low %v156_v13, %v160_v15 }
  0x65   :  { %v416_v17 = vld [vmem:[#allocation6 + $0x8a0] sm:$0xff]  ;;  %6369 = vmatpush1.bf16.msra.mxu0 %v8638_v19 }
  0x66   :  { %v8647_v21 = vcombine.high %v412_v16, %v416_v17  ;;  %v164_v22 = vld [vmem:[#allocation6 + $0xc0] sm:$0xff]  ;;  %6288 = vmatprep.subr.bf16.mxu1 %v8391_v20  ;;  %v8646_v27 = vcombine.low %v412_v16, %v416_v17 }
  0x67   :  { %v168_v23 = vld [vmem:[#allocation6 + $0xe0] sm:$0xff]  ;;  %6289 = vmatpush1.bf16.msra.mxu1 %v8390_v26 }
  0x68   :  { %v420_v24 = vld [vmem:[#allocation6 + $0x8c0] sm:$0xff]  ;;  %v8399_v28 = vcombine.high %v164_v22, %v168_v23  ;;  %6370 = vmatprep.subr.bf16.mxu0 %v8647_v21  ;;  %v8398_v34 = vcombine.low %v164_v22, %v168_v23 }
  0x69   :  { %v424_v25 = vld [vmem:[#allocation6 + $0x8e0] sm:$0xff]  ;;  %6371 = vmatpush1.bf16.msra.mxu0 %v8646_v27 }
  0x6a   :  { %v8655_v29 = vcombine.high %v420_v24, %v424_v25  ;;  %v172_v30 = vld [vmem:[#allocation6 + $0x100] sm:$0xff]  ;;  %6290 = vmatprep.subr.bf16.mxu1 %v8399_v28  ;;  %v8654_v35 = vcombine.low %v420_v24, %v424_v25 }
  0x6b   :  { %v176_v31 = vld [vmem:[#allocation6 + $0x120] sm:$0xff]  ;;  %6291 = vmatpush1.bf16.msra.mxu1 %v8398_v34 }
  0x6c   :  { %v428_v32 = vld [vmem:[#allocation6 + $0x900] sm:$0xff]  ;;  %v8407_v36 = vcombine.high %v172_v30, %v176_v31  ;;  %6372 = vmatprep.subr.bf16.mxu0 %v8655_v29  ;;  %v8406_v42 = vcombine.low %v172_v30, %v176_v31 }
  0x6d   :  { %v432_v33 = vld [vmem:[#allocation6 + $0x920] sm:$0xff]  ;;  %6373 = vmatpush1.bf16.msra.mxu0 %v8654_v35 }
  0x6e   :  { %v8663_v37 = vcombine.high %v428_v32, %v432_v33  ;;  %v180_v38 = vld [vmem:[#allocation6 + $0x140] sm:$0xff]  ;;  %6292 = vmatprep.subr.bf16.mxu1 %v8407_v36  ;;  %v8662_v43 = vcombine.low %v428_v32, %v432_v33 }
  0x6f   :  { %v184_v39 = vld [vmem:[#allocation6 + $0x160] sm:$0xff]  ;;  %6293 = vmatpush1.bf16.msra.mxu1 %v8406_v42 }
  0x70   :  { %v436_v40 = vld [vmem:[#allocation6 + $0x940] sm:$0xff]  ;;  %v8415_v44 = vcombine.high %v180_v38, %v184_v39  ;;  %6374 = vmatprep.subr.bf16.mxu0 %v8663_v37  ;;  %v8414_v50 = vcombine.low %v180_v38, %v184_v39 }
  0x71   :  { %v440_v41 = vld [vmem:[#allocation6 + $0x960] sm:$0xff]  ;;  %6375 = vmatpush1.bf16.msra.mxu0 %v8662_v43 }
  0x72   :  { %v8671_v45 = vcombine.high %v436_v40, %v440_v41  ;;  %v188_v46 = vld [vmem:[#allocation6 + $0x180] sm:$0xff]  ;;  %6294 = vmatprep.subr.bf16.mxu1 %v8415_v44  ;;  %v8670_v51 = vcombine.low %v436_v40, %v440_v41 }
  0x73   :  { %v192_v47 = vld [vmem:[#allocation6 + $0x1a0] sm:$0xff]  ;;  %6295 = vmatpush1.bf16.msra.mxu1 %v8414_v50 }
  0x74   :  { %v444_v48 = vld [vmem:[#allocation6 + $0x980] sm:$0xff]  ;;  %v8423_v52 = vcombine.high %v188_v46, %v192_v47  ;;  %6376 = vmatprep.subr.bf16.mxu0 %v8671_v45  ;;  %v8422_v62 = vcombine.low %v188_v46, %v192_v47 }
  0x75   :  { %v448_v49 = vld [vmem:[#allocation6 + $0x9a0] sm:$0xff]  ;;  %6377 = vmatpush1.bf16.msra.mxu0 %v8670_v51 }
  0x76   :  { %v8679_v54 = vcombine.high %v444_v48, %v448_v49  ;;  %v196_v55 = vld [vmem:[#allocation6 + $0x1c0] sm:$0xff]  ;;  %6296 = vmatprep.subr.bf16.mxu1 %v8423_v52  ;;  %v8678_v63 = vcombine.low %v444_v48, %v448_v49 }
  0x77   :  { %v200_v56 = vld [vmem:[#allocation6 + $0x1e0] sm:$0xff]  ;;  %6297 = vmatpush1.bf16.msra.mxu1 %v8422_v62 }
  0x78   :  { %v452_v59 = vld [vmem:[#allocation6 + $0x9c0] sm:$0xff]  ;;  %v8431_v0 = vcombine.high %v196_v55, %v200_v56  ;;  %6378 = vmatprep.subr.bf16.mxu0 %v8679_v54  ;;  %v8430_v6 = vcombine.low %v196_v55, %v200_v56 }
  0x79   :  { %v456_v60 = vld [vmem:[#allocation6 + $0x9e0] sm:$0xff]  ;;  %6379 = vmatpush1.bf16.msra.mxu0 %v8678_v63 }
  0x7a   :  { %v8687_v1 = vcombine.high %v452_v59, %v456_v60  ;;  %v204_v2 = vld [vmem:[#allocation6 + $0x200] sm:$0xff]  ;;  %6298 = vmatprep.subr.bf16.mxu1 %v8431_v0  ;;  %v8686_v7 = vcombine.low %v452_v59, %v456_v60 }
  0x7b   :  { %v208_v3 = vld [vmem:[#allocation6 + $0x220] sm:$0xff]  ;;  %6299 = vmatpush1.bf16.msra.mxu1 %v8430_v6 }
  0x7c   :  { %v460_v4 = vld [vmem:[#allocation6 + $0xa00] sm:$0xff]  ;;  %v8439_v8 = vcombine.high %v204_v2, %v208_v3  ;;  %6380 = vmatprep.subr.bf16.mxu0 %v8687_v1  ;;  %v8438_v14 = vcombine.low %v204_v2, %v208_v3 }
  0x7d   :  { %v464_v5 = vld [vmem:[#allocation6 + $0xa20] sm:$0xff]  ;;  %6381 = vmatpush1.bf16.msra.mxu0 %v8686_v7 }
  0x7e   :  { %v8695_v9 = vcombine.high %v460_v4, %v464_v5  ;;  %v212_v10 = vld [vmem:[#allocation6 + $0x240] sm:$0xff]  ;;  %6300 = vmatprep.subr.bf16.mxu1 %v8439_v8  ;;  %v8694_v15 = vcombine.low %v460_v4, %v464_v5 }
  0x7f   :  { %v216_v11 = vld [vmem:[#allocation6 + $0x260] sm:$0xff]  ;;  %6301 = vmatpush1.bf16.msra.mxu1 %v8438_v14 }
  0x80   :  { %v468_v12 = vld [vmem:[#allocation6 + $0xa40] sm:$0xff]  ;;  %v8447_v16 = vcombine.high %v212_v10, %v216_v11  ;;  %6382 = vmatprep.subr.bf16.mxu0 %v8695_v9  ;;  %v8446_v22 = vcombine.low %v212_v10, %v216_v11 }
  0x81   :  { %v472_v13 = vld [vmem:[#allocation6 + $0xa60] sm:$0xff]  ;;  %6383 = vmatpush1.bf16.msra.mxu0 %v8694_v15 }
  0x82   :  { %v8703_v17 = vcombine.high %v468_v12, %v472_v13  ;;  %v220_v18 = vld [vmem:[#allocation6 + $0x280] sm:$0xff]  ;;  %6302 = vmatprep.subr.bf16.mxu1 %v8447_v16  ;;  %v8702_v23 = vcombine.low %v468_v12, %v472_v13 }
  0x83   :  { %v224_v19 = vld [vmem:[#allocation6 + $0x2a0] sm:$0xff]  ;;  %6303 = vmatpush1.bf16.msra.mxu1 %v8446_v22  ;;  %v109_v22 = vld [vmem:[#allocation3 + $0x48] sm:$0xff] }
  0x84   :  { %v476_v20 = vld [vmem:[#allocation6 + $0xa80] sm:$0xff]  ;;  %v8455_v24 = vcombine.high %v220_v18, %v224_v19  ;;  %6384 = vmatprep.subr.bf16.mxu0 %v8703_v17  ;;  %v8454_v30 = vcombine.low %v220_v18, %v224_v19  ;;  %v103_v19 = vld [vmem:[#allocation3 + $0x18] sm:$0xff] }
  0x85   :  { %v480_v21 = vld [vmem:[#allocation6 + $0xaa0] sm:$0xff]  ;;  %6385 = vmatpush1.bf16.msra.mxu0 %v8702_v23 }
  0x86   :  { %v8711_v25 = vcombine.high %v476_v20, %v480_v21  ;;  %v228_v26 = vld [vmem:[#allocation6 + $0x2c0] sm:$0xff]  ;;  %6304 = vmatprep.subr.bf16.mxu1 %v8455_v24  ;;  %v8710_v31 = vcombine.low %v476_v20, %v480_v21 }
  0x87   :  { %v232_v27 = vld [vmem:[#allocation6 + $0x2e0] sm:$0xff]  ;;  %6305 = vmatpush1.bf16.msra.mxu1 %v8454_v30 }
  0x88   :  { %v484_v28 = vld [vmem:[#allocation6 + $0xac0] sm:$0xff]  ;;  %v8463_v32 = vcombine.high %v228_v26, %v232_v27  ;;  %6386 = vmatprep.subr.bf16.mxu0 %v8711_v25  ;;  %v8462_v38 = vcombine.low %v228_v26, %v232_v27 }
  0x89   :  { %v488_v29 = vld [vmem:[#allocation6 + $0xae0] sm:$0xff]  ;;  %6387 = vmatpush1.bf16.msra.mxu0 %v8710_v31  ;;  %v10246_v31 = vpack.c.bf16 %v109_v22, %v109_v22 }
  0x8a   :  { %v8719_v33 = vcombine.high %v484_v28, %v488_v29  ;;  %v236_v34 = vld [vmem:[#allocation6 + $0x300] sm:$0xff]  ;;  %6306 = vmatprep.subr.bf16.mxu1 %v8463_v32  ;;  %v8718_v39 = vcombine.low %v484_v28, %v488_v29  ;;  %v10243_v28 = vpack.c.bf16 %v103_v19, %v103_v19 }
  0x8b   :  { %v240_v35 = vld [vmem:[#allocation6 + $0x320] sm:$0xff]  ;;  %6307 = vmatpush1.bf16.msra.mxu1 %v8462_v38 }
  0x8c   :  { %v492_v36 = vld [vmem:[#allocation6 + $0xb00] sm:$0xff]  ;;  %v8471_v40 = vcombine.high %v236_v34, %v240_v35  ;;  %6388 = vmatprep.subr.bf16.mxu0 %v8719_v33  ;;  %v8470_v46 = vcombine.low %v236_v34, %v240_v35 }
  0x8d   :  { %v496_v37 = vld [vmem:[#allocation6 + $0xb20] sm:$0xff]  ;;  %6389 = vmatpush1.bf16.msra.mxu0 %v8718_v39 }
  0x8e   :  { %v8727_v41 = vcombine.high %v492_v36, %v496_v37  ;;  %v244_v42 = vld [vmem:[#allocation6 + $0x340] sm:$0xff]  ;;  %6308 = vmatprep.subr.bf16.mxu1 %v8471_v40  ;;  %v8726_v47 = vcombine.low %v492_v36, %v496_v37 }
  0x8f   :  { %v248_v43 = vld [vmem:[#allocation6 + $0x360] sm:$0xff]  ;;  %6309 = vmatpush1.bf16.msra.mxu1 %v8470_v46 }
  0x90   :  { %v500_v44 = vld [vmem:[#allocation6 + $0xb40] sm:$0xff]  ;;  %v8479_v48 = vcombine.high %v244_v42, %v248_v43  ;;  %6390 = vmatprep.subr.bf16.mxu0 %v8727_v41  ;;  %v8478_v54 = vcombine.low %v244_v42, %v248_v43 }
  0x91   :  { %v504_v45 = vld [vmem:[#allocation6 + $0xb60] sm:$0xff]  ;;  %6391 = vmatpush1.bf16.msra.mxu0 %v8726_v47 }
  0x92   :  { %v8735_v49 = vcombine.high %v500_v44, %v504_v45  ;;  %v252_v50 = vld [vmem:[#allocation6 + $0x380] sm:$0xff]  ;;  %6310 = vmatprep.subr.bf16.mxu1 %v8479_v48  ;;  %v8734_v55 = vcombine.low %v500_v44, %v504_v45 }
  0x93   :  { %v256_v51 = vld [vmem:[#allocation6 + $0x3a0] sm:$0xff]  ;;  %6311 = vmatpush1.bf16.msra.mxu1 %v8478_v54 }
  0x94   :  { %v508_v52 = vld [vmem:[#allocation6 + $0xb80] sm:$0xff]  ;;  %v8487_v56 = vcombine.high %v252_v50, %v256_v51  ;;  %6392 = vmatprep.subr.bf16.mxu0 %v8735_v49  ;;  %v8486_v0 = vcombine.low %v252_v50, %v256_v51 }
  0x95   :  { %v512_v53 = vld [vmem:[#allocation6 + $0xba0] sm:$0xff]  ;;  %6393 = vmatpush1.bf16.msra.mxu0 %v8734_v55 }
  0x96   :  { %v8743_v58 = vcombine.high %v508_v52, %v512_v53  ;;  %v260_v59 = vld [vmem:[#allocation6 + $0x3c0] sm:$0xff]  ;;  %6312 = vmatprep.subr.bf16.mxu1 %v8487_v56  ;;  %v8742_v1 = vcombine.low %v508_v52, %v512_v53 }
  0x97   :  { %v264_v60 = vld [vmem:[#allocation6 + $0x3e0] sm:$0xff]  ;;  %6313 = vmatpush1.bf16.msra.mxu1 %v8486_v0 }
  0x98   :  { %v516_v62 = vld [vmem:[#allocation6 + $0xbc0] sm:$0xff]  ;;  %v8495_v2 = vcombine.high %v260_v59, %v264_v60  ;;  %6394 = vmatprep.subr.bf16.mxu0 %v8743_v58  ;;  %v8494_v8 = vcombine.low %v260_v59, %v264_v60 }
  0x99   :  { %v520_v63 = vld [vmem:[#allocation6 + $0xbe0] sm:$0xff]  ;;  %6395 = vmatpush1.bf16.msra.mxu0 %v8742_v1 }
  0x9a   :  { %v8751_v3 = vcombine.high %v516_v62, %v520_v63  ;;  %v268_v4 = vld [vmem:[#allocation6 + $0x400] sm:$0xff]  ;;  %6314 = vmatprep.subr.bf16.mxu1 %v8495_v2  ;;  %v8750_v10 = vcombine.low %v516_v62, %v520_v63 }
  0x9b   :  { %v272_v5 = vld [vmem:[#allocation6 + $0x420] sm:$0xff]  ;;  %6315 = vmatpush1.bf16.msra.mxu1 %v8494_v8 }
  0x9c   :  { %v652_v6 = vld [vmem:[#allocation6 + $0x1000] sm:$0xff]  ;;  %v8503_v11 = vcombine.high %v268_v4, %v272_v5  ;;  %6396 = vmatprep.subr.bf16.mxu0 %v8751_v3  ;;  %v8502_v20 = vcombine.low %v268_v4, %v272_v5 }
  0x9d   :  { %v656_v7 = vld [vmem:[#allocation6 + $0x1020] sm:$0xff]  ;;  %6397 = vmatpush1.bf16.msra.mxu0 %v8750_v10 }
  0x9e   :  { %v100_v9 = vld [vmem:[#allocation3] sm:$0xff]  ;;  %v8887_v13 = vcombine.high %v652_v6, %v656_v7  ;;  %6325 = vmatprep.subr.bf16.mxu1 %v8503_v11  ;;  %v8886_v23 = vcombine.low %v652_v6, %v656_v7 }
  0x9f   :  { %v104_v12 = vld [vmem:[#allocation3 + $0x20] sm:$0xff]  ;;  %v10239_v16 = vpack.c.bf16 %v100_v9, %v100_v9 }
  0xa0   :  { %v276_v14 = vld [vmem:[#allocation6 + $0x440] sm:$0xff]  ;;  %v10241_v21 = vpack.c.bf16 %v104_v12, %v104_v12  ;;  %6448 = vmatprep.subr.bf16.mxu0 %v8887_v13 }
  0xa1   :  { %v280_v15 = vld [vmem:[#allocation6 + $0x460] sm:$0xff]  ;;  %6317 = vmatmul.mubr.bf16.vlgmr.msra.gmra.mrb[0].mxu1 %v10239_v16 }
  0xa2   :  { %v660_v17 = vld [vmem:[#allocation6 + $0x1040] sm:$0xff]  ;;  %v8511_v24 = vcombine.high %v276_v14, %v280_v15  ;;  %6326 = vmatpush1.bf16.msra.mxu1 %v8502_v20  ;;  %6399 = vmatmul.mubr.bf16.vlgmr.msra.gmra.mrb[0].mxu0 %v10241_v21  ;;  %v8510_v32 = vcombine.low %v276_v14, %v280_v15 }
  0xa3   :  { %v664_v18 = vld [vmem:[#allocation6 + $0x1060] sm:$0xff]  ;;  %6449 = vmatpush1.bf16.msra.mxu0 %v8886_v23  ;;  %6357 = vmatprep.mubr.bf16.mxu1 %v10243_v28 }
  0xa4   :  { %v8895_v25 = vcombine.high %v660_v17, %v664_v18  ;;  %v284_v26 = vld [vmem:[#allocation6 + $0x480] sm:$0xff]  ;;  %6327 = vmatprep.subr.bf16.mxu1 %v8511_v24  ;;  %v8894_v33 = vcombine.low %v660_v17, %v664_v18  ;;  %6480 = vmatprep.mubr.bf16.mxu0 %v10246_v31 }
  0xa5   :  { %v288_v27 = vld [vmem:[#allocation6 + $0x4a0] sm:$0xff] }
  0xa6   :  { %v668_v29 = vld [vmem:[#allocation6 + $0x1080] sm:$0xff]  ;;  %v8519_v34 = vcombine.high %v284_v26, %v288_v27  ;;  %6450 = vmatprep.subr.bf16.mxu0 %v8895_v25  ;;  %6328 = vmatpush1.bf16.msra.mxu1 %v8510_v32  ;;  %v8518_v40 = vcombine.low %v284_v26, %v288_v27 }
  0xa7   :  { %v672_v30 = vld [vmem:[#allocation6 + $0x10a0] sm:$0xff]  ;;  %6451 = vmatpush1.bf16.msra.mxu0 %v8894_v33 }
  0xa8   :  { %v292_v35 = vld [vmem:[#allocation6 + $0x4c0] sm:$0xff]  ;;  %v8903_v37 = vcombine.high %v668_v29, %v672_v30  ;;  %6329 = vmatprep.subr.bf16.mxu1 %v8519_v34  ;;  %v8902_v41 = vcombine.low %v668_v29, %v672_v30 }
  0xa9   :  { %v296_v36 = vld [vmem:[#allocation6 + $0x4e0] sm:$0xff] }
  0xaa   :  { %v676_v38 = vld [vmem:[#allocation6 + $0x10c0] sm:$0xff]  ;;  %v8527_v42 = vcombine.high %v292_v35, %v296_v36  ;;  %6452 = vmatprep.subr.bf16.mxu0 %v8903_v37  ;;  %6330 = vmatpush1.bf16.msra.mxu1 %v8518_v40  ;;  %v8526_v48 = vcombine.low %v292_v35, %v296_v36 }
  0xab   :  { %v680_v39 = vld [vmem:[#allocation6 + $0x10e0] sm:$0xff]  ;;  %6453 = vmatpush1.bf16.msra.mxu0 %v8902_v41 }
  0xac   :  { %v300_v43 = vld [vmem:[#allocation6 + $0x500] sm:$0xff]  ;;  %v8911_v46 = vcombine.high %v676_v38, %v680_v39  ;;  %6331 = vmatprep.subr.bf16.mxu1 %v8527_v42  ;;  %v8910_v49 = vcombine.low %v676_v38, %v680_v39 }
  0xad   :  { %v304_v44 = vld [vmem:[#allocation6 + $0x520] sm:$0xff] }
  0xae   :  { %v684_v45 = vld [vmem:[#allocation6 + $0x1100] sm:$0xff]  ;;  %v8535_v50 = vcombine.high %v300_v43, %v304_v44  ;;  %6454 = vmatprep.subr.bf16.mxu0 %v8911_v46  ;;  %6332 = vmatpush1.bf16.msra.mxu1 %v8526_v48  ;;  %v8534_v56 = vcombine.low %v300_v43, %v304_v44 }
  0xaf   :  { %v688_v47 = vld [vmem:[#allocation6 + $0x1120] sm:$0xff]  ;;  %6455 = vmatpush1.bf16.msra.mxu0 %v8910_v49 }
  0xb0   :  { %v308_v51 = vld [vmem:[#allocation6 + $0x540] sm:$0xff]  ;;  %v8919_v54 = vcombine.high %v684_v45, %v688_v47  ;;  %6333 = vmatprep.subr.bf16.mxu1 %v8535_v50  ;;  %v8918_v58 = vcombine.low %v684_v45, %v688_v47 }
  0xb1   :  { %v312_v52 = vld [vmem:[#allocation6 + $0x560] sm:$0xff] }
  0xb2   :  { %v692_v53 = vld [vmem:[#allocation6 + $0x1140] sm:$0xff]  ;;  %v8543_v59 = vcombine.high %v308_v51, %v312_v52  ;;  %6456 = vmatprep.subr.bf16.mxu0 %v8919_v54  ;;  %6334 = vmatpush1.bf16.msra.mxu1 %v8534_v56  ;;  %v8542_v2 = vcombine.low %v308_v51, %v312_v52 }
  0xb3   :  { %v696_v55 = vld [vmem:[#allocation6 + $0x1160] sm:$0xff]  ;;  %6457 = vmatpush1.bf16.msra.mxu0 %v8918_v58 }
  0xb4   :  { %v316_v60 = vld [vmem:[#allocation6 + $0x580] sm:$0xff]  ;;  %v8927_v0 = vcombine.high %v692_v53, %v696_v55  ;;  %6335 = vmatprep.subr.bf16.mxu1 %v8543_v59  ;;  %v8926_v3 = vcombine.low %v692_v53, %v696_v55 }
  0xb5   :  { %v320_v62 = vld [vmem:[#allocation6 + $0x5a0] sm:$0xff] }
  0xb6   :  { %v700_v63 = vld [vmem:[#allocation6 + $0x1180] sm:$0xff]  ;;  %v8551_v4 = vcombine.high %v316_v60, %v320_v62  ;;  %6458 = vmatprep.subr.bf16.mxu0 %v8927_v0  ;;  %6336 = vmatpush1.bf16.msra.mxu1 %v8542_v2  ;;  %v8550_v10 = vcombine.low %v316_v60, %v320_v62 }
  0xb7   :  { %v704_v1 = vld [vmem:[#allocation6 + $0x11a0] sm:$0xff]  ;;  %6459 = vmatpush1.bf16.msra.mxu0 %v8926_v3 }
  0xb8   :  { %v324_v5 = vld [vmem:[#allocation6 + $0x5c0] sm:$0xff]  ;;  %v8935_v8 = vcombine.high %v700_v63, %v704_v1  ;;  %6337 = vmatprep.subr.bf16.mxu1 %v8551_v4  ;;  %v8934_v11 = vcombine.low %v700_v63, %v704_v1 }
  0xb9   :  { %v328_v6 = vld [vmem:[#allocation6 + $0x5e0] sm:$0xff] }
  0xba   :  { %v708_v7 = vld [vmem:[#allocation6 + $0x11c0] sm:$0xff]  ;;  %v8559_v12 = vcombine.high %v324_v5, %v328_v6  ;;  %6460 = vmatprep.subr.bf16.mxu0 %v8935_v8  ;;  %6338 = vmatpush1.bf16.msra.mxu1 %v8550_v10  ;;  %v8558_v19 = vcombine.low %v324_v5, %v328_v6 }
  0xbb   :  { %v712_v9 = vld [vmem:[#allocation6 + $0x11e0] sm:$0xff]  ;;  %6461 = vmatpush1.bf16.msra.mxu0 %v8934_v11 }
  0xbc   :  { %v332_v13 = vld [vmem:[#allocation6 + $0x600] sm:$0xff]  ;;  %v8943_v17 = vcombine.high %v708_v7, %v712_v9  ;;  %6339 = vmatprep.subr.bf16.mxu1 %v8559_v12  ;;  %v8942_v20 = vcombine.low %v708_v7, %v712_v9 }
  0xbd   :  { %v336_v14 = vld [vmem:[#allocation6 + $0x620] sm:$0xff] }
  0xbe   :  { %v716_v15 = vld [vmem:[#allocation6 + $0x1200] sm:$0xff]  ;;  %v8567_v22 = vcombine.high %v332_v13, %v336_v14  ;;  %6462 = vmatprep.subr.bf16.mxu0 %v8943_v17  ;;  %6340 = vmatpush1.bf16.msra.mxu1 %v8558_v19  ;;  %v8566_v29 = vcombine.low %v332_v13, %v336_v14 }
  0xbf   :  { %v720_v18 = vld [vmem:[#allocation6 + $0x1220] sm:$0xff]  ;;  %6463 = vmatpush1.bf16.msra.mxu0 %v8942_v20 }
  0xc0   :  { %v340_v23 = vld [vmem:[#allocation6 + $0x640] sm:$0xff]  ;;  %v8951_v26 = vcombine.high %v716_v15, %v720_v18  ;;  %6341 = vmatprep.subr.bf16.mxu1 %v8567_v22  ;;  %v8950_v30 = vcombine.low %v716_v15, %v720_v18 }
  0xc1   :  { %v344_v24 = vld [vmem:[#allocation6 + $0x660] sm:$0xff] }
  0xc2   :  { %v724_v25 = vld [vmem:[#allocation6 + $0x1240] sm:$0xff]  ;;  %v8575_v32 = vcombine.high %v340_v23, %v344_v24  ;;  %6464 = vmatprep.subr.bf16.mxu0 %v8951_v26  ;;  %6342 = vmatpush1.bf16.msra.mxu1 %v8566_v29  ;;  %v8574_v38 = vcombine.low %v340_v23, %v344_v24 }
  0xc3   :  { %v728_v27 = vld [vmem:[#allocation6 + $0x1260] sm:$0xff]  ;;  %6465 = vmatpush1.bf16.msra.mxu0 %v8950_v30 }
  0xc4   :  { %v348_v33 = vld [vmem:[#allocation6 + $0x680] sm:$0xff]  ;;  %v8959_v36 = vcombine.high %v724_v25, %v728_v27  ;;  %6343 = vmatprep.subr.bf16.mxu1 %v8575_v32  ;;  %v8958_v39 = vcombine.low %v724_v25, %v728_v27  ;;  %v102_v25 = vld [vmem:[#allocation3 + $0x10] sm:$0xff] }
  0xc5   :  { %v352_v34 = vld [vmem:[#allocation6 + $0x6a0] sm:$0xff] }
  0xc6   :  { %v732_v35 = vld [vmem:[#allocation6 + $0x1280] sm:$0xff]  ;;  %v8583_v40 = vcombine.high %v348_v33, %v352_v34  ;;  %6466 = vmatprep.subr.bf16.mxu0 %v8959_v36  ;;  %6344 = vmatpush1.bf16.msra.mxu1 %v8574_v38  ;;  %v8582_v46 = vcombine.low %v348_v33, %v352_v34  ;;  %v107_v38 = vld [vmem:[#allocation3 + $0x38] sm:$0xff] }
  0xc7   :  { %v736_v37 = vld [vmem:[#allocation6 + $0x12a0] sm:$0xff]  ;;  %6467 = vmatpush1.bf16.msra.mxu0 %v8958_v39  ;;  %v10251_v39 = vpack.c.bf16 %v102_v25, %v102_v25 }
  0xc8   :  { %v356_v41 = vld [vmem:[#allocation6 + $0x6c0] sm:$0xff]  ;;  %v8967_v44 = vcombine.high %v732_v35, %v736_v37  ;;  %6345 = vmatprep.subr.bf16.mxu1 %v8583_v40  ;;  %v8966_v47 = vcombine.low %v732_v35, %v736_v37 }
  0xc9   :  { %v360_v42 = vld [vmem:[#allocation6 + $0x6e0] sm:$0xff] }
  0xca   :  { %v740_v43 = vld [vmem:[#allocation6 + $0x12c0] sm:$0xff]  ;;  %v8591_v48 = vcombine.high %v356_v41, %v360_v42  ;;  %6468 = vmatprep.subr.bf16.mxu0 %v8967_v44  ;;  %6346 = vmatpush1.bf16.msra.mxu1 %v8582_v46  ;;  %v8590_v54 = vcombine.low %v356_v41, %v360_v42  ;;  %v113_v42 = vld [vmem:[#allocation3 + $0x68] sm:$0xff] }
  0xcb   :  { %v744_v45 = vld [vmem:[#allocation6 + $0x12e0] sm:$0xff]  ;;  %6469 = vmatpush1.bf16.msra.mxu0 %v8966_v47 }
  0xcc   :  { %v364_v49 = vld [vmem:[#allocation6 + $0x700] sm:$0xff]  ;;  %v8975_v52 = vcombine.high %v740_v43, %v744_v45  ;;  %6347 = vmatprep.subr.bf16.mxu1 %v8591_v48  ;;  %v8974_v55 = vcombine.low %v740_v43, %v744_v45 }
  0xcd   :  { %v368_v50 = vld [vmem:[#allocation6 + $0x720] sm:$0xff] }
  0xce   :  { %v748_v51 = vld [vmem:[#allocation6 + $0x1300] sm:$0xff]  ;;  %v8599_v56 = vcombine.high %v364_v49, %v368_v50  ;;  %6470 = vmatprep.subr.bf16.mxu0 %v8975_v52  ;;  %6348 = vmatpush1.bf16.msra.mxu1 %v8590_v54  ;;  %v8598_v0 = vcombine.low %v364_v49, %v368_v50  ;;  %v10255_v50 = vpack.c.bf16 %v107_v38, %v107_v38 }
  0xcf   :  { %v752_v53 = vld [vmem:[#allocation6 + $0x1320] sm:$0xff]  ;;  %6471 = vmatpush1.bf16.msra.mxu0 %v8974_v55 }
  0xd0   :  { %v372_v58 = vld [vmem:[#allocation6 + $0x740] sm:$0xff]  ;;  %v8983_v62 = vcombine.high %v748_v51, %v752_v53  ;;  %6349 = vmatprep.subr.bf16.mxu1 %v8599_v56  ;;  %v8982_v1 = vcombine.low %v748_v51, %v752_v53  ;;  %v10258_v51 = vpack.c.bf16 %v113_v42, %v113_v42 }
  0xd1   :  { %v376_v59 = vld [vmem:[#allocation6 + $0x760] sm:$0xff] }
  0xd2   :  { %v756_v60 = vld [vmem:[#allocation6 + $0x1340] sm:$0xff]  ;;  %v8607_v2 = vcombine.high %v372_v58, %v376_v59  ;;  %6472 = vmatprep.subr.bf16.mxu0 %v8983_v62  ;;  %6350 = vmatpush1.bf16.msra.mxu1 %v8598_v0  ;;  %v8606_v8 = vcombine.low %v372_v58, %v376_v59 }
  0xd3   :  { %v760_v63 = vld [vmem:[#allocation6 + $0x1360] sm:$0xff]  ;;  %6473 = vmatpush1.bf16.msra.mxu0 %v8982_v1 }
  0xd4   :  { %v380_v3 = vld [vmem:[#allocation6 + $0x780] sm:$0xff]  ;;  %v8991_v6 = vcombine.high %v756_v60, %v760_v63  ;;  %6351 = vmatprep.subr.bf16.mxu1 %v8607_v2  ;;  %v8990_v9 = vcombine.low %v756_v60, %v760_v63 }
  0xd5   :  { %v384_v4 = vld [vmem:[#allocation6 + $0x7a0] sm:$0xff] }
  0xd6   :  { %v764_v5 = vld [vmem:[#allocation6 + $0x1380] sm:$0xff]  ;;  %v8615_v10 = vcombine.high %v380_v3, %v384_v4  ;;  %6474 = vmatprep.subr.bf16.mxu0 %v8991_v6  ;;  %6352 = vmatpush1.bf16.msra.mxu1 %v8606_v8  ;;  %v8614_v17 = vcombine.low %v380_v3, %v384_v4 }
  0xd7   :  { %v768_v7 = vld [vmem:[#allocation6 + $0x13a0] sm:$0xff]  ;;  %6475 = vmatpush1.bf16.msra.mxu0 %v8990_v9 }
  0xd8   :  { %v388_v11 = vld [vmem:[#allocation6 + $0x7c0] sm:$0xff]  ;;  %v8999_v14 = vcombine.high %v764_v5, %v768_v7  ;;  %6353 = vmatprep.subr.bf16.mxu1 %v8615_v10  ;;  %v8998_v18 = vcombine.low %v764_v5, %v768_v7 }
  0xd9   :  { %v392_v12 = vld [vmem:[#allocation6 + $0x7e0] sm:$0xff] }
  0xda   :  { %v772_v13 = vld [vmem:[#allocation6 + $0x13c0] sm:$0xff]  ;;  %v8623_v19 = vcombine.high %v388_v11, %v392_v12  ;;  %6476 = vmatprep.subr.bf16.mxu0 %v8999_v14  ;;  %6354 = vmatpush1.bf16.msra.mxu1 %v8614_v17  ;;  %v8622_v29 = vcombine.low %v388_v11, %v392_v12 }
  0xdb   :  { %v776_v15 = vld [vmem:[#allocation6 + $0x13e0] sm:$0xff]  ;;  %6477 = vmatpush1.bf16.msra.mxu0 %v8998_v18 }
  0xdc   :  { %v524_v20 = vld [vmem:[#allocation6 + $0xc00] sm:$0xff]  ;;  %v9007_v24 = vcombine.high %v772_v13, %v776_v15  ;;  %6355 = vmatprep.subr.bf16.mxu1 %v8623_v19  ;;  %v9006_v32 = vcombine.low %v772_v13, %v776_v15 }
  0xdd   :  { %v528_v22 = vld [vmem:[#allocation6 + $0xc20] sm:$0xff] }
  0xde   :  { %v908_v23 = vld [vmem:[#allocation6 + $0x1800] sm:$0xff]  ;;  %v8759_v33 = vcombine.high %v524_v20, %v528_v22  ;;  %6478 = vmatprep.subr.bf16.mxu0 %v9007_v24  ;;  %6356 = vmatpush1.bf16.msra.mxu1 %v8622_v29  ;;  %v8758_v40 = vcombine.low %v524_v20, %v528_v22 }
  0xdf   :  { %v912_v26 = vld [vmem:[#allocation6 + $0x1820] sm:$0xff]  ;;  %6479 = vmatpush1.bf16.msra.mxu0 %v9006_v32 }
  0xe0   :  { %v108_v27 = vld [vmem:[#allocation3 + $0x40] sm:$0xff]  ;;  %v9143_v37 = vcombine.high %v908_v23, %v912_v26  ;;  %6407 = vmatprep.subr.bf16.mxu1 %v8759_v33  ;;  %v9142_v43 = vcombine.low %v908_v23, %v912_v26 }
  0xe1   :  { %v532_v30 = vld [vmem:[#allocation6 + $0xc40] sm:$0xff]  ;;  %v10253_v41 = vpack.c.bf16 %v108_v27, %v108_v27  ;;  %6358 = vmatmul.mubr.bf16.vlgmr.msra.gmra.mrb[4].mxu1 %v10251_v39 }
  0xe2   :  { %v536_v34 = vld [vmem:[#allocation6 + $0xc60] sm:$0xff]  ;;  %6530 = vmatprep.subr.bf16.mxu0 %v9143_v37  ;;  %6408 = vmatpush1.bf16.msra.mxu1 %v8758_v40 }
  0xe3   :  { %v916_v35 = vld [vmem:[#allocation6 + $0x1840] sm:$0xff]  ;;  %v8767_v44 = vcombine.high %v532_v30, %v536_v34  ;;  %6481 = vmatmul.mubr.bf16.vlgmr.msra.gmra.mrb[4].mxu0 %v10253_v41  ;;  %v8766_v52 = vcombine.low %v532_v30, %v536_v34  ;;  %6439 = vmatprep.mubr.bf16.mxu1 %v10255_v50 }
  0xe4   :  { %v920_v36 = vld [vmem:[#allocation6 + $0x1860] sm:$0xff]  ;;  %6531 = vmatpush1.bf16.msra.mxu0 %v9142_v43  ;;  %6562 = vmatprep.mubr.bf16.mxu0 %v10258_v51 }
  0xe5   :  { %v540_v45 = vld [vmem:[#allocation6 + $0xc80] sm:$0xff]  ;;  %v9151_v47 = vcombine.high %v916_v35, %v920_v36  ;;  %6409 = vmatprep.subr.bf16.mxu1 %v8767_v44  ;;  %v9150_v53 = vcombine.low %v916_v35, %v920_v36 }
  0xe6   :  { %v544_v46 = vld [vmem:[#allocation6 + $0xca0] sm:$0xff]  ;;  %6410 = vmatpush1.bf16.msra.mxu1 %v8766_v52 }
  0xe7   :  { %v924_v48 = vld [vmem:[#allocation6 + $0x1880] sm:$0xff]  ;;  %v8775_v54 = vcombine.high %v540_v45, %v544_v46  ;;  %6532 = vmatprep.subr.bf16.mxu0 %v9151_v47  ;;  %v8774_v62 = vcombine.low %v540_v45, %v544_v46 }
  0xe8   :  { %v928_v49 = vld [vmem:[#allocation6 + $0x18a0] sm:$0xff]  ;;  %6533 = vmatpush1.bf16.msra.mxu0 %v9150_v53 }
  0xe9   :  { %v548_v55 = vld [vmem:[#allocation6 + $0xcc0] sm:$0xff]  ;;  %v9159_v56 = vcombine.high %v924_v48, %v928_v49  ;;  %6411 = vmatprep.subr.bf16.mxu1 %v8775_v54  ;;  %v9158_v63 = vcombine.low %v924_v48, %v928_v49 }
  0xea   :  { %v552_v58 = vld [vmem:[#allocation6 + $0xce0] sm:$0xff]  ;;  %6412 = vmatpush1.bf16.msra.mxu1 %v8774_v62 }
  0xeb   :  { %v932_v59 = vld [vmem:[#allocation6 + $0x18c0] sm:$0xff]  ;;  %v8783_v0 = vcombine.high %v548_v55, %v552_v58  ;;  %6534 = vmatprep.subr.bf16.mxu0 %v9159_v56  ;;  %v8782_v6 = vcombine.low %v548_v55, %v552_v58 }
  0xec   :  { %v936_v60 = vld [vmem:[#allocation6 + $0x18e0] sm:$0xff]  ;;  %6535 = vmatpush1.bf16.msra.mxu0 %v9158_v63 }
  0xed   :  { %v9167_v1 = vcombine.high %v932_v59, %v936_v60  ;;  %v556_v2 = vld [vmem:[#allocation6 + $0xd00] sm:$0xff]  ;;  %6413 = vmatprep.subr.bf16.mxu1 %v8783_v0  ;;  %v9166_v7 = vcombine.low %v932_v59, %v936_v60 }
  0xee   :  { %v560_v3 = vld [vmem:[#allocation6 + $0xd20] sm:$0xff]  ;;  %6414 = vmatpush1.bf16.msra.mxu1 %v8782_v6 }
  0xef   :  { %v940_v4 = vld [vmem:[#allocation6 + $0x1900] sm:$0xff]  ;;  %v8791_v8 = vcombine.high %v556_v2, %v560_v3  ;;  %6536 = vmatprep.subr.bf16.mxu0 %v9167_v1  ;;  %v8790_v14 = vcombine.low %v556_v2, %v560_v3 }
  0xf0   :  { %v944_v5 = vld [vmem:[#allocation6 + $0x1920] sm:$0xff]  ;;  %6537 = vmatpush1.bf16.msra.mxu0 %v9166_v7 }
  0xf1   :  { %v9175_v9 = vcombine.high %v940_v4, %v944_v5  ;;  %v564_v10 = vld [vmem:[#allocation6 + $0xd40] sm:$0xff]  ;;  %6415 = vmatprep.subr.bf16.mxu1 %v8791_v8  ;;  %v9174_v15 = vcombine.low %v940_v4, %v944_v5 }
  0xf2   :  { %v568_v11 = vld [vmem:[#allocation6 + $0xd60] sm:$0xff]  ;;  %6416 = vmatpush1.bf16.msra.mxu1 %v8790_v14 }
  0xf3   :  { %v948_v12 = vld [vmem:[#allocation6 + $0x1940] sm:$0xff]  ;;  %v8799_v17 = vcombine.high %v564_v10, %v568_v11  ;;  %6538 = vmatprep.subr.bf16.mxu0 %v9175_v9  ;;  %v8798_v24 = vcombine.low %v564_v10, %v568_v11 }
  0xf4   :  { %v952_v13 = vld [vmem:[#allocation6 + $0x1960] sm:$0xff]  ;;  %6539 = vmatpush1.bf16.msra.mxu0 %v9174_v15 }
  0xf5   :  { %v9183_v18 = vcombine.high %v948_v12, %v952_v13  ;;  %v572_v19 = vld [vmem:[#allocation6 + $0xd80] sm:$0xff]  ;;  %6417 = vmatprep.subr.bf16.mxu1 %v8799_v17  ;;  %v9182_v25 = vcombine.low %v948_v12, %v952_v13 }
  0xf6   :  { %v576_v20 = vld [vmem:[#allocation6 + $0xda0] sm:$0xff]  ;;  %6418 = vmatpush1.bf16.msra.mxu1 %v8798_v24 }
  0xf7   :  { %v956_v22 = vld [vmem:[#allocation6 + $0x1980] sm:$0xff]  ;;  %v8807_v26 = vcombine.high %v572_v19, %v576_v20  ;;  %6540 = vmatprep.subr.bf16.mxu0 %v9183_v18  ;;  %v8806_v34 = vcombine.low %v572_v19, %v576_v20 }
  0xf8   :  { %v960_v23 = vld [vmem:[#allocation6 + $0x19a0] sm:$0xff]  ;;  %6541 = vmatpush1.bf16.msra.mxu0 %v9182_v25 }
  0xf9   :  { %v9191_v27 = vcombine.high %v956_v22, %v960_v23  ;;  %v580_v29 = vld [vmem:[#allocation6 + $0xdc0] sm:$0xff]  ;;  %6419 = vmatprep.subr.bf16.mxu1 %v8807_v26  ;;  %v9190_v35 = vcombine.low %v956_v22, %v960_v23 }
  0xfa   :  { %v584_v30 = vld [vmem:[#allocation6 + $0xde0] sm:$0xff]  ;;  %6420 = vmatpush1.bf16.msra.mxu1 %v8806_v34 }
  0xfb   :  { %v964_v32 = vld [vmem:[#allocation6 + $0x19c0] sm:$0xff]  ;;  %v8815_v36 = vcombine.high %v580_v29, %v584_v30  ;;  %6542 = vmatprep.subr.bf16.mxu0 %v9191_v27  ;;  %v8814_v44 = vcombine.low %v580_v29, %v584_v30 }
  0xfc   :  { %v968_v33 = vld [vmem:[#allocation6 + $0x19e0] sm:$0xff]  ;;  %6543 = vmatpush1.bf16.msra.mxu0 %v9190_v35 }
  0xfd   :  { %v9199_v37 = vcombine.high %v964_v32, %v968_v33  ;;  %v588_v38 = vld [vmem:[#allocation6 + $0xe00] sm:$0xff]  ;;  %6421 = vmatprep.subr.bf16.mxu1 %v8815_v36  ;;  %v9198_v45 = vcombine.low %v964_v32, %v968_v33 }
  0xfe   :  { %v592_v40 = vld [vmem:[#allocation6 + $0xe20] sm:$0xff]  ;;  %6422 = vmatpush1.bf16.msra.mxu1 %v8814_v44 }
  0xff   :  { %v972_v42 = vld [vmem:[#allocation6 + $0x1a00] sm:$0xff]  ;;  %v8823_v46 = vcombine.high %v588_v38, %v592_v40  ;;  %6544 = vmatprep.subr.bf16.mxu0 %v9199_v37  ;;  %v8822_v54 = vcombine.low %v588_v38, %v592_v40 }
 0x100   :  { %v976_v43 = vld [vmem:[#allocation6 + $0x1a20] sm:$0xff]  ;;  %6545 = vmatpush1.bf16.msra.mxu0 %v9198_v45 }
 0x101   :  { %v9207_v47 = vcombine.high %v972_v42, %v976_v43  ;;  %v596_v48 = vld [vmem:[#allocation6 + $0xe40] sm:$0xff]  ;;  %6423 = vmatprep.subr.bf16.mxu1 %v8823_v46  ;;  %v9206_v55 = vcombine.low %v972_v42, %v976_v43 }
 0x102   :  { %v600_v49 = vld [vmem:[#allocation6 + $0xe60] sm:$0xff]  ;;  %6424 = vmatpush1.bf16.msra.mxu1 %v8822_v54  ;;  %v141_v54 = vld [vmem:[#allocation6 + $0x8] sm:$0xff] }
 0x103   :  { %v980_v52 = vld [vmem:[#allocation6 + $0x1a40] sm:$0xff]  ;;  %v8831_v56 = vcombine.high %v596_v48, %v600_v49  ;;  %6546 = vmatprep.subr.bf16.mxu0 %v9207_v47  ;;  %v8830_v0 = vcombine.low %v596_v48, %v600_v49 }
 0x104   :  { %v984_v53 = vld [vmem:[#allocation6 + $0x1a60] sm:$0xff]  ;;  %6547 = vmatpush1.bf16.msra.mxu0 %v9206_v55  ;;  %v145_v55 = vld [vmem:[#allocation6 + $0x28] sm:$0xff] }
 0x105   :  { %v9215_v58 = vcombine.high %v980_v52, %v984_v53  ;;  %v604_v59 = vld [vmem:[#allocation6 + $0xe80] sm:$0xff]  ;;  %6425 = vmatprep.subr.bf16.mxu1 %v8831_v56  ;;  %v9214_v1 = vcombine.low %v980_v52, %v984_v53 }
 0x106   :  { %v608_v60 = vld [vmem:[#allocation6 + $0xea0] sm:$0xff]  ;;  %6426 = vmatpush1.bf16.msra.mxu1 %v8830_v0 }
 0x107   :  { %v988_v62 = vld [vmem:[#allocation6 + $0x1a80] sm:$0xff]  ;;  %v8839_v2 = vcombine.high %v604_v59, %v608_v60  ;;  %6548 = vmatprep.subr.bf16.mxu0 %v9215_v58  ;;  %v8838_v8 = vcombine.low %v604_v59, %v608_v60  ;;  %v106_v58 = vld [vmem:[#allocation3 + $0x30] sm:$0xff] }
 0x108   :  { %v992_v63 = vld [vmem:[#allocation6 + $0x1aa0] sm:$0xff]  ;;  %6549 = vmatpush1.bf16.msra.mxu0 %v9214_v1 }
 0x109   :  { %v9223_v3 = vcombine.high %v988_v62, %v992_v63  ;;  %v612_v4 = vld [vmem:[#allocation6 + $0xec0] sm:$0xff]  ;;  %6427 = vmatprep.subr.bf16.mxu1 %v8839_v2  ;;  %v9222_v9 = vcombine.low %v988_v62, %v992_v63  ;;  %v8377_v63 = vcombine.high %v141_v54, %v145_v55  ;;  %v10263_v2 = vpack.c.bf16 %v106_v58, %v106_v58 }
 0x10a   :  { %v616_v5 = vld [vmem:[#allocation6 + $0xee0] sm:$0xff]  ;;  %6428 = vmatpush1.bf16.msra.mxu1 %v8838_v8  ;;  %v8376_v8 = vcombine.low %v141_v54, %v145_v55  ;;  %v189_v54 = vld [vmem:[#allocation6 + $0x188] sm:$0xff] }
 0x10b   :  { %v996_v6 = vld [vmem:[#allocation6 + $0x1ac0] sm:$0xff]  ;;  %v8847_v10 = vcombine.high %v612_v4, %v616_v5  ;;  %6550 = vmatprep.subr.bf16.mxu0 %v9223_v3  ;;  %v8846_v17 = vcombine.low %v612_v4, %v616_v5  ;;  %v149_v3 = vld [vmem:[#allocation6 + $0x48] sm:$0xff]  ;;  %v111_v5 = vld [vmem:[#allocation3 + $0x58] sm:$0xff] }
 0x10c   :  { %v1000_v7 = vld [vmem:[#allocation6 + $0x1ae0] sm:$0xff]  ;;  %6551 = vmatpush1.bf16.msra.mxu0 %v9222_v9  ;;  %v153_v4 = vld [vmem:[#allocation6 + $0x68] sm:$0xff] }
 0x10d   :  { %v9231_v11 = vcombine.high %v996_v6, %v1000_v7  ;;  %v620_v12 = vld [vmem:[#allocation6 + $0xf00] sm:$0xff]  ;;  %6429 = vmatprep.subr.bf16.mxu1 %v8847_v10  ;;  %v9230_v18 = vcombine.low %v996_v6, %v1000_v7  ;;  %v8385_v10 = vcombine.high %v149_v3, %v153_v4  ;;  %v193_v55 = vld [vmem:[#allocation6 + $0x1a8] sm:$0xff] }
 0x10e   :  { %v624_v13 = vld [vmem:[#allocation6 + $0xf20] sm:$0xff]  ;;  %6430 = vmatpush1.bf16.msra.mxu1 %v8846_v17 }
 0x10f   :  { %v1004_v14 = vld [vmem:[#allocation6 + $0x1b00] sm:$0xff]  ;;  %v8855_v19 = vcombine.high %v620_v12, %v624_v13  ;;  %6552 = vmatprep.subr.bf16.mxu0 %v9231_v11  ;;  %v8854_v26 = vcombine.low %v620_v12, %v624_v13  ;;  %v10267_v13 = vpack.c.bf16 %v111_v5, %v111_v5 }
 0x110   :  { %v1008_v15 = vld [vmem:[#allocation6 + $0x1b20] sm:$0xff]  ;;  %6553 = vmatpush1.bf16.msra.mxu0 %v9230_v18  ;;  %v8384_v18 = vcombine.low %v149_v3, %v153_v4  ;;  %v8424_v4 = vcombine.low %v189_v54, %v193_v55 }
 0x111   :  { %v9239_v20 = vcombine.high %v1004_v14, %v1008_v15  ;;  %v628_v22 = vld [vmem:[#allocation6 + $0xf40] sm:$0xff]  ;;  %6431 = vmatprep.subr.bf16.mxu1 %v8855_v19  ;;  %v9238_v27 = vcombine.low %v1004_v14, %v1008_v15  ;;  %v157_v14 = vld [vmem:[#allocation6 + $0x88] sm:$0xff] }
 0x112   :  { %v632_v23 = vld [vmem:[#allocation6 + $0xf60] sm:$0xff]  ;;  %6432 = vmatpush1.bf16.msra.mxu1 %v8854_v26  ;;  %v161_v15 = vld [vmem:[#allocation6 + $0xa8] sm:$0xff] }
 0x113   :  { %v1012_v24 = vld [vmem:[#allocation6 + $0x1b40] sm:$0xff]  ;;  %v8863_v29 = vcombine.high %v628_v22, %v632_v23  ;;  %6554 = vmatprep.subr.bf16.mxu0 %v9239_v20  ;;  %v8862_v36 = vcombine.low %v628_v22, %v632_v23  ;;  %v8393_v20 = vcombine.high %v157_v14, %v161_v15 }
 0x114   :  { %v1016_v25 = vld [vmem:[#allocation6 + $0x1b60] sm:$0xff]  ;;  %6555 = vmatpush1.bf16.msra.mxu0 %v9238_v27  ;;  %v8392_v27 = vcombine.low %v157_v14, %v161_v15 }
 0x115   :  { %v9247_v30 = vcombine.high %v1012_v24, %v1016_v25  ;;  %v636_v32 = vld [vmem:[#allocation6 + $0xf80] sm:$0xff]  ;;  %6433 = vmatprep.subr.bf16.mxu1 %v8863_v29  ;;  %v9246_v37 = vcombine.low %v1012_v24, %v1016_v25  ;;  %v165_v24 = vld [vmem:[#allocation6 + $0xc8] sm:$0xff] }
 0x116   :  { %v640_v33 = vld [vmem:[#allocation6 + $0xfa0] sm:$0xff]  ;;  %6434 = vmatpush1.bf16.msra.mxu1 %v8862_v36  ;;  %v169_v25 = vld [vmem:[#allocation6 + $0xe8] sm:$0xff] }
 0x117   :  { %v1020_v34 = vld [vmem:[#allocation6 + $0x1b80] sm:$0xff]  ;;  %v8871_v38 = vcombine.high %v636_v32, %v640_v33  ;;  %6556 = vmatprep.subr.bf16.mxu0 %v9247_v30  ;;  %v8870_v46 = vcombine.low %v636_v32, %v640_v33  ;;  %v8401_v30 = vcombine.high %v165_v24, %v169_v25 }
 0x118   :  { %v1024_v35 = vld [vmem:[#allocation6 + $0x1ba0] sm:$0xff]  ;;  %6557 = vmatpush1.bf16.msra.mxu0 %v9246_v37  ;;  %v8400_v37 = vcombine.low %v165_v24, %v169_v25 }
 0x119   :  { %v9255_v40 = vcombine.high %v1020_v34, %v1024_v35  ;;  %v644_v42 = vld [vmem:[#allocation6 + $0xfc0] sm:$0xff]  ;;  %6435 = vmatprep.subr.bf16.mxu1 %v8871_v38  ;;  %v9254_v47 = vcombine.low %v1020_v34, %v1024_v35  ;;  %v173_v34 = vld [vmem:[#allocation6 + $0x108] sm:$0xff] }
 0x11a   :  { %v648_v43 = vld [vmem:[#allocation6 + $0xfe0] sm:$0xff]  ;;  %6436 = vmatpush1.bf16.msra.mxu1 %v8870_v46  ;;  %v177_v35 = vld [vmem:[#allocation6 + $0x128] sm:$0xff] }
 0x11b   :  { %v1028_v44 = vld [vmem:[#allocation6 + $0x1bc0] sm:$0xff]  ;;  %v8879_v48 = vcombine.high %v644_v42, %v648_v43  ;;  %6558 = vmatprep.subr.bf16.mxu0 %v9255_v40  ;;  %v8878_v56 = vcombine.low %v644_v42, %v648_v43  ;;  %v8409_v40 = vcombine.high %v173_v34, %v177_v35 }
 0x11c   :  { %v1032_v45 = vld [vmem:[#allocation6 + $0x1be0] sm:$0xff]  ;;  %6559 = vmatpush1.bf16.msra.mxu0 %v9254_v47  ;;  %v8408_v47 = vcombine.low %v173_v34, %v177_v35 }
 0x11d   :  { %v9263_v49 = vcombine.high %v1028_v44, %v1032_v45  ;;  %v780_v52 = vld [vmem:[#allocation6 + $0x1400] sm:$0xff]  ;;  %6437 = vmatprep.subr.bf16.mxu1 %v8879_v48  ;;  %v9262_v59 = vcombine.low %v1028_v44, %v1032_v45  ;;  %v181_v44 = vld [vmem:[#allocation6 + $0x148] sm:$0xff] }
 0x11e   :  { %v784_v53 = vld [vmem:[#allocation6 + $0x1420] sm:$0xff]  ;;  %6438 = vmatpush1.bf16.msra.mxu1 %v8878_v56  ;;  %v185_v45 = vld [vmem:[#allocation6 + $0x168] sm:$0xff] }
 0x11f   :  { %v9015_v60 = vcombine.high %v780_v52, %v784_v53  ;;  %v112_v62 = vld [vmem:[#allocation3 + $0x60] sm:$0xff]  ;;  %6560 = vmatprep.subr.bf16.mxu0 %v9263_v49  ;;  %v9014_v6 = vcombine.low %v780_v52, %v784_v53  ;;  %v8417_v49 = vcombine.high %v181_v44, %v185_v45  ;;  %v8416_v58 = vcombine.low %v181_v44, %v185_v45 }
 0x120   :  { %v788_v0 = vld [vmem:[#allocation6 + $0x1440] sm:$0xff]  ;;  %v10265_v7 = vpack.c.bf16 %v112_v62, %v112_v62  ;;  %6561 = vmatpush1.bf16.msra.mxu0 %v9262_v59 }
 0x121   :  { %v792_v1 = vld [vmem:[#allocation6 + $0x1460] sm:$0xff]  ;;  %6489 = vmatprep.subr.bf16.mxu1 %v9015_v60  ;;  %6612 = vmatprep.subr.bf16.mxu0 %v8377_v63  ;;  %v8425_v60 = vcombine.high %v189_v54, %v193_v55 }
 0x122   :  { %v9023_v9 = vcombine.high %v788_v0, %v792_v1  ;;  %v796_v11 = vld [vmem:[#allocation6 + $0x1480] sm:$0xff]  ;;  %6440 = vmatmul.mubr.bf16.vlgmr.msra.gmra.mrb[8].mxu1 %v10263_v2  ;;  %v9022_v17 = vcombine.low %v788_v0, %v792_v1  ;;  %v197_v0 = vld [vmem:[#allocation6 + $0x1c8] sm:$0xff] }
 0x123   :  { %v800_v12 = vld [vmem:[#allocation6 + $0x14a0] sm:$0xff]  ;;  %6490 = vmatpush1.bf16.msra.mxu1 %v9014_v6  ;;  %6563 = vmatmul.mubr.bf16.vlgmr.msra.gmra.mrb[8].mxu0 %v10265_v7  ;;  %v201_v1 = vld [vmem:[#allocation6 + $0x1e8] sm:$0xff] }
 0x124   :  { %6613 = vmatpush1.bf16.msra.mxu0 %v8376_v8  ;;  %6491 = vmatprep.subr.bf16.mxu1 %v9023_v9  ;;  %v9031_v19 = vcombine.high %v796_v11, %v800_v12  ;;  %v804_v22 = vld [vmem:[#allocation6 + $0x14c0] sm:$0xff]  ;;  %v9030_v26 = vcombine.low %v796_v11, %v800_v12  ;;  %v8433_v6 = vcombine.high %v197_v0, %v201_v1  ;;  %v209_v11 = vld [vmem:[#allocation6 + $0x228] sm:$0xff] }
 0x125   :  { %6614 = vmatprep.subr.bf16.mxu0 %v8385_v10  ;;  %v808_v23 = vld [vmem:[#allocation6 + $0x14e0] sm:$0xff]  ;;  %6521 = vmatprep.mubr.bf16.mxu1 %v10267_v13  ;;  %v205_v10 = vld [vmem:[#allocation6 + $0x208] sm:$0xff]  ;;  %v8432_v14 = vcombine.low %v197_v0, %v201_v1 }
 0x126   :  { %6644 = vmatprep.mubr.bf16.mxu0 %v10233_v57  ;;  %v9039_v29 = vcombine.high %v804_v22, %v808_v23  ;;  %v812_v32 = vld [vmem:[#allocation6 + $0x1500] sm:$0xff]  ;;  %v9038_v36 = vcombine.low %v804_v22, %v808_v23  ;;  %v217_v22 = vld [vmem:[#allocation6 + $0x268] sm:$0xff]  ;;  %v8440_v24 = vcombine.low %v205_v10, %v209_v11 }
 0x127   :  { %6492 = vmatpush1.bf16.msra.mxu1 %v9022_v17  ;;  %v816_v33 = vld [vmem:[#allocation6 + $0x1520] sm:$0xff]  ;;  %v8441_v17 = vcombine.high %v205_v10, %v209_v11 }
 0x128   :  { %6615 = vmatpush1.bf16.msra.mxu0 %v8384_v18  ;;  %6493 = vmatprep.subr.bf16.mxu1 %v9031_v19  ;;  %v9047_v38 = vcombine.high %v812_v32, %v816_v33  ;;  %v820_v42 = vld [vmem:[#allocation6 + $0x1540] sm:$0xff]  ;;  %v9046_v46 = vcombine.low %v812_v32, %v816_v33  ;;  %v225_v32 = vld [vmem:[#allocation6 + $0x2a8] sm:$0xff] }
 0x129   :  { %6616 = vmatprep.subr.bf16.mxu0 %v8393_v20  ;;  %v824_v43 = vld [vmem:[#allocation6 + $0x1560] sm:$0xff]  ;;  %v213_v20 = vld [vmem:[#allocation6 + $0x248] sm:$0xff] }
 0x12a   :  { %v9055_v48 = vcombine.high %v820_v42, %v824_v43  ;;  %v828_v52 = vld [vmem:[#allocation6 + $0x1580] sm:$0xff]  ;;  %v9054_v56 = vcombine.low %v820_v42, %v824_v43  ;;  %v8448_v34 = vcombine.low %v213_v20, %v217_v22  ;;  %v233_v42 = vld [vmem:[#allocation6 + $0x2e8] sm:$0xff] }
 0x12b   :  { %6494 = vmatpush1.bf16.msra.mxu1 %v9030_v26  ;;  %v832_v53 = vld [vmem:[#allocation6 + $0x15a0] sm:$0xff]  ;;  %v8449_v26 = vcombine.high %v213_v20, %v217_v22 }
 0x12c   :  { %6617 = vmatpush1.bf16.msra.mxu0 %v8392_v27  ;;  %6495 = vmatprep.subr.bf16.mxu1 %v9039_v29  ;;  %v9063_v59 = vcombine.high %v828_v52, %v832_v53  ;;  %v836_v62 = vld [vmem:[#allocation6 + $0x15c0] sm:$0xff]  ;;  %v9062_v3 = vcombine.low %v828_v52, %v832_v53  ;;  %v241_v52 = vld [vmem:[#allocation6 + $0x328] sm:$0xff] }
 0x12d   :  { %6618 = vmatprep.subr.bf16.mxu0 %v8401_v30  ;;  %v840_v63 = vld [vmem:[#allocation6 + $0x15e0] sm:$0xff]  ;;  %v221_v30 = vld [vmem:[#allocation6 + $0x288] sm:$0xff] }
 0x12e   :  { %v9071_v5 = vcombine.high %v836_v62, %v840_v63  ;;  %v844_v8 = vld [vmem:[#allocation6 + $0x1600] sm:$0xff]  ;;  %v9070_v12 = vcombine.low %v836_v62, %v840_v63  ;;  %v8456_v44 = vcombine.low %v221_v30, %v225_v32  ;;  %v249_v62 = vld [vmem:[#allocation6 + $0x368] sm:$0xff] }
 0x12f   :  { %6496 = vmatpush1.bf16.msra.mxu1 %v9038_v36  ;;  %v848_v9 = vld [vmem:[#allocation6 + $0x1620] sm:$0xff]  ;;  %v8457_v36 = vcombine.high %v221_v30, %v225_v32  ;;  %v110_v30 = vld [vmem:[#allocation3 + $0x50] sm:$0xff] }
 0x130   :  { %6619 = vmatpush1.bf16.msra.mxu0 %v8400_v37  ;;  %6497 = vmatprep.subr.bf16.mxu1 %v9047_v38  ;;  %v9079_v15 = vcombine.high %v844_v8, %v848_v9  ;;  %v852_v18 = vld [vmem:[#allocation6 + $0x1640] sm:$0xff]  ;;  %v9078_v23 = vcombine.low %v844_v8, %v848_v9  ;;  %v257_v8 = vld [vmem:[#allocation6 + $0x3a8] sm:$0xff] }
 0x131   :  { %6620 = vmatprep.subr.bf16.mxu0 %v8409_v40  ;;  %v856_v19 = vld [vmem:[#allocation6 + $0x1660] sm:$0xff]  ;;  %v229_v40 = vld [vmem:[#allocation6 + $0x2c8] sm:$0xff] }
 0x132   :  { %v9087_v25 = vcombine.high %v852_v18, %v856_v19  ;;  %v860_v27 = vld [vmem:[#allocation6 + $0x1680] sm:$0xff]  ;;  %v9086_v33 = vcombine.low %v852_v18, %v856_v19  ;;  %v8464_v54 = vcombine.low %v229_v40, %v233_v42  ;;  %v265_v18 = vld [vmem:[#allocation6 + $0x3e8] sm:$0xff] }
 0x133   :  { %6498 = vmatpush1.bf16.msra.mxu1 %v9046_v46  ;;  %v864_v29 = vld [vmem:[#allocation6 + $0x16a0] sm:$0xff]  ;;  %v8465_v46 = vcombine.high %v229_v40, %v233_v42  ;;  %v409_v40 = vld [vmem:[#allocation6 + $0x868] sm:$0xff]  ;;  %v115_v42 = vld [vmem:[#allocation3 + $0x78] sm:$0xff] }
 0x134   :  { %6621 = vmatpush1.bf16.msra.mxu0 %v8408_v47  ;;  %6499 = vmatprep.subr.bf16.mxu1 %v9055_v48  ;;  %v9095_v35 = vcombine.high %v860_v27, %v864_v29  ;;  %v868_v37 = vld [vmem:[#allocation6 + $0x16c0] sm:$0xff]  ;;  %v9094_v43 = vcombine.low %v860_v27, %v864_v29  ;;  %v401_v27 = vld [vmem:[#allocation6 + $0x828] sm:$0xff] }
 0x135   :  { %6622 = vmatprep.subr.bf16.mxu0 %v8417_v49  ;;  %v872_v38 = vld [vmem:[#allocation6 + $0x16e0] sm:$0xff]  ;;  %v237_v49 = vld [vmem:[#allocation6 + $0x308] sm:$0xff] }
 0x136   :  { %v9103_v45 = vcombine.high %v868_v37, %v872_v38  ;;  %v876_v47 = vld [vmem:[#allocation6 + $0x1700] sm:$0xff]  ;;  %v9102_v53 = vcombine.low %v868_v37, %v872_v38  ;;  %v8472_v0 = vcombine.low %v237_v49, %v241_v52  ;;  %v10273_v37 = vpack.c.bf16 %v110_v30, %v110_v30  ;;  %v405_v38 = vld [vmem:[#allocation6 + $0x848] sm:$0xff] }
 0x137   :  { %6500 = vmatpush1.bf16.msra.mxu1 %v9054_v56  ;;  %v880_v48 = vld [vmem:[#allocation6 + $0x1720] sm:$0xff]  ;;  %v8473_v56 = vcombine.high %v237_v49, %v241_v52  ;;  %v10275_v49 = vpack.c.bf16 %v115_v42, %v115_v42  ;;  %v413_v52 = vld [vmem:[#allocation6 + $0x888] sm:$0xff] }
 0x138   :  { %6623 = vmatpush1.bf16.msra.mxu0 %v8416_v58  ;;  %6501 = vmatprep.subr.bf16.mxu1 %v9063_v59  ;;  %v9111_v55 = vcombine.high %v876_v47, %v880_v48  ;;  %v884_v58 = vld [vmem:[#allocation6 + $0x1740] sm:$0xff]  ;;  %v9110_v63 = vcombine.low %v876_v47, %v880_v48  ;;  %v453_v42 = vld [vmem:[#allocation6 + $0x9c8] sm:$0xff] }
 0x139   :  { %6624 = vmatprep.subr.bf16.mxu0 %v8425_v60  ;;  %v888_v59 = vld [vmem:[#allocation6 + $0x1760] sm:$0xff]  ;;  %v245_v60 = vld [vmem:[#allocation6 + $0x348] sm:$0xff] }
 0x13a   :  { %v9119_v1 = vcombine.high %v884_v58, %v888_v59  ;;  %v9118_v9 = vcombine.low %v884_v58, %v888_v59  ;;  %v8480_v10 = vcombine.low %v245_v60, %v249_v62  ;;  %v1052_v47 = vld [vmem:[#allocation6 + $0x1c80] sm:$0xff] }
 0x13b   :  { %6502 = vmatpush1.bf16.msra.mxu1 %v9062_v3  ;;  %v8481_v3 = vcombine.high %v245_v60, %v249_v62  ;;  %v1056_v48 = vld [vmem:[#allocation6 + $0x1ca0] sm:$0xff]  ;;  %v421_v62 = vld [vmem:[#allocation6 + $0x8c8] sm:$0xff] }
 0x13c   :  { %6625 = vmatpush1.bf16.msra.mxu0 %v8424_v4  ;;  %6503 = vmatprep.subr.bf16.mxu1 %v9071_v5  ;;  %v892_v4 = vld [vmem:[#allocation6 + $0x1780] sm:$0xff] }
 0x13d   :  { %6626 = vmatprep.subr.bf16.mxu0 %v8433_v6  ;;  %v896_v5 = vld [vmem:[#allocation6 + $0x17a0] sm:$0xff]  ;;  %v253_v6 = vld [vmem:[#allocation6 + $0x388] sm:$0xff] }
 0x13e   :  { %v9127_v11 = vcombine.high %v892_v4, %v896_v5  ;;  %v9126_v19 = vcombine.low %v892_v4, %v896_v5  ;;  %v8488_v20 = vcombine.low %v253_v6, %v257_v8  ;;  %v1060_v59 = vld [vmem:[#allocation6 + $0x1cc0] sm:$0xff] }
 0x13f   :  { %6504 = vmatpush1.bf16.msra.mxu1 %v9070_v12  ;;  %v8489_v12 = vcombine.high %v253_v6, %v257_v8  ;;  %v1064_v60 = vld [vmem:[#allocation6 + $0x1ce0] sm:$0xff]  ;;  %v429_v8 = vld [vmem:[#allocation6 + $0x908] sm:$0xff] }
 0x140   :  { %6627 = vmatpush1.bf16.msra.mxu0 %v8432_v14  ;;  %6505 = vmatprep.subr.bf16.mxu1 %v9079_v15  ;;  %v900_v14 = vld [vmem:[#allocation6 + $0x17c0] sm:$0xff] }
 0x141   :  { %6628 = vmatprep.subr.bf16.mxu0 %v8441_v17  ;;  %v904_v15 = vld [vmem:[#allocation6 + $0x17e0] sm:$0xff]  ;;  %v261_v17 = vld [vmem:[#allocation6 + $0x3c8] sm:$0xff] }
 0x142   :  { %v9135_v22 = vcombine.high %v900_v14, %v904_v15  ;;  %v9134_v29 = vcombine.low %v900_v14, %v904_v15  ;;  %v8496_v32 = vcombine.low %v261_v17, %v265_v18  ;;  %v1068_v5 = vld [vmem:[#allocation6 + $0x1d00] sm:$0xff] }
 0x143   :  { %6506 = vmatpush1.bf16.msra.mxu1 %v9078_v23  ;;  %v8497_v23 = vcombine.high %v261_v17, %v265_v18  ;;  %v1072_v6 = vld [vmem:[#allocation6 + $0x1d20] sm:$0xff]  ;;  %v437_v18 = vld [vmem:[#allocation6 + $0x948] sm:$0xff] }
 0x144   :  { %6629 = vmatpush1.bf16.msra.mxu0 %v8440_v24  ;;  %6507 = vmatprep.subr.bf16.mxu1 %v9087_v25  ;;  %v1036_v24 = vld [vmem:[#allocation6 + $0x1c00] sm:$0xff] }
 0x145   :  { %6630 = vmatprep.subr.bf16.mxu0 %v8449_v26  ;;  %v1040_v25 = vld [vmem:[#allocation6 + $0x1c20] sm:$0xff]  ;;  %v397_v26 = vld [vmem:[#allocation6 + $0x808] sm:$0xff] }
 0x146   :  { %v1076_v15 = vld [vmem:[#allocation6 + $0x1d40] sm:$0xff] }
 0x147   :  { %6508 = vmatpush1.bf16.msra.mxu1 %v9086_v33  ;;  %v9271_v33 = vcombine.high %v1036_v24, %v1040_v25  ;;  %v1080_v17 = vld [vmem:[#allocation6 + $0x1d60] sm:$0xff] }
 0x148   :  { %6631 = vmatpush1.bf16.msra.mxu0 %v8448_v34  ;;  %6509 = vmatprep.subr.bf16.mxu1 %v9095_v35  ;;  %v8633_v34 = vcombine.high %v397_v26, %v401_v27  ;;  %v1044_v35 = vld [vmem:[#allocation6 + $0x1c40] sm:$0xff]  ;;  %v9310_v30 = vcombine.low %v1076_v15, %v1080_v17 }
 0x149   :  { %6632 = vmatprep.subr.bf16.mxu0 %v8457_v36  ;;  %v1048_v36 = vld [vmem:[#allocation6 + $0x1c60] sm:$0xff] }
 0x14b   :  { %6510 = vmatpush1.bf16.msra.mxu1 %v9094_v43  ;;  %v9270_v43 = vcombine.low %v1036_v24, %v1040_v25  ;;  %v1084_v25 = vld [vmem:[#allocation6 + $0x1d80] sm:$0xff] }
 0x14c   :  { %6633 = vmatpush1.bf16.msra.mxu0 %v8456_v44  ;;  %6511 = vmatprep.subr.bf16.mxu1 %v9103_v45  ;;  %v8632_v44 = vcombine.low %v397_v26, %v401_v27  ;;  %v9279_v45 = vcombine.high %v1044_v35, %v1048_v36  ;;  %v1088_v26 = vld [vmem:[#allocation6 + $0x1da0] sm:$0xff]  ;;  %v445_v27 = vld [vmem:[#allocation6 + $0x988] sm:$0xff] }
 0x14d   :  { %6634 = vmatprep.subr.bf16.mxu0 %v8465_v46  ;;  %v8641_v46 = vcombine.high %v405_v38, %v409_v40 }
 0x14f   :  { %6512 = vmatpush1.bf16.msra.mxu1 %v9102_v53  ;;  %v417_v53 = vld [vmem:[#allocation6 + $0x8a8] sm:$0xff] }
 0x150   :  { %6635 = vmatpush1.bf16.msra.mxu0 %v8464_v54  ;;  %6513 = vmatprep.subr.bf16.mxu1 %v9111_v55  ;;  %v9278_v54 = vcombine.low %v1044_v35, %v1048_v36  ;;  %v8640_v55 = vcombine.low %v405_v38, %v409_v40  ;;  %v8649_v58 = vcombine.high %v413_v52, %v417_v53  ;;  %v1092_v36 = vld [vmem:[#allocation6 + $0x1dc0] sm:$0xff] }
 0x151   :  { %6636 = vmatprep.subr.bf16.mxu0 %v8473_v56  ;;  %v9287_v56 = vcombine.high %v1052_v47, %v1056_v48  ;;  %v1096_v38 = vld [vmem:[#allocation6 + $0x1de0] sm:$0xff] }
 0x153   :  { %6514 = vmatpush1.bf16.msra.mxu1 %v9110_v63  ;;  %v425_v63 = vld [vmem:[#allocation6 + $0x8e8] sm:$0xff] }
 0x154   :  { %6637 = vmatpush1.bf16.msra.mxu0 %v8472_v0  ;;  %6515 = vmatprep.subr.bf16.mxu1 %v9119_v1  ;;  %v9286_v0 = vcombine.low %v1052_v47, %v1056_v48  ;;  %v8648_v1 = vcombine.low %v413_v52, %v417_v53  ;;  %v8657_v4 = vcombine.high %v421_v62, %v425_v63 }
 0x155   :  { %6638 = vmatprep.subr.bf16.mxu0 %v8481_v3  ;;  %v9295_v3 = vcombine.high %v1060_v59, %v1064_v60  ;;  %v9327_v53 = vcombine.high %v1092_v36, %v1096_v38 }
 0x157   :  { %6516 = vmatpush1.bf16.msra.mxu1 %v9118_v9  ;;  %v433_v9 = vld [vmem:[#allocation6 + $0x928] sm:$0xff] }
 0x158   :  { %6639 = vmatpush1.bf16.msra.mxu0 %v8480_v10  ;;  %6517 = vmatprep.subr.bf16.mxu1 %v9127_v11  ;;  %v9294_v10 = vcombine.low %v1060_v59, %v1064_v60  ;;  %v8656_v11 = vcombine.low %v421_v62, %v425_v63  ;;  %v8665_v14 = vcombine.high %v429_v8, %v433_v9  ;;  %v461_v60 = vld [vmem:[#allocation6 + $0xa08] sm:$0xff] }
 0x159   :  { %6640 = vmatprep.subr.bf16.mxu0 %v8489_v12  ;;  %v9303_v12 = vcombine.high %v1068_v5, %v1072_v6  ;;  %v465_v62 = vld [vmem:[#allocation6 + $0xa28] sm:$0xff]  ;;  %v9326_v63 = vcombine.low %v1092_v36, %v1096_v38  ;;  %v1136_v36 = vld [vmem:[#allocation6 + $0x1f20] sm:$0xff] }
 0x15a   :  { %v493_v38 = vld [vmem:[#allocation6 + $0xb08] sm:$0xff] }
 0x15b   :  { %6518 = vmatpush1.bf16.msra.mxu1 %v9126_v19  ;;  %v441_v19 = vld [vmem:[#allocation6 + $0x968] sm:$0xff] }
 0x15c   :  { %6641 = vmatpush1.bf16.msra.mxu0 %v8488_v20  ;;  %6519 = vmatprep.subr.bf16.mxu1 %v9135_v22  ;;  %v9302_v20 = vcombine.low %v1068_v5, %v1072_v6  ;;  %v8664_v22 = vcombine.low %v429_v8, %v433_v9  ;;  %v8673_v24 = vcombine.high %v437_v18, %v441_v19  ;;  %v1112_v5 = vld [vmem:[#allocation6 + $0x1e60] sm:$0xff]  ;;  %v469_v6 = vld [vmem:[#allocation6 + $0xa48] sm:$0xff] }
 0x15d   :  { %6642 = vmatprep.subr.bf16.mxu0 %v8497_v23  ;;  %v9311_v23 = vcombine.high %v1076_v15, %v1080_v17  ;;  %v473_v8 = vld [vmem:[#allocation6 + $0xa68] sm:$0xff]  ;;  %v1120_v15 = vld [vmem:[#allocation6 + $0x1ea0] sm:$0xff] }
 0x15e   :  { %v477_v17 = vld [vmem:[#allocation6 + $0xa88] sm:$0xff] }
 0x15f   :  { %6520 = vmatpush1.bf16.msra.mxu1 %v9134_v29  ;;  %v449_v29 = vld [vmem:[#allocation6 + $0x9a8] sm:$0xff] }
 0x160   :  { %6643 = vmatpush1.bf16.msra.mxu0 %v8496_v32  ;;  %6571 = vmatprep.subr.bf16.mxu1 %v9271_v33  ;;  %v8672_v32 = vcombine.low %v437_v18, %v441_v19  ;;  %v9319_v33 = vcombine.high %v1084_v25, %v1088_v26  ;;  %v8681_v35 = vcombine.high %v445_v27, %v449_v29  ;;  %v481_v18 = vld [vmem:[#allocation6 + $0xaa8] sm:$0xff] }
 0x161   :  { %6694 = vmatprep.subr.bf16.mxu0 %v8633_v34  ;;  %v8680_v52 = vcombine.low %v445_v27, %v449_v29  ;;  %v489_v27 = vld [vmem:[#allocation6 + $0xae8] sm:$0xff] }
 0x162   :  { %6522 = vmatmul.mubr.bf16.vlgmr.msra.gmra.mrb[12].mxu1 %v10273_v37 }
 0x163   :  { %6572 = vmatpush1.bf16.msra.mxu1 %v9270_v43  ;;  %6645 = vmatmul.mubr.bf16.vlgmr.msra.gmra.mrb[12].mxu0 %v10239_v16  ;;  %v457_v43 = vld [vmem:[#allocation6 + $0x9e8] sm:$0xff] }
 0x164   :  { %6695 = vmatpush1.bf16.msra.mxu0 %v8632_v44  ;;  %6573 = vmatprep.subr.bf16.mxu1 %v9279_v45 }
 0x165   :  { %6696 = vmatprep.subr.bf16.mxu0 %v8641_v46  ;;  %6603 = vmatprep.mubr.bf16.mxu1 %v10275_v49  ;;  %v9318_v46 = vcombine.low %v1084_v25, %v1088_v26  ;;  %v1128_v25 = vld [vmem:[#allocation6 + $0x1ee0] sm:$0xff]  ;;  %v485_v26 = vld [vmem:[#allocation6 + $0xac8] sm:$0xff] }
 0x166   :  { %6726 = vmatprep.mubr.bf16.mxu0 %v10235_v61 }
 0x167   :  { %6574 = vmatpush1.bf16.msra.mxu1 %v9278_v54 }
 0x168   :  { %6697 = vmatpush1.bf16.msra.mxu0 %v8640_v55  ;;  %6575 = vmatprep.subr.bf16.mxu1 %v9287_v56  ;;  %v8689_v55 = vcombine.high %v453_v42, %v457_v43  ;;  %v1100_v56 = vld [vmem:[#allocation6 + $0x1e00] sm:$0xff] }
 0x169   :  { %6698 = vmatprep.subr.bf16.mxu0 %v8649_v58  ;;  %v1104_v58 = vld [vmem:[#allocation6 + $0x1e20] sm:$0xff] }
 0x16a   :  { %v9334_v9 = vcombine.low %v1100_v56, %v1104_v58 }
 0x16b   :  { %6576 = vmatpush1.bf16.msra.mxu1 %v9286_v0  ;;  %v8688_v0 = vcombine.low %v453_v42, %v457_v43  ;;  %v497_v42 = vld [vmem:[#allocation6 + $0xb28] sm:$0xff] }
 0x16c   :  { %6699 = vmatpush1.bf16.msra.mxu0 %v8648_v1  ;;  %6577 = vmatprep.subr.bf16.mxu1 %v9295_v3  ;;  %v9335_v1 = vcombine.high %v1100_v56, %v1104_v58  ;;  %v8697_v3 = vcombine.high %v461_v60, %v465_v62  ;;  %v8728_v58 = vcombine.low %v493_v38, %v497_v42 }
 0x16d   :  { %6700 = vmatprep.subr.bf16.mxu0 %v8657_v4  ;;  %v1108_v4 = vld [vmem:[#allocation6 + $0x1e40] sm:$0xff] }
 0x16e   :  { %v9342_v19 = vcombine.low %v1108_v4, %v1112_v5 }
 0x16f   :  { %6578 = vmatpush1.bf16.msra.mxu1 %v9294_v10  ;;  %v8696_v10 = vcombine.low %v461_v60, %v465_v62  ;;  %v1148_v62 = vld [vmem:[#allocation6 + $0x1f80] sm:$0xff] }
 0x170   :  { %6701 = vmatpush1.bf16.msra.mxu0 %v8656_v11  ;;  %6579 = vmatprep.subr.bf16.mxu1 %v9303_v12  ;;  %v9343_v11 = vcombine.high %v1108_v4, %v1112_v5  ;;  %v8705_v12 = vcombine.high %v469_v6, %v473_v8 }
 0x171   :  { %6702 = vmatprep.subr.bf16.mxu0 %v8665_v14  ;;  %v1116_v14 = vld [vmem:[#allocation6 + $0x1e80] sm:$0xff] }
 0x172   :  { %v9350_v29 = vcombine.low %v1116_v14, %v1120_v15 }
 0x173   :  { %6580 = vmatpush1.bf16.msra.mxu1 %v9302_v20  ;;  %v8704_v20 = vcombine.low %v469_v6, %v473_v8  ;;  %v1156_v8 = vld [vmem:[#allocation6 + $0x1fc0] sm:$0xff] }
 0x174   :  { %6703 = vmatpush1.bf16.msra.mxu0 %v8664_v22  ;;  %6581 = vmatprep.subr.bf16.mxu1 %v9311_v23  ;;  %v10281_v34 = vpop.f32.mrb[0].mxu1  ;;  %v9351_v22 = vcombine.high %v1116_v14, %v1120_v15  ;;  %v8713_v23 = vcombine.high %v477_v17, %v481_v18 }
 0x175   :  { %6704 = vmatprep.subr.bf16.mxu0 %v8673_v24  ;;  %v10283_v40 = vpop.f32.mrb[1].mxu1  ;;  %v10285_v44 = vpop.f32.mrb[0].mxu0  ;;  %v1124_v24 = vld [vmem:[#allocation6 + $0x1ec0] sm:$0xff] }
 0x176   :  { %v6322_v45 = vpop.f32.mrb[2].mxu1  ;;  %v10287_v47 = vpop.f32.mrb[1].mxu0  ;;  %v9358_v43 = vcombine.low %v1124_v24, %v1128_v25 }
 0x177   :  { %6582 = vmatpush1.bf16.msra.mxu1 %v9310_v30  ;;  %v6323_v48 = vpop.f32.mrb[3].mxu1  ;;  %v6404_v54 = vpop.f32.mrb[2].mxu0  ;;  %v8712_v30 = vcombine.low %v477_v17, %v481_v18  ;;  %v8720_v45 = vcombine.low %v485_v26, %v489_v27  ;;  %v269_v18 = vld [vmem:[#allocation6 + $0x408] sm:$0xff] }
 0x178   :  { %6705 = vmatpush1.bf16.msra.mxu0 %v8672_v32  ;;  %6583 = vmatprep.subr.bf16.mxu1 %v9319_v33  ;;  %v6405_v59 = vpop.f32.mrb[3].mxu0  ;;  %v9359_v32 = vcombine.high %v1124_v24, %v1128_v25  ;;  %v8721_v33 = vcombine.high %v485_v26, %v489_v27  ;;  %v8729_v48 = vcombine.high %v493_v38, %v497_v42  ;;  %v501_v54 = vld [vmem:[#allocation6 + $0xb48] sm:$0xff]  ;;  %v114_v24 = vld [vmem:[#allocation3 + $0x70] sm:$0xff] }
 0x179   :  { %6706 = vmatprep.subr.bf16.mxu0 %v8681_v35  ;;  %v1132_v35 = vld [vmem:[#allocation6 + $0x1f00] sm:$0xff] }
 0x17a   :  { %v9366_v56 = vcombine.low %v1132_v35, %v1136_v36 }
 0x17b   :  { %6584 = vmatpush1.bf16.msra.mxu1 %v9318_v46  ;;  %v9367_v46 = vcombine.high %v1132_v35, %v1136_v36  ;;  %v665_v35 = vld [vmem:[#allocation6 + $0x1068] sm:$0xff] }
 0x17c   :  { %6707 = vmatpush1.bf16.msra.mxu0 %v8680_v52  ;;  %6585 = vmatprep.subr.bf16.mxu1 %v9327_v53  ;;  %v1140_v52 = vld [vmem:[#allocation6 + $0x1f40] sm:$0xff] }
 0x17d   :  { %6708 = vmatprep.subr.bf16.mxu0 %v8689_v55  ;;  %v1144_v53 = vld [vmem:[#allocation6 + $0x1f60] sm:$0xff]  ;;  %v505_v55 = vld [vmem:[#allocation6 + $0xb68] sm:$0xff] }
 0x17e   :  { %v9375_v59 = vcombine.high %v1140_v52, %v1144_v53  ;;  %v8737_v60 = vcombine.high %v501_v54, %v505_v55  ;;  %v8736_v4 = vcombine.low %v501_v54, %v505_v55 }
 0x17f   :  { %6586 = vmatpush1.bf16.msra.mxu1 %v9326_v63  ;;  %v1152_v63 = vld [vmem:[#allocation6 + $0x1fa0] sm:$0xff] }
 0x180   :  { %6709 = vmatpush1.bf16.msra.mxu0 %v8688_v0  ;;  %6587 = vmatprep.subr.bf16.mxu1 %v9335_v1  ;;  %v509_v0 = vld [vmem:[#allocation6 + $0xb88] sm:$0xff]  ;;  %v9383_v5 = vcombine.high %v1148_v62, %v1152_v63 }
 0x181   :  { %6710 = vmatprep.subr.bf16.mxu0 %v8697_v3  ;;  %v513_v1 = vld [vmem:[#allocation6 + $0xba8] sm:$0xff]  ;;  %v9374_v3 = vcombine.low %v1140_v52, %v1144_v53 }
 0x182   :  { %v8745_v6 = vcombine.high %v509_v0, %v513_v1  ;;  %v8744_v14 = vcombine.low %v509_v0, %v513_v1  ;;  %v673_v52 = vld [vmem:[#allocation6 + $0x10a8] sm:$0xff] }
 0x183   :  { %6588 = vmatpush1.bf16.msra.mxu1 %v9334_v9  ;;  %v1160_v9 = vld [vmem:[#allocation6 + $0x1fe0] sm:$0xff] }
 0x184   :  { %6711 = vmatpush1.bf16.msra.mxu0 %v8696_v10  ;;  %6589 = vmatprep.subr.bf16.mxu1 %v9343_v11  ;;  %v517_v10 = vld [vmem:[#allocation6 + $0xbc8] sm:$0xff]  ;;  %v9391_v15 = vcombine.high %v1156_v8, %v1160_v9 }
 0x185   :  { %6712 = vmatprep.subr.bf16.mxu0 %v8705_v12  ;;  %v521_v11 = vld [vmem:[#allocation6 + $0xbe8] sm:$0xff]  ;;  %v9382_v12 = vcombine.low %v1148_v62, %v1152_v63 }
 0x186   :  { %v8753_v17 = vcombine.high %v517_v10, %v521_v11  ;;  %v8752_v25 = vcombine.low %v517_v10, %v521_v11  ;;  %v681_v62 = vld [vmem:[#allocation6 + $0x10e8] sm:$0xff] }
 0x187   :  { %6590 = vmatpush1.bf16.msra.mxu1 %v9342_v19  ;;  %v273_v19 = vld [vmem:[#allocation6 + $0x428] sm:$0xff] }
 0x188   :  { %6713 = vmatpush1.bf16.msra.mxu0 %v8704_v20  ;;  %6591 = vmatprep.subr.bf16.mxu1 %v9351_v22  ;;  %v653_v20 = vld [vmem:[#allocation6 + $0x1008] sm:$0xff]  ;;  %v8505_v26 = vcombine.high %v269_v18, %v273_v19  ;;  %v8504_v36 = vcombine.low %v269_v18, %v273_v19 }
 0x189   :  { %6714 = vmatprep.subr.bf16.mxu0 %v8713_v23  ;;  %v657_v22 = vld [vmem:[#allocation6 + $0x1028] sm:$0xff]  ;;  %v9390_v23 = vcombine.low %v1156_v8, %v1160_v9 }
 0x18a   :  { %v8889_v27 = vcombine.high %v653_v20, %v657_v22  ;;  %v8888_v38 = vcombine.low %v653_v20, %v657_v22  ;;  %v689_v8 = vld [vmem:[#allocation6 + $0x1128] sm:$0xff] }
 0x18b   :  { %6592 = vmatpush1.bf16.msra.mxu1 %v9350_v29  ;;  %v277_v29 = vld [vmem:[#allocation6 + $0x448] sm:$0xff] }
 0x18c   :  { %6715 = vmatpush1.bf16.msra.mxu0 %v8712_v30  ;;  %6593 = vmatprep.subr.bf16.mxu1 %v9359_v32  ;;  %v281_v30 = vld [vmem:[#allocation6 + $0x468] sm:$0xff]  ;;  %v10289_v32 = vpack.c.bf16 %v114_v24, %v114_v24 }
 0x18d   :  { %6716 = vmatprep.subr.bf16.mxu0 %v8721_v33  ;;  %v661_v33 = vld [vmem:[#allocation6 + $0x1048] sm:$0xff]  ;;  %v8513_v42 = vcombine.high %v277_v29, %v281_v30  ;;  %v8512_v53 = vcombine.low %v277_v29, %v281_v30 }
 0x18e   :  { %v8896_v54 = vcombine.low %v661_v33, %v665_v35  ;;  %v697_v18 = vld [vmem:[#allocation6 + $0x1168] sm:$0xff] }
 0x18f   :  { %6594 = vmatpush1.bf16.msra.mxu1 %v9358_v43  ;;  %v8897_v43 = vcombine.high %v661_v33, %v665_v35  ;;  %v317_v24 = vld [vmem:[#allocation6 + $0x588] sm:$0xff] }
 0x190   :  { %6717 = vmatpush1.bf16.msra.mxu0 %v8720_v45  ;;  %6595 = vmatprep.subr.bf16.mxu1 %v9367_v46  ;;  %v285_v45 = vld [vmem:[#allocation6 + $0x488] sm:$0xff] }
 0x191   :  { %6718 = vmatprep.subr.bf16.mxu0 %v8729_v48  ;;  %v289_v46 = vld [vmem:[#allocation6 + $0x4a8] sm:$0xff] }
 0x192   :  { %v669_v48 = vld [vmem:[#allocation6 + $0x1088] sm:$0xff]  ;;  %v8521_v55 = vcombine.high %v285_v45, %v289_v46  ;;  %v8520_v63 = vcombine.low %v285_v45, %v289_v46 }
 0x193   :  { %6596 = vmatpush1.bf16.msra.mxu1 %v9366_v56  ;;  %v8905_v56 = vcombine.high %v669_v48, %v673_v52  ;;  %v8904_v0 = vcombine.low %v669_v48, %v673_v52  ;;  %v709_v46 = vld [vmem:[#allocation6 + $0x11c8] sm:$0xff] }
 0x194   :  { %6719 = vmatpush1.bf16.msra.mxu0 %v8728_v58  ;;  %6597 = vmatprep.subr.bf16.mxu1 %v9375_v59  ;;  %v293_v58 = vld [vmem:[#allocation6 + $0x4c8] sm:$0xff] }
 0x195   :  { %6720 = vmatprep.subr.bf16.mxu0 %v8737_v60  ;;  %v297_v59 = vld [vmem:[#allocation6 + $0x4e8] sm:$0xff] }
 0x196   :  { %v677_v60 = vld [vmem:[#allocation6 + $0x10c8] sm:$0xff]  ;;  %v8529_v1 = vcombine.high %v293_v58, %v297_v59  ;;  %v8528_v9 = vcombine.low %v293_v58, %v297_v59 }
 0x197   :  { %6598 = vmatpush1.bf16.msra.mxu1 %v9374_v3  ;;  %v8913_v3 = vcombine.high %v677_v60, %v681_v62  ;;  %v8912_v10 = vcombine.low %v677_v60, %v681_v62  ;;  %v713_v48 = vld [vmem:[#allocation6 + $0x11e8] sm:$0xff] }
 0x198   :  { %6721 = vmatpush1.bf16.msra.mxu0 %v8736_v4  ;;  %6599 = vmatprep.subr.bf16.mxu1 %v9383_v5  ;;  %v301_v4 = vld [vmem:[#allocation6 + $0x508] sm:$0xff] }
 0x199   :  { %6722 = vmatprep.subr.bf16.mxu0 %v8745_v6  ;;  %v305_v5 = vld [vmem:[#allocation6 + $0x528] sm:$0xff] }
 0x19a   :  { %v685_v6 = vld [vmem:[#allocation6 + $0x1108] sm:$0xff]  ;;  %v8537_v11 = vcombine.high %v301_v4, %v305_v5  ;;  %v8536_v19 = vcombine.low %v301_v4, %v305_v5 }
 0x19b   :  { %6600 = vmatpush1.bf16.msra.mxu1 %v9382_v12  ;;  %v8921_v12 = vcombine.high %v685_v6, %v689_v8  ;;  %v8920_v20 = vcombine.low %v685_v6, %v689_v8  ;;  %v717_v4 = vld [vmem:[#allocation6 + $0x1208] sm:$0xff] }
 0x19c   :  { %6723 = vmatpush1.bf16.msra.mxu0 %v8744_v14  ;;  %6601 = vmatprep.subr.bf16.mxu1 %v9391_v15  ;;  %v309_v14 = vld [vmem:[#allocation6 + $0x548] sm:$0xff] }
 0x19d   :  { %6724 = vmatprep.subr.bf16.mxu0 %v8753_v17  ;;  %v313_v15 = vld [vmem:[#allocation6 + $0x568] sm:$0xff] }
 0x19e   :  { %v693_v17 = vld [vmem:[#allocation6 + $0x1148] sm:$0xff]  ;;  %v8545_v22 = vcombine.high %v309_v14, %v313_v15  ;;  %v8544_v29 = vcombine.low %v309_v14, %v313_v15 }
 0x19f   :  { %6602 = vmatpush1.bf16.msra.mxu1 %v9390_v23  ;;  %v8929_v23 = vcombine.high %v693_v17, %v697_v18  ;;  %v8928_v30 = vcombine.low %v693_v17, %v697_v18  ;;  %v721_v5 = vld [vmem:[#allocation6 + $0x1228] sm:$0xff] }
 0x1a0   :  { %6725 = vmatpush1.bf16.msra.mxu0 %v8752_v25  ;;  %6653 = vmatprep.subr.bf16.mxu1 %v8505_v26  ;;  %v321_v25 = vld [vmem:[#allocation6 + $0x5a8] sm:$0xff]  ;;  %v8952_v15 = vcombine.low %v717_v4, %v721_v5 }
 0x1a1   :  { %6776 = vmatprep.subr.bf16.mxu0 %v8889_v27  ;;  %v701_v26 = vld [vmem:[#allocation6 + $0x1188] sm:$0xff]  ;;  %v8553_v33 = vcombine.high %v317_v24, %v321_v25 }
 0x1a2   :  { %6604 = vmatmul.mubr.bf16.vlgmr.msra.gmra.mrb[16].mxu1 %v10289_v32  ;;  %v705_v27 = vld [vmem:[#allocation6 + $0x11a8] sm:$0xff] }
 0x1a3   :  { %6654 = vmatpush1.bf16.msra.mxu1 %v8504_v36  ;;  %6727 = vmatmul.mubr.bf16.vlgmr.msra.gmra.mrb[16].mxu0 %v10241_v21  ;;  %v8937_v36 = vcombine.high %v701_v26, %v705_v27  ;;  %v8936_v60 = vcombine.low %v701_v26, %v705_v27 }
 0x1a4   :  { %6777 = vmatpush1.bf16.msra.mxu0 %v8888_v38  ;;  %6655 = vmatprep.subr.bf16.mxu1 %v8513_v42  ;;  %v325_v38 = vld [vmem:[#allocation6 + $0x5c8] sm:$0xff] }
 0x1a5   :  { %6778 = vmatprep.subr.bf16.mxu0 %v8897_v43  ;;  %6685 = vmatprep.mubr.bf16.mxu1 %v10243_v28  ;;  %v329_v42 = vld [vmem:[#allocation6 + $0x5e8] sm:$0xff] }
 0x1a6   :  { %6808 = vmatprep.mubr.bf16.mxu0 %v10246_v31  ;;  %v8560_v6 = vcombine.low %v325_v38, %v329_v42 }
 0x1a7   :  { %6656 = vmatpush1.bf16.msra.mxu1 %v8512_v53 }
 0x1a8   :  { %6779 = vmatpush1.bf16.msra.mxu0 %v8896_v54  ;;  %6657 = vmatprep.subr.bf16.mxu1 %v8521_v55  ;;  %v8552_v55 = vcombine.low %v317_v24, %v321_v25 }
 0x1a9   :  { %6780 = vmatprep.subr.bf16.mxu0 %v8905_v56 }
 0x1ab   :  { %6658 = vmatpush1.bf16.msra.mxu1 %v8520_v63 }
 0x1ac   :  { %6781 = vmatpush1.bf16.msra.mxu0 %v8904_v0  ;;  %6659 = vmatprep.subr.bf16.mxu1 %v8529_v1  ;;  %v8945_v0 = vcombine.high %v709_v46, %v713_v48  ;;  %v337_v1 = vld [vmem:[#allocation6 + $0x628] sm:$0xff] }
 0x1ad   :  { %6782 = vmatprep.subr.bf16.mxu0 %v8913_v3 }
 0x1af   :  { %6660 = vmatpush1.bf16.msra.mxu1 %v8528_v9  ;;  %v8953_v9 = vcombine.high %v717_v4, %v721_v5 }
 0x1b0   :  { %6783 = vmatpush1.bf16.msra.mxu0 %v8912_v10  ;;  %6661 = vmatprep.subr.bf16.mxu1 %v8537_v11  ;;  %v341_v10 = vld [vmem:[#allocation6 + $0x648] sm:$0xff] }
 0x1b1   :  { %6784 = vmatprep.subr.bf16.mxu0 %v8921_v12  ;;  %v345_v11 = vld [vmem:[#allocation6 + $0x668] sm:$0xff] }
 0x1b2   :  { %v725_v12 = vld [vmem:[#allocation6 + $0x1248] sm:$0xff]  ;;  %v8577_v17 = vcombine.high %v341_v10, %v345_v11  ;;  %v8576_v24 = vcombine.low %v341_v10, %v345_v11 }
 0x1b3   :  { %6662 = vmatpush1.bf16.msra.mxu1 %v8536_v19  ;;  %v349_v19 = vld [vmem:[#allocation6 + $0x688] sm:$0xff] }
 0x1b4   :  { %6785 = vmatpush1.bf16.msra.mxu0 %v8920_v20  ;;  %6663 = vmatprep.subr.bf16.mxu1 %v8545_v22  ;;  %v6359_v35 = vpop.f32.mrb[4].mxu1  ;;  %v353_v20 = vld [vmem:[#allocation6 + $0x6a8] sm:$0xff] }
 0x1b5   :  { %6786 = vmatprep.subr.bf16.mxu0 %v8929_v23  ;;  %v6360_v43 = vadd.f32 %v6359_v35, %v10281_v34  ;;  %v6361_v45 = vpop.f32.mrb[5].mxu1  ;;  %v8561_v34 = vcombine.high %v325_v38, %v329_v42  ;;  %v733_v22 = vld [vmem:[#allocation6 + $0x1288] sm:$0xff]  ;;  %v8585_v26 = vcombine.high %v349_v19, %v353_v20 }
 0x1b6   :  { %v10296_v52 = vpop.f32.mrb[4].mxu0  ;;  %v6362_v53 = vadd.f32 %v6361_v45, %v10283_v40  ;;  %v6363_v54 = vpop.f32.mrb[6].mxu1  ;;  %v333_v40 = vld [vmem:[#allocation6 + $0x608] sm:$0xff] }
 0x1b7   :  { %6664 = vmatpush1.bf16.msra.mxu1 %v8544_v29  ;;  %v10299_v56 = vpop.f32.mrb[5].mxu0  ;;  %v10302_v58 = vadd.f32 %v10285_v44, %v6360_v43  ;;  %v6364_v59 = vpop.f32.mrb[7].mxu1  ;;  %v8944_v44 = vcombine.low %v709_v46, %v713_v48  ;;  %v8569_v8 = vcombine.high %v333_v40, %v337_v1  ;;  %v8568_v14 = vcombine.low %v333_v40, %v337_v1  ;;  %v737_v23 = vld [vmem:[#allocation6 + $0x12a8] sm:$0xff] }
 0x1b8   :  { %6787 = vmatpush1.bf16.msra.mxu0 %v8928_v30  ;;  %6665 = vmatprep.subr.bf16.mxu1 %v8553_v33  ;;  %v6486_v62 = vpop.f32.mrb[6].mxu0  ;;  %v10305_v63 = vadd.f32 %v10287_v47, %v6362_v53  ;;  %v729_v47 = vld [vmem:[#allocation6 + $0x1268] sm:$0xff]  ;;  %v8969_v27 = vcombine.high %v733_v22, %v737_v23  ;;  %v8968_v38 = vcombine.low %v733_v22, %v737_v23 }
 0x1b9   :  { %6788 = vmatprep.subr.bf16.mxu0 %v8937_v36  ;;  %v6487_v3 = vpop.f32.mrb[7].mxu0  ;;  %v8961_v18 = vcombine.high %v725_v12, %v729_v47  ;;  %v8960_v25 = vcombine.low %v725_v12, %v729_v47  ;;  %v357_v29 = vld [vmem:[#allocation6 + $0x6c8] sm:$0xff]  ;;  %v8584_v36 = vcombine.low %v349_v19, %v353_v20 }
 0x1ba   :  { %v361_v30 = vld [vmem:[#allocation6 + $0x6e8] sm:$0xff] }
 0x1bb   :  { %6666 = vmatpush1.bf16.msra.mxu1 %v8552_v55  ;;  %v741_v33 = vld [vmem:[#allocation6 + $0x12c8] sm:$0xff]  ;;  %v8593_v42 = vcombine.high %v357_v29, %v361_v30  ;;  %v8592_v54 = vcombine.low %v357_v29, %v361_v30 }
 0x1bc   :  { %6789 = vmatpush1.bf16.msra.mxu0 %v8936_v60  ;;  %6667 = vmatprep.subr.bf16.mxu1 %v8561_v34  ;;  %v745_v35 = vld [vmem:[#allocation6 + $0x12e8] sm:$0xff] }
 0x1bd   :  { %6790 = vmatprep.subr.bf16.mxu0 %v8945_v0  ;;  %v8977_v43 = vcombine.high %v741_v33, %v745_v35  ;;  %v365_v45 = vld [vmem:[#allocation6 + $0x708] sm:$0xff]  ;;  %v8976_v55 = vcombine.low %v741_v33, %v745_v35 }
 0x1be   :  { %v369_v46 = vld [vmem:[#allocation6 + $0x728] sm:$0xff] }
 0x1bf   :  { %6668 = vmatpush1.bf16.msra.mxu1 %v8560_v6  ;;  %v749_v48 = vld [vmem:[#allocation6 + $0x1308] sm:$0xff]  ;;  %v8601_v59 = vcombine.high %v365_v45, %v369_v46  ;;  %v8600_v1 = vcombine.low %v365_v45, %v369_v46 }
 0x1c0   :  { %6791 = vmatpush1.bf16.msra.mxu0 %v8944_v44  ;;  %6669 = vmatprep.subr.bf16.mxu1 %v8569_v8  ;;  %v753_v53 = vld [vmem:[#allocation6 + $0x1328] sm:$0xff] }
 0x1c1   :  { %6792 = vmatprep.subr.bf16.mxu0 %v8953_v9  ;;  %v8985_v60 = vcombine.high %v749_v48, %v753_v53  ;;  %v373_v34 = vld [vmem:[#allocation6 + $0x748] sm:$0xff]  ;;  %v8984_v3 = vcombine.low %v749_v48, %v753_v53 }
 0x1c2   :  { %v377_v62 = vld [vmem:[#allocation6 + $0x768] sm:$0xff] }
 0x1c3   :  { %6670 = vmatpush1.bf16.msra.mxu1 %v8568_v14  ;;  %v757_v0 = vld [vmem:[#allocation6 + $0x1348] sm:$0xff]  ;;  %v8609_v4 = vcombine.high %v373_v34, %v377_v62  ;;  %v8608_v10 = vcombine.low %v373_v34, %v377_v62 }
 0x1c4   :  { %6793 = vmatpush1.bf16.msra.mxu0 %v8952_v15  ;;  %6671 = vmatprep.subr.bf16.mxu1 %v8577_v17  ;;  %v761_v40 = vld [vmem:[#allocation6 + $0x1368] sm:$0xff] }
 0x1c5   :  { %6794 = vmatprep.subr.bf16.mxu0 %v8961_v18  ;;  %v8993_v5 = vcombine.high %v757_v0, %v761_v40  ;;  %v381_v6 = vld [vmem:[#allocation6 + $0x788] sm:$0xff]  ;;  %v8992_v11 = vcombine.low %v757_v0, %v761_v40 }
 0x1c6   :  { %v385_v44 = vld [vmem:[#allocation6 + $0x7a8] sm:$0xff] }
 0x1c7   :  { %6672 = vmatpush1.bf16.msra.mxu1 %v8576_v24  ;;  %v765_v8 = vld [vmem:[#allocation6 + $0x1388] sm:$0xff]  ;;  %v8617_v12 = vcombine.high %v381_v6, %v385_v44  ;;  %v8616_v19 = vcombine.low %v381_v6, %v385_v44 }
 0x1c8   :  { %6795 = vmatpush1.bf16.msra.mxu0 %v8960_v25  ;;  %6673 = vmatprep.subr.bf16.mxu1 %v8585_v26  ;;  %v769_v9 = vld [vmem:[#allocation6 + $0x13a8] sm:$0xff] }
 0x1c9   :  { %6796 = vmatprep.subr.bf16.mxu0 %v8969_v27  ;;  %v9001_v47 = vcombine.high %v765_v8, %v769_v9  ;;  %v389_v14 = vld [vmem:[#allocation6 + $0x7c8] sm:$0xff]  ;;  %v9000_v20 = vcombine.low %v765_v8, %v769_v9 }
 0x1ca   :  { %v393_v15 = vld [vmem:[#allocation6 + $0x7e8] sm:$0xff] }
 0x1cb   :  { %6674 = vmatpush1.bf16.msra.mxu1 %v8584_v36  ;;  %v773_v17 = vld [vmem:[#allocation6 + $0x13c8] sm:$0xff]  ;;  %v8625_v22 = vcombine.high %v389_v14, %v393_v15  ;;  %v8624_v29 = vcombine.low %v389_v14, %v393_v15 }
 0x1cc   :  { %6797 = vmatpush1.bf16.msra.mxu0 %v8968_v38  ;;  %6675 = vmatprep.subr.bf16.mxu1 %v8593_v42  ;;  %v777_v18 = vld [vmem:[#allocation6 + $0x13e8] sm:$0xff] }
 0x1cd   :  { %6798 = vmatprep.subr.bf16.mxu0 %v8977_v43  ;;  %v9009_v23 = vcombine.high %v773_v17, %v777_v18  ;;  %v525_v24 = vld [vmem:[#allocation6 + $0xc08] sm:$0xff]  ;;  %v9008_v30 = vcombine.low %v773_v17, %v777_v18 }
 0x1ce   :  { %v529_v25 = vld [vmem:[#allocation6 + $0xc28] sm:$0xff] }
 0x1cf   :  { %6676 = vmatpush1.bf16.msra.mxu1 %v8592_v54  ;;  %v909_v26 = vld [vmem:[#allocation6 + $0x1808] sm:$0xff]  ;;  %v8761_v33 = vcombine.high %v525_v24, %v529_v25  ;;  %v8760_v45 = vcombine.low %v525_v24, %v529_v25 }
 0x1d0   :  { %6799 = vmatpush1.bf16.msra.mxu0 %v8976_v55  ;;  %6677 = vmatprep.subr.bf16.mxu1 %v8601_v59  ;;  %v913_v27 = vld [vmem:[#allocation6 + $0x1828] sm:$0xff] }
 0x1d1   :  { %6800 = vmatprep.subr.bf16.mxu0 %v8985_v60  ;;  %v9145_v35 = vcombine.high %v909_v26, %v913_v27  ;;  %v533_v36 = vld [vmem:[#allocation6 + $0xc48] sm:$0xff]  ;;  %v9144_v46 = vcombine.low %v909_v26, %v913_v27 }
 0x1d2   :  { %v537_v38 = vld [vmem:[#allocation6 + $0xc68] sm:$0xff] }
 0x1d3   :  { %6678 = vmatpush1.bf16.msra.mxu1 %v8600_v1  ;;  %v917_v42 = vld [vmem:[#allocation6 + $0x1848] sm:$0xff]  ;;  %v8769_v48 = vcombine.high %v533_v36, %v537_v38  ;;  %v8768_v34 = vcombine.low %v533_v36, %v537_v38 }
 0x1d4   :  { %6801 = vmatpush1.bf16.msra.mxu0 %v8984_v3  ;;  %6679 = vmatprep.subr.bf16.mxu1 %v8609_v4  ;;  %v921_v43 = vld [vmem:[#allocation6 + $0x1868] sm:$0xff] }
 0x1d5   :  { %6802 = vmatprep.subr.bf16.mxu0 %v8993_v5  ;;  %v9153_v53 = vcombine.high %v917_v42, %v921_v43  ;;  %v541_v54 = vld [vmem:[#allocation6 + $0xc88] sm:$0xff]  ;;  %v9152_v62 = vcombine.low %v917_v42, %v921_v43 }
 0x1d6   :  { %v545_v55 = vld [vmem:[#allocation6 + $0xca8] sm:$0xff] }
 0x1d7   :  { %6680 = vmatpush1.bf16.msra.mxu1 %v8608_v10  ;;  %v925_v59 = vld [vmem:[#allocation6 + $0x1888] sm:$0xff]  ;;  %v8777_v0 = vcombine.high %v541_v54, %v545_v55  ;;  %v8776_v6 = vcombine.low %v541_v54, %v545_v55 }
 0x1d8   :  { %6803 = vmatpush1.bf16.msra.mxu0 %v8992_v11  ;;  %6681 = vmatprep.subr.bf16.mxu1 %v8617_v12  ;;  %v929_v60 = vld [vmem:[#allocation6 + $0x18a8] sm:$0xff] }
 0x1d9   :  { %6804 = vmatprep.subr.bf16.mxu0 %v9001_v47  ;;  %v9161_v40 = vcombine.high %v925_v59, %v929_v60  ;;  %v549_v1 = vld [vmem:[#allocation6 + $0xcc8] sm:$0xff]  ;;  %v9160_v44 = vcombine.low %v925_v59, %v929_v60 }
 0x1da   :  { %v553_v3 = vld [vmem:[#allocation6 + $0xce8] sm:$0xff] }
 0x1db   :  { %6682 = vmatpush1.bf16.msra.mxu1 %v8616_v19  ;;  %v933_v4 = vld [vmem:[#allocation6 + $0x18c8] sm:$0xff]  ;;  %v8785_v8 = vcombine.high %v549_v1, %v553_v3  ;;  %v8784_v14 = vcombine.low %v549_v1, %v553_v3 }
 0x1dc   :  { %6805 = vmatpush1.bf16.msra.mxu0 %v9000_v20  ;;  %6683 = vmatprep.subr.bf16.mxu1 %v8625_v22  ;;  %v937_v5 = vld [vmem:[#allocation6 + $0x18e8] sm:$0xff] }
 0x1dd   :  { %6806 = vmatprep.subr.bf16.mxu0 %v9009_v23  ;;  %v9169_v9 = vcombine.high %v933_v4, %v937_v5  ;;  %v557_v10 = vld [vmem:[#allocation6 + $0xd08] sm:$0xff]  ;;  %v9168_v15 = vcombine.low %v933_v4, %v937_v5 }
 0x1de   :  { %v561_v11 = vld [vmem:[#allocation6 + $0xd28] sm:$0xff] }
 0x1df   :  { %6684 = vmatpush1.bf16.msra.mxu1 %v8624_v29  ;;  %v941_v12 = vld [vmem:[#allocation6 + $0x1908] sm:$0xff]  ;;  %v8793_v17 = vcombine.high %v557_v10, %v561_v11  ;;  %v8792_v24 = vcombine.low %v557_v10, %v561_v11 }
 0x1e0   :  { %6807 = vmatpush1.bf16.msra.mxu0 %v9008_v30  ;;  %6735 = vmatprep.subr.bf16.mxu1 %v8761_v33  ;;  %v945_v47 = vld [vmem:[#allocation6 + $0x1928] sm:$0xff] }
 0x1e1   :  { %6858 = vmatprep.subr.bf16.mxu0 %v9145_v35  ;;  %v9177_v18 = vcombine.high %v941_v12, %v945_v47  ;;  %v565_v19 = vld [vmem:[#allocation6 + $0xd48] sm:$0xff]  ;;  %v9176_v25 = vcombine.low %v941_v12, %v945_v47 }
 0x1e2   :  { %6686 = vmatmul.mubr.bf16.vlgmr.msra.gmra.mrb[20].mxu1 %v10251_v39  ;;  %v569_v20 = vld [vmem:[#allocation6 + $0xd68] sm:$0xff] }
 0x1e3   :  { %6736 = vmatpush1.bf16.msra.mxu1 %v8760_v45  ;;  %6809 = vmatmul.mubr.bf16.vlgmr.msra.gmra.mrb[20].mxu0 %v10253_v41  ;;  %v949_v22 = vld [vmem:[#allocation6 + $0x1948] sm:$0xff]  ;;  %v8801_v26 = vcombine.high %v565_v19, %v569_v20  ;;  %v8800_v36 = vcombine.low %v565_v19, %v569_v20 }
 0x1e4   :  { %6859 = vmatpush1.bf16.msra.mxu0 %v9144_v46  ;;  %6737 = vmatprep.subr.bf16.mxu1 %v8769_v48  ;;  %v953_v23 = vld [vmem:[#allocation6 + $0x1968] sm:$0xff] }
 0x1e5   :  { %6860 = vmatprep.subr.bf16.mxu0 %v9153_v53  ;;  %6767 = vmatprep.mubr.bf16.mxu1 %v10255_v50  ;;  %v9185_v27 = vcombine.high %v949_v22, %v953_v23  ;;  %v573_v29 = vld [vmem:[#allocation6 + $0xd88] sm:$0xff]  ;;  %v9184_v38 = vcombine.low %v949_v22, %v953_v23 }
 0x1e6   :  { %6890 = vmatprep.mubr.bf16.mxu0 %v10258_v51  ;;  %v577_v30 = vld [vmem:[#allocation6 + $0xda8] sm:$0xff] }
 0x1e7   :  { %6738 = vmatpush1.bf16.msra.mxu1 %v8768_v34  ;;  %v957_v33 = vld [vmem:[#allocation6 + $0x1988] sm:$0xff]  ;;  %v8809_v42 = vcombine.high %v573_v29, %v577_v30 }
 0x1e8   :  { %6861 = vmatpush1.bf16.msra.mxu0 %v9152_v62  ;;  %6739 = vmatprep.subr.bf16.mxu1 %v8777_v0  ;;  %v961_v35 = vld [vmem:[#allocation6 + $0x19a8] sm:$0xff]  ;;  %v8808_v0 = vcombine.low %v573_v29, %v577_v30 }
 0x1e9   :  { %6862 = vmatprep.subr.bf16.mxu0 %v9161_v40  ;;  %v9193_v45 = vcombine.high %v957_v33, %v961_v35  ;;  %v581_v46 = vld [vmem:[#allocation6 + $0xdc8] sm:$0xff]  ;;  %v9192_v4 = vcombine.low %v957_v33, %v961_v35 }
 0x1ea   :  { %v585_v48 = vld [vmem:[#allocation6 + $0xde8] sm:$0xff] }
 0x1eb   :  { %6740 = vmatpush1.bf16.msra.mxu1 %v8776_v6  ;;  %v965_v55 = vld [vmem:[#allocation6 + $0x19c8] sm:$0xff]  ;;  %v8816_v12 = vcombine.low %v581_v46, %v585_v48 }
 0x1ec   :  { %6863 = vmatpush1.bf16.msra.mxu0 %v9160_v44  ;;  %6741 = vmatprep.subr.bf16.mxu1 %v8785_v8  ;;  %v969_v59 = vld [vmem:[#allocation6 + $0x19e8] sm:$0xff] }
 0x1ed   :  { %6864 = vmatprep.subr.bf16.mxu0 %v9169_v9  ;;  %v9201_v44 = vcombine.high %v965_v55, %v969_v59  ;;  %v593_v8 = vld [vmem:[#allocation6 + $0xe28] sm:$0xff] }
 0x1ee   :  { %v973_v10 = vld [vmem:[#allocation6 + $0x1a08] sm:$0xff] }
 0x1ef   :  { %6742 = vmatpush1.bf16.msra.mxu1 %v8784_v14  ;;  %v977_v11 = vld [vmem:[#allocation6 + $0x1a28] sm:$0xff] }
 0x1f0   :  { %6865 = vmatpush1.bf16.msra.mxu0 %v9168_v15  ;;  %6743 = vmatprep.subr.bf16.mxu1 %v8793_v17  ;;  %v9209_v14 = vcombine.high %v973_v10, %v977_v11  ;;  %v597_v15 = vld [vmem:[#allocation6 + $0xe48] sm:$0xff]  ;;  %v9208_v20 = vcombine.low %v973_v10, %v977_v11 }
 0x1f1   :  { %6866 = vmatprep.subr.bf16.mxu0 %v9177_v18  ;;  %v601_v17 = vld [vmem:[#allocation6 + $0xe68] sm:$0xff] }
 0x1f2   :  { %v981_v18 = vld [vmem:[#allocation6 + $0x1a48] sm:$0xff]  ;;  %v8833_v22 = vcombine.high %v597_v15, %v601_v17  ;;  %v8832_v29 = vcombine.low %v597_v15, %v601_v17 }
 0x1f3   :  { %6744 = vmatpush1.bf16.msra.mxu1 %v8792_v24  ;;  %v605_v24 = vld [vmem:[#allocation6 + $0xe88] sm:$0xff] }
 0x1f4   :  { %6867 = vmatpush1.bf16.msra.mxu0 %v9176_v25  ;;  %6745 = vmatprep.subr.bf16.mxu1 %v8801_v26  ;;  %v609_v25 = vld [vmem:[#allocation6 + $0xea8] sm:$0xff] }
 0x1f5   :  { %v6441_v43 = vpop.f32.mrb[8].mxu1  ;;  %6868 = vmatprep.subr.bf16.mxu0 %v9185_v27  ;;  %v989_v26 = vld [vmem:[#allocation6 + $0x1a88] sm:$0xff]  ;;  %v8841_v33 = vcombine.high %v605_v24, %v609_v25 }
 0x1f6   :  { %v6442_v53 = vadd.f32 %v6441_v43, %v10302_v58  ;;  %v6443_v54 = vpop.f32.mrb[9].mxu1  ;;  %v10312_v60 = vpop.f32.mrb[8].mxu0  ;;  %v8817_v58 = vcombine.high %v581_v46, %v585_v48  ;;  %v993_v27 = vld [vmem:[#allocation6 + $0x1aa8] sm:$0xff] }
 0x1f7   :  { %v6444_v34 = vadd.f32 %v6443_v54, %v10305_v63  ;;  %v6445_v62 = vpop.f32.mrb[10].mxu1  ;;  %6746 = vmatpush1.bf16.msra.mxu1 %v8800_v36  ;;  %v10315_v40 = vpop.f32.mrb[9].mxu0  ;;  %v589_v63 = vld [vmem:[#allocation6 + $0xe08] sm:$0xff]  ;;  %v9225_v35 = vcombine.high %v989_v26, %v993_v27  ;;  %v9224_v46 = vcombine.low %v989_v26, %v993_v27 }
 0x1f8   :  { %v10318_v1 = vadd.f32 %v10296_v52, %v6442_v53  ;;  %6869 = vmatpush1.bf16.msra.mxu0 %v9184_v38  ;;  %v6446_v3 = vpop.f32.mrb[11].mxu1  ;;  %6747 = vmatprep.subr.bf16.mxu1 %v8809_v42  ;;  %v6568_v5 = vpop.f32.mrb[10].mxu0  ;;  %v9200_v52 = vcombine.low %v965_v55, %v969_v59  ;;  %v8825_v47 = vcombine.high %v589_v63, %v593_v8  ;;  %v613_v36 = vld [vmem:[#allocation6 + $0xec8] sm:$0xff] }
 0x1f9   :  { %v10321_v6 = vadd.f32 %v10299_v56, %v6444_v34  ;;  %6870 = vmatprep.subr.bf16.mxu0 %v9193_v45  ;;  %v6569_v9 = vpop.f32.mrb[11].mxu0  ;;  %v985_v56 = vld [vmem:[#allocation6 + $0x1a68] sm:$0xff]  ;;  %v8824_v19 = vcombine.low %v589_v63, %v593_v8  ;;  %v8840_v45 = vcombine.low %v605_v24, %v609_v25 }
 0x1fa   :  { %v9217_v23 = vcombine.high %v981_v18, %v985_v56  ;;  %v9216_v30 = vcombine.low %v981_v18, %v985_v56  ;;  %v617_v38 = vld [vmem:[#allocation6 + $0xee8] sm:$0xff] }
 0x1fb   :  { %6748 = vmatpush1.bf16.msra.mxu1 %v8808_v0  ;;  %v997_v42 = vld [vmem:[#allocation6 + $0x1ac8] sm:$0xff]  ;;  %v8849_v48 = vcombine.high %v613_v36, %v617_v38  ;;  %v8848_v62 = vcombine.low %v613_v36, %v617_v38 }
 0x1fc   :  { %6871 = vmatpush1.bf16.msra.mxu0 %v9192_v4  ;;  %6749 = vmatprep.subr.bf16.mxu1 %v8817_v58  ;;  %v1001_v43 = vld [vmem:[#allocation6 + $0x1ae8] sm:$0xff] }
 0x1fd   :  { %6872 = vmatprep.subr.bf16.mxu0 %v9201_v44  ;;  %v9233_v53 = vcombine.high %v997_v42, %v1001_v43  ;;  %v621_v54 = vld [vmem:[#allocation6 + $0xf08] sm:$0xff]  ;;  %v9232_v0 = vcombine.low %v997_v42, %v1001_v43 }
 0x1fe   :  { %v625_v55 = vld [vmem:[#allocation6 + $0xf28] sm:$0xff] }
 0x1ff   :  { %6750 = vmatpush1.bf16.msra.mxu1 %v8816_v12  ;;  %v1005_v59 = vld [vmem:[#allocation6 + $0x1b08] sm:$0xff]  ;;  %v8857_v3 = vcombine.high %v621_v54, %v625_v55  ;;  %v8856_v8 = vcombine.low %v621_v54, %v625_v55 }
 0x200   :  { %6873 = vmatpush1.bf16.msra.mxu0 %v9200_v52  ;;  %6751 = vmatprep.subr.bf16.mxu1 %v8825_v47  ;;  %v1009_v34 = vld [vmem:[#allocation6 + $0x1b28] sm:$0xff] }
 0x201   :  { %6874 = vmatprep.subr.bf16.mxu0 %v9209_v14  ;;  %v9241_v4 = vcombine.high %v1005_v59, %v1009_v34  ;;  %v629_v58 = vld [vmem:[#allocation6 + $0xf48] sm:$0xff]  ;;  %v9240_v9 = vcombine.low %v1005_v59, %v1009_v34 }
 0x202   :  { %v633_v5 = vld [vmem:[#allocation6 + $0xf68] sm:$0xff] }
 0x203   :  { %6752 = vmatpush1.bf16.msra.mxu1 %v8824_v19  ;;  %v1013_v44 = vld [vmem:[#allocation6 + $0x1b48] sm:$0xff]  ;;  %v8865_v10 = vcombine.high %v629_v58, %v633_v5  ;;  %v8864_v15 = vcombine.low %v629_v58, %v633_v5 }
 0x204   :  { %6875 = vmatpush1.bf16.msra.mxu0 %v9208_v20  ;;  %6753 = vmatprep.subr.bf16.mxu1 %v8833_v22  ;;  %v1017_v63 = vld [vmem:[#allocation6 + $0x1b68] sm:$0xff] }
 0x205   :  { %6876 = vmatprep.subr.bf16.mxu0 %v9217_v23  ;;  %v9249_v11 = vcombine.high %v1013_v44, %v1017_v63  ;;  %v637_v12 = vld [vmem:[#allocation6 + $0xf88] sm:$0xff]  ;;  %v9248_v17 = vcombine.low %v1013_v44, %v1017_v63 }
 0x206   :  { %v641_v52 = vld [vmem:[#allocation6 + $0xfa8] sm:$0xff] }
 0x207   :  { %6754 = vmatpush1.bf16.msra.mxu1 %v8832_v29  ;;  %v1021_v47 = vld [vmem:[#allocation6 + $0x1b88] sm:$0xff]  ;;  %v8873_v18 = vcombine.high %v637_v12, %v641_v52  ;;  %v8872_v24 = vcombine.low %v637_v12, %v641_v52 }
 0x208   :  { %6877 = vmatpush1.bf16.msra.mxu0 %v9216_v30  ;;  %6755 = vmatprep.subr.bf16.mxu1 %v8841_v33  ;;  %v1025_v14 = vld [vmem:[#allocation6 + $0x1ba8] sm:$0xff]  ;;  %v142_v33 = vld [vmem:[#allocation6 + $0x10] sm:$0xff] }
 0x209   :  { %6878 = vmatprep.subr.bf16.mxu0 %v9225_v35  ;;  %v9257_v56 = vcombine.high %v1021_v47, %v1025_v14  ;;  %v645_v19 = vld [vmem:[#allocation6 + $0xfc8] sm:$0xff]  ;;  %v9256_v25 = vcombine.low %v1021_v47, %v1025_v14  ;;  %v146_v35 = vld [vmem:[#allocation6 + $0x30] sm:$0xff] }
 0x20a   :  { %v649_v20 = vld [vmem:[#allocation6 + $0xfe8] sm:$0xff]  ;;  %v8379_v43 = vcombine.high %v142_v33, %v146_v35  ;;  %v8378_v55 = vcombine.low %v142_v33, %v146_v35 }
 0x20b   :  { %6756 = vmatpush1.bf16.msra.mxu1 %v8840_v45  ;;  %v1029_v22 = vld [vmem:[#allocation6 + $0x1bc8] sm:$0xff]  ;;  %v8881_v26 = vcombine.high %v645_v19, %v649_v20  ;;  %v8880_v36 = vcombine.low %v645_v19, %v649_v20 }
 0x20c   :  { %6879 = vmatpush1.bf16.msra.mxu0 %v9224_v46  ;;  %6757 = vmatprep.subr.bf16.mxu1 %v8849_v48  ;;  %v1033_v23 = vld [vmem:[#allocation6 + $0x1be8] sm:$0xff]  ;;  %v150_v48 = vld [vmem:[#allocation6 + $0x50] sm:$0xff] }
 0x20d   :  { %6880 = vmatprep.subr.bf16.mxu0 %v9233_v53  ;;  %v9265_v27 = vcombine.high %v1029_v22, %v1033_v23  ;;  %v781_v29 = vld [vmem:[#allocation6 + $0x1408] sm:$0xff]  ;;  %v9264_v38 = vcombine.low %v1029_v22, %v1033_v23  ;;  %v154_v53 = vld [vmem:[#allocation6 + $0x70] sm:$0xff] }
 0x20e   :  { %v785_v30 = vld [vmem:[#allocation6 + $0x1428] sm:$0xff]  ;;  %v8387_v34 = vcombine.high %v150_v48, %v154_v53  ;;  %v8386_v5 = vcombine.low %v150_v48, %v154_v53 }
 0x20f   :  { %6758 = vmatpush1.bf16.msra.mxu1 %v8848_v62  ;;  %v9017_v42 = vcombine.high %v781_v29, %v785_v30  ;;  %v789_v45 = vld [vmem:[#allocation6 + $0x1448] sm:$0xff]  ;;  %v9016_v54 = vcombine.low %v781_v29, %v785_v30 }
 0x210   :  { %6881 = vmatpush1.bf16.msra.mxu0 %v9232_v0  ;;  %6759 = vmatprep.subr.bf16.mxu1 %v8857_v3  ;;  %v793_v46 = vld [vmem:[#allocation6 + $0x1468] sm:$0xff]  ;;  %v158_v3 = vld [vmem:[#allocation6 + $0x90] sm:$0xff] }
 0x211   :  { %6882 = vmatprep.subr.bf16.mxu0 %v9241_v4  ;;  %v9025_v59 = vcombine.high %v789_v45, %v793_v46  ;;  %v797_v62 = vld [vmem:[#allocation6 + $0x1488] sm:$0xff]  ;;  %v162_v4 = vld [vmem:[#allocation6 + $0xb0] sm:$0xff]  ;;  %v9024_v58 = vcombine.low %v789_v45, %v793_v46 }
 0x212   :  { %v801_v0 = vld [vmem:[#allocation6 + $0x14a8] sm:$0xff]  ;;  %v8395_v63 = vcombine.high %v158_v3, %v162_v4  ;;  %v8394_v52 = vcombine.low %v158_v3, %v162_v4  ;;  %v202_v3 = vld [vmem:[#allocation6 + $0x1f0] sm:$0xff] }
 0x213   :  { %6760 = vmatpush1.bf16.msra.mxu1 %v8856_v8  ;;  %v9033_v44 = vcombine.high %v797_v62, %v801_v0  ;;  %v805_v8 = vld [vmem:[#allocation6 + $0x14c8] sm:$0xff]  ;;  %v9032_v12 = vcombine.low %v797_v62, %v801_v0  ;;  %v198_v0 = vld [vmem:[#allocation6 + $0x1d0] sm:$0xff] }
 0x214   :  { %6883 = vmatpush1.bf16.msra.mxu0 %v9240_v9  ;;  %6761 = vmatprep.subr.bf16.mxu1 %v8865_v10  ;;  %v809_v9 = vld [vmem:[#allocation6 + $0x14e8] sm:$0xff]  ;;  %v166_v10 = vld [vmem:[#allocation6 + $0xd0] sm:$0xff] }
 0x215   :  { %6884 = vmatprep.subr.bf16.mxu0 %v9249_v11  ;;  %v170_v11 = vld [vmem:[#allocation6 + $0xf0] sm:$0xff]  ;;  %v9041_v47 = vcombine.high %v805_v8, %v809_v9  ;;  %v9040_v19 = vcombine.low %v805_v8, %v809_v9 }
 0x216   :  { %v8403_v14 = vcombine.high %v166_v10, %v170_v11  ;;  %v8402_v20 = vcombine.low %v166_v10, %v170_v11 }
 0x217   :  { %6762 = vmatpush1.bf16.msra.mxu1 %v8864_v15  ;;  %v813_v15 = vld [vmem:[#allocation6 + $0x1508] sm:$0xff] }
 0x218   :  { %6885 = vmatpush1.bf16.msra.mxu0 %v9248_v17  ;;  %6763 = vmatprep.subr.bf16.mxu1 %v8873_v18  ;;  %v817_v17 = vld [vmem:[#allocation6 + $0x1528] sm:$0xff]  ;;  %v174_v18 = vld [vmem:[#allocation6 + $0x110] sm:$0xff] }
 0x219   :  { %6886 = vmatprep.subr.bf16.mxu0 %v9257_v56  ;;  %v178_v56 = vld [vmem:[#allocation6 + $0x130] sm:$0xff]  ;;  %v9049_v22 = vcombine.high %v813_v15, %v817_v17  ;;  %v9048_v29 = vcombine.low %v813_v15, %v817_v17 }
 0x21a   :  { %v8411_v23 = vcombine.high %v174_v18, %v178_v56  ;;  %v8410_v30 = vcombine.low %v174_v18, %v178_v56  ;;  %v206_v15 = vld [vmem:[#allocation6 + $0x210] sm:$0xff] }
 0x21b   :  { %6764 = vmatpush1.bf16.msra.mxu1 %v8872_v24  ;;  %v821_v24 = vld [vmem:[#allocation6 + $0x1548] sm:$0xff]  ;;  %v210_v17 = vld [vmem:[#allocation6 + $0x230] sm:$0xff] }
 0x21c   :  { %6887 = vmatpush1.bf16.msra.mxu0 %v9256_v25  ;;  %6765 = vmatprep.subr.bf16.mxu1 %v8881_v26  ;;  %v825_v25 = vld [vmem:[#allocation6 + $0x1568] sm:$0xff]  ;;  %v182_v26 = vld [vmem:[#allocation6 + $0x150] sm:$0xff] }
 0x21d   :  { %6888 = vmatprep.subr.bf16.mxu0 %v9265_v27  ;;  %v186_v27 = vld [vmem:[#allocation6 + $0x170] sm:$0xff]  ;;  %v9057_v33 = vcombine.high %v821_v24, %v825_v25  ;;  %v9056_v45 = vcombine.low %v821_v24, %v825_v25  ;;  %v8442_v25 = vcombine.low %v206_v15, %v210_v17 }
 0x21e   :  { %v8419_v35 = vcombine.high %v182_v26, %v186_v27  ;;  %v8418_v46 = vcombine.low %v182_v26, %v186_v27 }
 0x21f   :  { %6766 = vmatpush1.bf16.msra.mxu1 %v8880_v36  ;;  %v829_v36 = vld [vmem:[#allocation6 + $0x1588] sm:$0xff] }
 0x220   :  { %6889 = vmatpush1.bf16.msra.mxu0 %v9264_v38  ;;  %6817 = vmatprep.subr.bf16.mxu1 %v9017_v42  ;;  %v833_v38 = vld [vmem:[#allocation6 + $0x15a8] sm:$0xff]  ;;  %v190_v42 = vld [vmem:[#allocation6 + $0x190] sm:$0xff] }
 0x221   :  { %6940 = vmatprep.subr.bf16.mxu0 %v8379_v43  ;;  %v194_v43 = vld [vmem:[#allocation6 + $0x1b0] sm:$0xff]  ;;  %v9065_v48 = vcombine.high %v829_v36, %v833_v38 }
 0x222   :  { %6768 = vmatmul.mubr.bf16.vlgmr.msra.gmra.mrb[24].mxu1 %v10263_v2  ;;  %v8426_v10 = vcombine.low %v190_v42, %v194_v43 }
 0x223   :  { %6818 = vmatpush1.bf16.msra.mxu1 %v9016_v54  ;;  %6891 = vmatmul.mubr.bf16.vlgmr.msra.gmra.mrb[24].mxu0 %v10265_v7  ;;  %v8427_v54 = vcombine.high %v190_v42, %v194_v43 }
 0x224   :  { %6941 = vmatpush1.bf16.msra.mxu0 %v8378_v55  ;;  %6819 = vmatprep.subr.bf16.mxu1 %v9025_v59  ;;  %v837_v55 = vld [vmem:[#allocation6 + $0x15c8] sm:$0xff] }
 0x225   :  { %6942 = vmatprep.subr.bf16.mxu0 %v8387_v34  ;;  %6849 = vmatprep.mubr.bf16.mxu1 %v10267_v13  ;;  %v841_v59 = vld [vmem:[#allocation6 + $0x15e8] sm:$0xff] }
 0x226   :  { %6972 = vmatprep.mubr.bf16.mxu0 %v10233_v57  ;;  %v9072_v18 = vcombine.low %v837_v55, %v841_v59 }
 0x227   :  { %6820 = vmatpush1.bf16.msra.mxu1 %v9024_v58 }
 0x228   :  { %6943 = vmatpush1.bf16.msra.mxu0 %v8386_v5  ;;  %6821 = vmatprep.subr.bf16.mxu1 %v9033_v44  ;;  %v9064_v44 = vcombine.low %v829_v36, %v833_v38 }
 0x229   :  { %6944 = vmatprep.subr.bf16.mxu0 %v8395_v63 }
 0x22b   :  { %6822 = vmatpush1.bf16.msra.mxu1 %v9032_v12 }
 0x22c   :  { %6945 = vmatpush1.bf16.msra.mxu0 %v8394_v52  ;;  %6823 = vmatprep.subr.bf16.mxu1 %v9041_v47  ;;  %v8435_v52 = vcombine.high %v198_v0, %v202_v3  ;;  %v849_v47 = vld [vmem:[#allocation6 + $0x1628] sm:$0xff] }
 0x22d   :  { %6946 = vmatprep.subr.bf16.mxu0 %v8403_v14 }
 0x22f   :  { %6824 = vmatpush1.bf16.msra.mxu1 %v9040_v19  ;;  %v8443_v19 = vcombine.high %v206_v15, %v210_v17 }
 0x230   :  { %6947 = vmatpush1.bf16.msra.mxu0 %v8402_v20  ;;  %6825 = vmatprep.subr.bf16.mxu1 %v9049_v22  ;;  %v853_v20 = vld [vmem:[#allocation6 + $0x1648] sm:$0xff] }
 0x231   :  { %6948 = vmatprep.subr.bf16.mxu0 %v8411_v23  ;;  %v857_v22 = vld [vmem:[#allocation6 + $0x1668] sm:$0xff]  ;;  %v214_v23 = vld [vmem:[#allocation6 + $0x250] sm:$0xff] }
 0x232   :  { %v9089_v26 = vcombine.high %v853_v20, %v857_v22  ;;  %v9088_v36 = vcombine.low %v853_v20, %v857_v22 }
 0x233   :  { %6826 = vmatpush1.bf16.msra.mxu1 %v9048_v29  ;;  %v861_v29 = vld [vmem:[#allocation6 + $0x1688] sm:$0xff] }
 0x234   :  { %6949 = vmatpush1.bf16.msra.mxu0 %v8410_v30  ;;  %6827 = vmatprep.subr.bf16.mxu1 %v9057_v33  ;;  %v865_v30 = vld [vmem:[#allocation6 + $0x16a8] sm:$0xff]  ;;  %v222_v33 = vld [vmem:[#allocation6 + $0x290] sm:$0xff] }
 0x235   :  { %v6523_v53 = vpop.f32.mrb[12].mxu1  ;;  %6950 = vmatprep.subr.bf16.mxu0 %v8419_v35  ;;  %v226_v35 = vld [vmem:[#allocation6 + $0x2b0] sm:$0xff]  ;;  %v9097_v42 = vcombine.high %v861_v29, %v865_v30 }
 0x236   :  { %v6524_v34 = vadd.f32 %v6523_v53, %v10318_v1  ;;  %v6525_v62 = vpop.f32.mrb[13].mxu1  ;;  %v10328_v4 = vpop.f32.mrb[12].mxu0  ;;  %v9073_v1 = vcombine.high %v837_v55, %v841_v59  ;;  %v8459_v43 = vcombine.high %v222_v33, %v226_v35  ;;  %v234_v53 = vld [vmem:[#allocation6 + $0x2f0] sm:$0xff]  ;;  %v8458_v55 = vcombine.low %v222_v33, %v226_v35 }
 0x237   :  { %v6526_v58 = vadd.f32 %v6525_v62, %v10321_v6  ;;  %v6527_v5 = vpop.f32.mrb[14].mxu1  ;;  %6828 = vmatpush1.bf16.msra.mxu1 %v9056_v45  ;;  %v10331_v63 = vpop.f32.mrb[13].mxu0  ;;  %v845_v6 = vld [vmem:[#allocation6 + $0x1608] sm:$0xff] }
 0x238   :  { %v10334_v8 = vadd.f32 %v10312_v60, %v6524_v34  ;;  %6951 = vmatpush1.bf16.msra.mxu0 %v8418_v46  ;;  %v6528_v9 = vpop.f32.mrb[15].mxu1  ;;  %6829 = vmatprep.subr.bf16.mxu1 %v9065_v48  ;;  %v6650_v11 = vpop.f32.mrb[14].mxu0  ;;  %v8434_v60 = vcombine.low %v198_v0, %v202_v3  ;;  %v9081_v56 = vcombine.high %v845_v6, %v849_v47  ;;  %v869_v45 = vld [vmem:[#allocation6 + $0x16c8] sm:$0xff]  ;;  %v230_v48 = vld [vmem:[#allocation6 + $0x2d0] sm:$0xff] }
 0x239   :  { %v10337_v12 = vadd.f32 %v10315_v40, %v6526_v58  ;;  %6952 = vmatprep.subr.bf16.mxu0 %v8427_v54  ;;  %v6651_v14 = vpop.f32.mrb[15].mxu0  ;;  %v218_v40 = vld [vmem:[#allocation6 + $0x270] sm:$0xff]  ;;  %v9080_v24 = vcombine.low %v845_v6, %v849_v47  ;;  %v873_v46 = vld [vmem:[#allocation6 + $0x16e8] sm:$0xff]  ;;  %v9096_v54 = vcombine.low %v861_v29, %v865_v30  ;;  %v8467_v34 = vcombine.high %v230_v48, %v234_v53 }
 0x23a   :  { %v8451_v27 = vcombine.high %v214_v23, %v218_v40  ;;  %v8450_v38 = vcombine.low %v214_v23, %v218_v40  ;;  %v9105_v59 = vcombine.high %v869_v45, %v873_v46  ;;  %v877_v62 = vld [vmem:[#allocation6 + $0x1708] sm:$0xff]  ;;  %v238_v3 = vld [vmem:[#allocation6 + $0x310] sm:$0xff]  ;;  %v9104_v5 = vcombine.low %v869_v45, %v873_v46 }
 0x23b   :  { %6830 = vmatpush1.bf16.msra.mxu1 %v9064_v44  ;;  %v881_v0 = vld [vmem:[#allocation6 + $0x1728] sm:$0xff]  ;;  %v242_v58 = vld [vmem:[#allocation6 + $0x330] sm:$0xff]  ;;  %v8466_v44 = vcombine.low %v230_v48, %v234_v53 }
 0x23c   :  { %6953 = vmatpush1.bf16.msra.mxu0 %v8426_v10  ;;  %6831 = vmatprep.subr.bf16.mxu1 %v9073_v1  ;;  %v9113_v9 = vcombine.high %v877_v62, %v881_v0  ;;  %v8475_v10 = vcombine.high %v238_v3, %v242_v58  ;;  %v885_v1 = vld [vmem:[#allocation6 + $0x1748] sm:$0xff]  ;;  %v250_v6 = vld [vmem:[#allocation6 + $0x370] sm:$0xff]  ;;  %v9112_v47 = vcombine.low %v877_v62, %v881_v0 }
 0x23d   :  { %6954 = vmatprep.subr.bf16.mxu0 %v8435_v52  ;;  %v889_v11 = vld [vmem:[#allocation6 + $0x1768] sm:$0xff]  ;;  %v246_v52 = vld [vmem:[#allocation6 + $0x350] sm:$0xff]  ;;  %v8474_v14 = vcombine.low %v238_v3, %v242_v58 }
 0x23e   :  { %v9121_v15 = vcombine.high %v885_v1, %v889_v11  ;;  %v8483_v17 = vcombine.high %v246_v52, %v250_v6  ;;  %v9120_v20 = vcombine.low %v885_v1, %v889_v11  ;;  %v8482_v22 = vcombine.low %v246_v52, %v250_v6 }
 0x23f   :  { %6832 = vmatpush1.bf16.msra.mxu1 %v9072_v18  ;;  %v893_v18 = vld [vmem:[#allocation6 + $0x1788] sm:$0xff] }
 0x240   :  { %6955 = vmatpush1.bf16.msra.mxu0 %v8434_v60  ;;  %6833 = vmatprep.subr.bf16.mxu1 %v9081_v56  ;;  %v897_v60 = vld [vmem:[#allocation6 + $0x17a8] sm:$0xff]  ;;  %v254_v56 = vld [vmem:[#allocation6 + $0x390] sm:$0xff] }
 0x241   :  { %6956 = vmatprep.subr.bf16.mxu0 %v8443_v19  ;;  %v258_v19 = vld [vmem:[#allocation6 + $0x3b0] sm:$0xff]  ;;  %v9129_v23 = vcombine.high %v893_v18, %v897_v60  ;;  %v9128_v29 = vcombine.low %v893_v18, %v897_v60 }
 0x242   :  { %v8491_v40 = vcombine.high %v254_v56, %v258_v19  ;;  %v8490_v30 = vcombine.low %v254_v56, %v258_v19 }
 0x243   :  { %6834 = vmatpush1.bf16.msra.mxu1 %v9080_v24  ;;  %v901_v24 = vld [vmem:[#allocation6 + $0x17c8] sm:$0xff] }
 0x244   :  { %6957 = vmatpush1.bf16.msra.mxu0 %v8442_v25  ;;  %6835 = vmatprep.subr.bf16.mxu1 %v9089_v26  ;;  %v905_v25 = vld [vmem:[#allocation6 + $0x17e8] sm:$0xff]  ;;  %v262_v26 = vld [vmem:[#allocation6 + $0x3d0] sm:$0xff] }
 0x245   :  { %6958 = vmatprep.subr.bf16.mxu0 %v8451_v27  ;;  %v266_v27 = vld [vmem:[#allocation6 + $0x3f0] sm:$0xff]  ;;  %v9137_v33 = vcombine.high %v901_v24, %v905_v25  ;;  %v9136_v45 = vcombine.low %v901_v24, %v905_v25 }
 0x246   :  { %v8499_v35 = vcombine.high %v262_v26, %v266_v27  ;;  %v8498_v46 = vcombine.low %v262_v26, %v266_v27 }
 0x247   :  { %6836 = vmatpush1.bf16.msra.mxu1 %v9088_v36  ;;  %v1037_v36 = vld [vmem:[#allocation6 + $0x1c08] sm:$0xff] }
 0x248   :  { %6959 = vmatpush1.bf16.msra.mxu0 %v8450_v38  ;;  %6837 = vmatprep.subr.bf16.mxu1 %v9097_v42  ;;  %v1041_v38 = vld [vmem:[#allocation6 + $0x1c28] sm:$0xff]  ;;  %v398_v42 = vld [vmem:[#allocation6 + $0x810] sm:$0xff] }
 0x249   :  { %6960 = vmatprep.subr.bf16.mxu0 %v8459_v43  ;;  %v402_v43 = vld [vmem:[#allocation6 + $0x830] sm:$0xff]  ;;  %v9273_v48 = vcombine.high %v1037_v36, %v1041_v38  ;;  %v9272_v62 = vcombine.low %v1037_v36, %v1041_v38 }
 0x24a   :  { %v8635_v53 = vcombine.high %v398_v42, %v402_v43  ;;  %v8634_v0 = vcombine.low %v398_v42, %v402_v43 }
 0x24b   :  { %6838 = vmatpush1.bf16.msra.mxu1 %v9096_v54  ;;  %v1045_v54 = vld [vmem:[#allocation6 + $0x1c48] sm:$0xff] }
 0x24c   :  { %6961 = vmatpush1.bf16.msra.mxu0 %v8458_v55  ;;  %6839 = vmatprep.subr.bf16.mxu1 %v9105_v59  ;;  %v1049_v55 = vld [vmem:[#allocation6 + $0x1c68] sm:$0xff]  ;;  %v406_v59 = vld [vmem:[#allocation6 + $0x850] sm:$0xff] }
 0x24d   :  { %6962 = vmatprep.subr.bf16.mxu0 %v8467_v34  ;;  %v410_v34 = vld [vmem:[#allocation6 + $0x870] sm:$0xff]  ;;  %v9281_v3 = vcombine.high %v1045_v54, %v1049_v55  ;;  %v9280_v1 = vcombine.low %v1045_v54, %v1049_v55 }
 0x24e   :  { %v8643_v58 = vcombine.high %v406_v59, %v410_v34  ;;  %v8642_v11 = vcombine.low %v406_v59, %v410_v34 }
 0x24f   :  { %6840 = vmatpush1.bf16.msra.mxu1 %v9104_v5  ;;  %v1053_v5 = vld [vmem:[#allocation6 + $0x1c88] sm:$0xff] }
 0x250   :  { %6963 = vmatpush1.bf16.msra.mxu0 %v8466_v44  ;;  %6841 = vmatprep.subr.bf16.mxu1 %v9113_v9  ;;  %v1057_v44 = vld [vmem:[#allocation6 + $0x1ca8] sm:$0xff]  ;;  %v414_v9 = vld [vmem:[#allocation6 + $0x890] sm:$0xff] }
 0x251   :  { %6964 = vmatprep.subr.bf16.mxu0 %v8475_v10  ;;  %v418_v10 = vld [vmem:[#allocation6 + $0x8b0] sm:$0xff]  ;;  %v9289_v52 = vcombine.high %v1053_v5, %v1057_v44  ;;  %v9288_v18 = vcombine.low %v1053_v5, %v1057_v44 }
 0x252   :  { %v8651_v6 = vcombine.high %v414_v9, %v418_v10  ;;  %v8650_v60 = vcombine.low %v414_v9, %v418_v10  ;;  %v454_v44 = vld [vmem:[#allocation6 + $0x9d0] sm:$0xff] }
 0x253   :  { %6842 = vmatpush1.bf16.msra.mxu1 %v9112_v47  ;;  %v1061_v47 = vld [vmem:[#allocation6 + $0x1cc8] sm:$0xff]  ;;  %v458_v9 = vld [vmem:[#allocation6 + $0x9f0] sm:$0xff] }
 0x254   :  { %6965 = vmatpush1.bf16.msra.mxu0 %v8474_v14  ;;  %6843 = vmatprep.subr.bf16.mxu1 %v9121_v15  ;;  %v1065_v14 = vld [vmem:[#allocation6 + $0x1ce8] sm:$0xff]  ;;  %v422_v15 = vld [vmem:[#allocation6 + $0x8d0] sm:$0xff] }
 0x255   :  { %6966 = vmatprep.subr.bf16.mxu0 %v8483_v17  ;;  %v426_v17 = vld [vmem:[#allocation6 + $0x8f0] sm:$0xff]  ;;  %v9297_v56 = vcombine.high %v1061_v47, %v1065_v14  ;;  %v9296_v24 = vcombine.low %v1061_v47, %v1065_v14 }
 0x256   :  { %v8659_v19 = vcombine.high %v422_v15, %v426_v17  ;;  %v8658_v25 = vcombine.low %v422_v15, %v426_v17  ;;  %v8691_v17 = vcombine.high %v454_v44, %v458_v9 }
 0x257   :  { %6844 = vmatpush1.bf16.msra.mxu1 %v9120_v20  ;;  %v1069_v20 = vld [vmem:[#allocation6 + $0x1d08] sm:$0xff] }
 0x258   :  { %6967 = vmatpush1.bf16.msra.mxu0 %v8482_v22  ;;  %6845 = vmatprep.subr.bf16.mxu1 %v9129_v23  ;;  %v1073_v22 = vld [vmem:[#allocation6 + $0x1d28] sm:$0xff]  ;;  %v430_v23 = vld [vmem:[#allocation6 + $0x910] sm:$0xff] }
 0x259   :  { %6968 = vmatprep.subr.bf16.mxu0 %v8491_v40  ;;  %v434_v40 = vld [vmem:[#allocation6 + $0x930] sm:$0xff]  ;;  %v9305_v26 = vcombine.high %v1069_v20, %v1073_v22  ;;  %v9304_v36 = vcombine.low %v1069_v20, %v1073_v22  ;;  %v8690_v22 = vcombine.low %v454_v44, %v458_v9  ;;  %v1133_v44 = vld [vmem:[#allocation6 + $0x1f08] sm:$0xff] }
 0x25a   :  { %v8667_v27 = vcombine.high %v430_v23, %v434_v40  ;;  %v8666_v38 = vcombine.low %v430_v23, %v434_v40  ;;  %v466_v20 = vld [vmem:[#allocation6 + $0xa30] sm:$0xff]  ;;  %v1137_v9 = vld [vmem:[#allocation6 + $0x1f28] sm:$0xff] }
 0x25b   :  { %6846 = vmatpush1.bf16.msra.mxu1 %v9128_v29  ;;  %v1077_v29 = vld [vmem:[#allocation6 + $0x1d48] sm:$0xff] }
 0x25c   :  { %6969 = vmatpush1.bf16.msra.mxu0 %v8490_v30  ;;  %6847 = vmatprep.subr.bf16.mxu1 %v9137_v33  ;;  %v1081_v30 = vld [vmem:[#allocation6 + $0x1d68] sm:$0xff]  ;;  %v438_v33 = vld [vmem:[#allocation6 + $0x950] sm:$0xff] }
 0x25d   :  { %6970 = vmatprep.subr.bf16.mxu0 %v8499_v35  ;;  %v442_v35 = vld [vmem:[#allocation6 + $0x970] sm:$0xff]  ;;  %v9313_v42 = vcombine.high %v1077_v29, %v1081_v30  ;;  %v9312_v54 = vcombine.low %v1077_v29, %v1081_v30 }
 0x25e   :  { %v8675_v43 = vcombine.high %v438_v33, %v442_v35  ;;  %v8674_v55 = vcombine.low %v438_v33, %v442_v35 }
 0x25f   :  { %6848 = vmatpush1.bf16.msra.mxu1 %v9136_v45  ;;  %v1085_v45 = vld [vmem:[#allocation6 + $0x1d88] sm:$0xff] }
 0x260   :  { %6971 = vmatpush1.bf16.msra.mxu0 %v8498_v46  ;;  %6899 = vmatprep.subr.bf16.mxu1 %v9273_v48  ;;  %v1089_v46 = vld [vmem:[#allocation6 + $0x1da8] sm:$0xff]  ;;  %v446_v48 = vld [vmem:[#allocation6 + $0x990] sm:$0xff] }
 0x261   :  { %7022 = vmatprep.subr.bf16.mxu0 %v8635_v53  ;;  %v450_v53 = vld [vmem:[#allocation6 + $0x9b0] sm:$0xff]  ;;  %v9321_v59 = vcombine.high %v1085_v45, %v1089_v46 }
 0x262   :  { %6850 = vmatmul.mubr.bf16.vlgmr.msra.gmra.mrb[28].mxu1 %v10273_v37  ;;  %v8682_v14 = vcombine.low %v446_v48, %v450_v53 }
 0x263   :  { %6900 = vmatpush1.bf16.msra.mxu1 %v9272_v62  ;;  %6973 = vmatmul.mubr.bf16.vlgmr.msra.gmra.mrb[28].mxu0 %v10239_v16  ;;  %v8683_v62 = vcombine.high %v446_v48, %v450_v53 }
 0x264   :  { %7023 = vmatpush1.bf16.msra.mxu0 %v8634_v0  ;;  %6901 = vmatprep.subr.bf16.mxu1 %v9281_v3  ;;  %v1093_v0 = vld [vmem:[#allocation6 + $0x1dc8] sm:$0xff] }
 0x265   :  { %7024 = vmatprep.subr.bf16.mxu0 %v8643_v58  ;;  %6931 = vmatprep.mubr.bf16.mxu1 %v10275_v49  ;;  %v1097_v3 = vld [vmem:[#allocation6 + $0x1de8] sm:$0xff] }
 0x266   :  { %7054 = vmatprep.mubr.bf16.mxu0 %v10235_v61  ;;  %v9329_v15 = vcombine.high %v1093_v0, %v1097_v3 }
 0x267   :  { %6902 = vmatpush1.bf16.msra.mxu1 %v9280_v1 }
 0x268   :  { %7025 = vmatpush1.bf16.msra.mxu0 %v8642_v11  ;;  %6903 = vmatprep.subr.bf16.mxu1 %v9289_v52  ;;  %v9320_v52 = vcombine.low %v1085_v45, %v1089_v46 }
 0x269   :  { %7026 = vmatprep.subr.bf16.mxu0 %v8651_v6 }
 0x26b   :  { %6904 = vmatpush1.bf16.msra.mxu1 %v9288_v18  ;;  %v1101_v18 = vld [vmem:[#allocation6 + $0x1e08] sm:$0xff] }
 0x26c   :  { %7027 = vmatpush1.bf16.msra.mxu0 %v8650_v60  ;;  %6905 = vmatprep.subr.bf16.mxu1 %v9297_v56  ;;  %v1105_v60 = vld [vmem:[#allocation6 + $0x1e28] sm:$0xff] }
 0x26d   :  { %7028 = vmatprep.subr.bf16.mxu0 %v8659_v19  ;;  %v462_v19 = vld [vmem:[#allocation6 + $0xa10] sm:$0xff]  ;;  %v9337_v23 = vcombine.high %v1101_v18, %v1105_v60  ;;  %v9336_v29 = vcombine.low %v1101_v18, %v1105_v60  ;;  %v1145_v18 = vld [vmem:[#allocation6 + $0x1f68] sm:$0xff] }
 0x26e   :  { %v8699_v40 = vcombine.high %v462_v19, %v466_v20  ;;  %v8698_v30 = vcombine.low %v462_v19, %v466_v20  ;;  %v502_v60 = vld [vmem:[#allocation6 + $0xb50] sm:$0xff]  ;;  %v9368_v19 = vcombine.low %v1133_v44, %v1137_v9 }
 0x26f   :  { %6906 = vmatpush1.bf16.msra.mxu1 %v9296_v24  ;;  %v1109_v24 = vld [vmem:[#allocation6 + $0x1e48] sm:$0xff] }
 0x270   :  { %7029 = vmatpush1.bf16.msra.mxu0 %v8658_v25  ;;  %6907 = vmatprep.subr.bf16.mxu1 %v9305_v26  ;;  %v1113_v25 = vld [vmem:[#allocation6 + $0x1e68] sm:$0xff]  ;;  %v470_v26 = vld [vmem:[#allocation6 + $0xa50] sm:$0xff] }
 0x271   :  { %7030 = vmatprep.subr.bf16.mxu0 %v8667_v27  ;;  %v474_v27 = vld [vmem:[#allocation6 + $0xa70] sm:$0xff]  ;;  %v9345_v33 = vcombine.high %v1109_v24, %v1113_v25  ;;  %v9344_v45 = vcombine.low %v1109_v24, %v1113_v25 }
 0x272   :  { %v8707_v35 = vcombine.high %v470_v26, %v474_v27  ;;  %v8706_v46 = vcombine.low %v470_v26, %v474_v27  ;;  %v510_v24 = vld [vmem:[#allocation6 + $0xb90] sm:$0xff] }
 0x273   :  { %6908 = vmatpush1.bf16.msra.mxu1 %v9304_v36  ;;  %v1117_v36 = vld [vmem:[#allocation6 + $0x1e88] sm:$0xff]  ;;  %v514_v25 = vld [vmem:[#allocation6 + $0xbb0] sm:$0xff] }
 0x274   :  { %7031 = vmatpush1.bf16.msra.mxu0 %v8666_v38  ;;  %6909 = vmatprep.subr.bf16.mxu1 %v9313_v42  ;;  %v1121_v38 = vld [vmem:[#allocation6 + $0x1ea8] sm:$0xff]  ;;  %v478_v42 = vld [vmem:[#allocation6 + $0xa90] sm:$0xff] }
 0x275   :  { %v6605_v34 = vpop.f32.mrb[16].mxu1  ;;  %7032 = vmatprep.subr.bf16.mxu0 %v8675_v43  ;;  %v482_v43 = vld [vmem:[#allocation6 + $0xab0] sm:$0xff]  ;;  %v9353_v48 = vcombine.high %v1117_v36, %v1121_v38 }
 0x276   :  { %v10344_v58 = vadd.f32 %v6605_v34, %v10334_v8  ;;  %v6607_v5 = vpop.f32.mrb[17].mxu1  ;;  %v10346_v10 = vpop.f32.mrb[16].mxu0  ;;  %v8715_v53 = vcombine.high %v478_v42, %v482_v43  ;;  %v490_v34 = vld [vmem:[#allocation6 + $0xaf0] sm:$0xff] }
 0x277   :  { %v10349_v1 = vadd.f32 %v6607_v5, %v10337_v12  ;;  %v6609_v11 = vpop.f32.mrb[18].mxu1  ;;  %6910 = vmatpush1.bf16.msra.mxu1 %v9312_v54  ;;  %v10351_v6 = vpop.f32.mrb[17].mxu0  ;;  %v9328_v12 = vcombine.low %v1093_v0, %v1097_v3  ;;  %v1125_v54 = vld [vmem:[#allocation6 + $0x1ec8] sm:$0xff]  ;;  %v8714_v0 = vcombine.low %v478_v42, %v482_v43  ;;  %v8746_v43 = vcombine.low %v510_v24, %v514_v25 }
 0x278   :  { %7033 = vmatpush1.bf16.msra.mxu0 %v8674_v55  ;;  %v6610_v47 = vpop.f32.mrb[19].mxu1  ;;  %6911 = vmatprep.subr.bf16.mxu1 %v9321_v59  ;;  %v6732_v8 = vpop.f32.mrb[18].mxu0  ;;  %v1129_v55 = vld [vmem:[#allocation6 + $0x1ee8] sm:$0xff]  ;;  %v486_v59 = vld [vmem:[#allocation6 + $0xad0] sm:$0xff] }
 0x279   :  { %7034 = vmatprep.subr.bf16.mxu0 %v8683_v62  ;;  %v6733_v56 = vpop.f32.mrb[19].mxu0  ;;  %v9352_v62 = vcombine.low %v1117_v36, %v1121_v38  ;;  %v9361_v3 = vcombine.high %v1125_v54, %v1129_v55  ;;  %v8723_v5 = vcombine.high %v486_v59, %v490_v34  ;;  %v494_v11 = vld [vmem:[#allocation6 + $0xb10] sm:$0xff]  ;;  %v9360_v47 = vcombine.low %v1125_v54, %v1129_v55 }
 0x27a   :  { %v506_v56 = vld [vmem:[#allocation6 + $0xb70] sm:$0xff] }
 0x27b   :  { %6912 = vmatpush1.bf16.msra.mxu1 %v9320_v52  ;;  %v498_v52 = vld [vmem:[#allocation6 + $0xb30] sm:$0xff]  ;;  %v8738_v27 = vcombine.low %v502_v60, %v506_v56 }
 0x27c   :  { %7035 = vmatpush1.bf16.msra.mxu0 %v8682_v14  ;;  %6913 = vmatprep.subr.bf16.mxu1 %v9329_v15  ;;  %v8722_v14 = vcombine.low %v486_v59, %v490_v34  ;;  %v9369_v15 = vcombine.high %v1133_v44, %v1137_v9  ;;  %v8731_v8 = vcombine.high %v494_v11, %v498_v52  ;;  %v518_v36 = vld [vmem:[#allocation6 + $0xbd0] sm:$0xff] }
 0x27d   :  { %7036 = vmatprep.subr.bf16.mxu0 %v8691_v17  ;;  %v1141_v17 = vld [vmem:[#allocation6 + $0x1f48] sm:$0xff]  ;;  %v8730_v20 = vcombine.low %v494_v11, %v498_v52  ;;  %v522_v38 = vld [vmem:[#allocation6 + $0xbf0] sm:$0xff] }
 0x27e   :  { %v9376_v26 = vcombine.low %v1141_v17, %v1145_v18  ;;  %v654_v54 = vld [vmem:[#allocation6 + $0x1010] sm:$0xff]  ;;  %v8754_v34 = vcombine.low %v518_v36, %v522_v38 }
 0x27f   :  { %6914 = vmatpush1.bf16.msra.mxu1 %v9328_v12  ;;  %v9377_v12 = vcombine.high %v1141_v17, %v1145_v18  ;;  %v658_v55 = vld [vmem:[#allocation6 + $0x1030] sm:$0xff] }
 0x280   :  { %7037 = vmatpush1.bf16.msra.mxu0 %v8690_v22  ;;  %6915 = vmatprep.subr.bf16.mxu1 %v9337_v23  ;;  %v8739_v22 = vcombine.high %v502_v60, %v506_v56  ;;  %v1149_v23 = vld [vmem:[#allocation6 + $0x1f88] sm:$0xff]  ;;  %v662_v44 = vld [vmem:[#allocation6 + $0x1050] sm:$0xff]  ;;  %v8890_v52 = vcombine.low %v654_v54, %v658_v55 }
 0x281   :  { %7038 = vmatprep.subr.bf16.mxu0 %v8699_v40  ;;  %v1153_v40 = vld [vmem:[#allocation6 + $0x1fa8] sm:$0xff]  ;;  %v666_v9 = vld [vmem:[#allocation6 + $0x1070] sm:$0xff] }
 0x282   :  { %v9384_v42 = vcombine.low %v1149_v23, %v1153_v40  ;;  %v670_v17 = vld [vmem:[#allocation6 + $0x1090] sm:$0xff]  ;;  %v8898_v56 = vcombine.low %v662_v44, %v666_v9 }
 0x283   :  { %6916 = vmatpush1.bf16.msra.mxu1 %v9336_v29  ;;  %v9385_v29 = vcombine.high %v1149_v23, %v1153_v40  ;;  %v674_v18 = vld [vmem:[#allocation6 + $0x10b0] sm:$0xff] }
 0x284   :  { %7039 = vmatpush1.bf16.msra.mxu0 %v8698_v30  ;;  %6917 = vmatprep.subr.bf16.mxu1 %v9345_v33  ;;  %v8747_v30 = vcombine.high %v510_v24, %v514_v25  ;;  %v1157_v33 = vld [vmem:[#allocation6 + $0x1fc8] sm:$0xff]  ;;  %v678_v23 = vld [vmem:[#allocation6 + $0x10d0] sm:$0xff]  ;;  %v8906_v25 = vcombine.low %v670_v17, %v674_v18 }
 0x285   :  { %7040 = vmatprep.subr.bf16.mxu0 %v8707_v35  ;;  %v1161_v35 = vld [vmem:[#allocation6 + $0x1fe8] sm:$0xff]  ;;  %v682_v40 = vld [vmem:[#allocation6 + $0x10f0] sm:$0xff] }
 0x286   :  { %v9392_v59 = vcombine.low %v1157_v33, %v1161_v35 }
 0x287   :  { %6918 = vmatpush1.bf16.msra.mxu1 %v9344_v45  ;;  %v9393_v45 = vcombine.high %v1157_v33, %v1161_v35  ;;  %v686_v33 = vld [vmem:[#allocation6 + $0x1110] sm:$0xff] }
 0x288   :  { %7041 = vmatpush1.bf16.msra.mxu0 %v8706_v46  ;;  %6919 = vmatprep.subr.bf16.mxu1 %v9353_v48  ;;  %v8755_v46 = vcombine.high %v518_v36, %v522_v38  ;;  %v270_v48 = vld [vmem:[#allocation6 + $0x410] sm:$0xff]  ;;  %v8914_v38 = vcombine.low %v678_v23, %v682_v40 }
 0x289   :  { %7042 = vmatprep.subr.bf16.mxu0 %v8715_v53  ;;  %v274_v53 = vld [vmem:[#allocation6 + $0x430] sm:$0xff] }
 0x28a   :  { %v8506_v11 = vcombine.low %v270_v48, %v274_v53  ;;  %v690_v35 = vld [vmem:[#allocation6 + $0x1130] sm:$0xff] }
 0x28b   :  { %6920 = vmatpush1.bf16.msra.mxu1 %v9352_v62  ;;  %v8507_v62 = vcombine.high %v270_v48, %v274_v53  ;;  %v694_v48 = vld [vmem:[#allocation6 + $0x1150] sm:$0xff] }
 0x28c   :  { %7043 = vmatpush1.bf16.msra.mxu0 %v8714_v0  ;;  %6921 = vmatprep.subr.bf16.mxu1 %v9361_v3  ;;  %v8891_v0 = vcombine.high %v654_v54, %v658_v55  ;;  %v278_v3 = vld [vmem:[#allocation6 + $0x450] sm:$0xff]  ;;  %v8922_v55 = vcombine.low %v686_v33, %v690_v35 }
 0x28d   :  { %7044 = vmatprep.subr.bf16.mxu0 %v8723_v5  ;;  %v282_v5 = vld [vmem:[#allocation6 + $0x470] sm:$0xff] }
 0x28e   :  { %v8514_v60 = vcombine.low %v278_v3, %v282_v5  ;;  %v698_v53 = vld [vmem:[#allocation6 + $0x1170] sm:$0xff] }
 0x28f   :  { %6922 = vmatpush1.bf16.msra.mxu1 %v9360_v47  ;;  %v8515_v47 = vcombine.high %v278_v3, %v282_v5  ;;  %v702_v3 = vld [vmem:[#allocation6 + $0x1190] sm:$0xff] }
 0x290   :  { %7045 = vmatpush1.bf16.msra.mxu0 %v8722_v14  ;;  %6923 = vmatprep.subr.bf16.mxu1 %v9369_v15  ;;  %v8899_v14 = vcombine.high %v662_v44, %v666_v9  ;;  %v286_v15 = vld [vmem:[#allocation6 + $0x490] sm:$0xff]  ;;  %v8930_v9 = vcombine.low %v694_v48, %v698_v53 }
 0x291   :  { %7046 = vmatprep.subr.bf16.mxu0 %v8731_v8  ;;  %v290_v8 = vld [vmem:[#allocation6 + $0x4b0] sm:$0xff] }
 0x292   :  { %v8522_v24 = vcombine.low %v286_v15, %v290_v8  ;;  %v706_v5 = vld [vmem:[#allocation6 + $0x11b0] sm:$0xff] }
 0x293   :  { %6924 = vmatpush1.bf16.msra.mxu1 %v9368_v19  ;;  %v8523_v19 = vcombine.high %v286_v15, %v290_v8  ;;  %v330_v15 = vld [vmem:[#allocation6 + $0x5f0] sm:$0xff] }
 0x294   :  { %7047 = vmatpush1.bf16.msra.mxu0 %v8730_v20  ;;  %6925 = vmatprep.subr.bf16.mxu1 %v9377_v12  ;;  %v8907_v20 = vcombine.high %v670_v17, %v674_v18  ;;  %v294_v12 = vld [vmem:[#allocation6 + $0x4d0] sm:$0xff] }
 0x295   :  { %7048 = vmatprep.subr.bf16.mxu0 %v8739_v22  ;;  %v298_v22 = vld [vmem:[#allocation6 + $0x4f0] sm:$0xff] }
 0x296   :  { %v8530_v36 = vcombine.low %v294_v12, %v298_v22  ;;  %v710_v18 = vld [vmem:[#allocation6 + $0x11d0] sm:$0xff] }
 0x297   :  { %6926 = vmatpush1.bf16.msra.mxu1 %v9376_v26  ;;  %v8531_v26 = vcombine.high %v294_v12, %v298_v22 }
 0x298   :  { %7049 = vmatpush1.bf16.msra.mxu0 %v8738_v27  ;;  %6927 = vmatprep.subr.bf16.mxu1 %v9385_v29  ;;  %v8915_v27 = vcombine.high %v678_v23, %v682_v40  ;;  %v302_v29 = vld [vmem:[#allocation6 + $0x510] sm:$0xff] }
 0x299   :  { %7050 = vmatprep.subr.bf16.mxu0 %v8747_v30  ;;  %v306_v30 = vld [vmem:[#allocation6 + $0x530] sm:$0xff] }
 0x29a   :  { %v8538_v54 = vcombine.low %v302_v29, %v306_v30 }
 0x29b   :  { %6928 = vmatpush1.bf16.msra.mxu1 %v9384_v42  ;;  %v8539_v42 = vcombine.high %v302_v29, %v306_v30  ;;  %v338_v29 = vld [vmem:[#allocation6 + $0x630] sm:$0xff] }
 0x29c   :  { %7051 = vmatpush1.bf16.msra.mxu0 %v8746_v43  ;;  %6929 = vmatprep.subr.bf16.mxu1 %v9393_v45  ;;  %v8923_v43 = vcombine.high %v686_v33, %v690_v35  ;;  %v310_v45 = vld [vmem:[#allocation6 + $0x550] sm:$0xff] }
 0x29d   :  { %7052 = vmatprep.subr.bf16.mxu0 %v8755_v46  ;;  %v314_v46 = vld [vmem:[#allocation6 + $0x570] sm:$0xff] }
 0x29e   :  { %v8546_v44 = vcombine.low %v310_v45, %v314_v46  ;;  %v718_v33 = vld [vmem:[#allocation6 + $0x1210] sm:$0xff] }
 0x29f   :  { %6930 = vmatpush1.bf16.msra.mxu1 %v9392_v59  ;;  %v8547_v59 = vcombine.high %v310_v45, %v314_v46  ;;  %v722_v35 = vld [vmem:[#allocation6 + $0x1230] sm:$0xff] }
 0x2a0   :  { %7053 = vmatpush1.bf16.msra.mxu0 %v8754_v34  ;;  %6981 = vmatprep.subr.bf16.mxu1 %v8507_v62  ;;  %v8931_v34 = vcombine.high %v694_v48, %v698_v53  ;;  %v318_v62 = vld [vmem:[#allocation6 + $0x590] sm:$0xff]  ;;  %v8954_v53 = vcombine.low %v718_v33, %v722_v35 }
 0x2a1   :  { %7104 = vmatprep.subr.bf16.mxu0 %v8891_v0  ;;  %v322_v0 = vld [vmem:[#allocation6 + $0x5b0] sm:$0xff] }
 0x2a2   :  { %6932 = vmatmul.mubr.bf16.vlgmr.msra.gmra.mrb[32].mxu1 %v10289_v32  ;;  %v8554_v12 = vcombine.low %v318_v62, %v322_v0  ;;  %v346_v45 = vld [vmem:[#allocation6 + $0x670] sm:$0xff] }
 0x2a3   :  { %6982 = vmatpush1.bf16.msra.mxu1 %v8506_v11  ;;  %7055 = vmatmul.mubr.bf16.vlgmr.msra.gmra.mrb[32].mxu0 %v10241_v21  ;;  %v8555_v11 = vcombine.high %v318_v62, %v322_v0  ;;  %v726_v46 = vld [vmem:[#allocation6 + $0x1250] sm:$0xff] }
 0x2a4   :  { %7105 = vmatpush1.bf16.msra.mxu0 %v8890_v52  ;;  %6983 = vmatprep.subr.bf16.mxu1 %v8515_v47  ;;  %v8939_v47 = vcombine.high %v702_v3, %v706_v5  ;;  %v734_v62 = vld [vmem:[#allocation6 + $0x1290] sm:$0xff] }
 0x2a5   :  { %7106 = vmatprep.subr.bf16.mxu0 %v8899_v14  ;;  %7013 = vmatprep.mubr.bf16.mxu1 %v10243_v28  ;;  %v326_v14 = vld [vmem:[#allocation6 + $0x5d0] sm:$0xff] }
 0x2a6   :  { %7136 = vmatprep.mubr.bf16.mxu0 %v10246_v31  ;;  %v738_v0 = vld [vmem:[#allocation6 + $0x12b0] sm:$0xff] }
 0x2a7   :  { %6984 = vmatpush1.bf16.msra.mxu1 %v8514_v60  ;;  %v714_v60 = vld [vmem:[#allocation6 + $0x11f0] sm:$0xff] }
 0x2a8   :  { %7107 = vmatpush1.bf16.msra.mxu0 %v8898_v56  ;;  %6985 = vmatprep.subr.bf16.mxu1 %v8523_v19 }
 0x2a9   :  { %7108 = vmatprep.subr.bf16.mxu0 %v8907_v20 }
 0x2ab   :  { %6986 = vmatpush1.bf16.msra.mxu1 %v8522_v24  ;;  %v8938_v24 = vcombine.low %v702_v3, %v706_v5 }
 0x2ac   :  { %7109 = vmatpush1.bf16.msra.mxu0 %v8906_v25  ;;  %6987 = vmatprep.subr.bf16.mxu1 %v8531_v26 }
 0x2ad   :  { %7110 = vmatprep.subr.bf16.mxu0 %v8915_v27  ;;  %v8947_v27 = vcombine.high %v710_v18, %v714_v60 }
 0x2af   :  { %6988 = vmatpush1.bf16.msra.mxu1 %v8530_v36  ;;  %v8562_v36 = vcombine.low %v326_v14, %v330_v15 }
 0x2b0   :  { %7111 = vmatpush1.bf16.msra.mxu0 %v8914_v38  ;;  %6989 = vmatprep.subr.bf16.mxu1 %v8539_v42  ;;  %v8955_v42 = vcombine.high %v718_v33, %v722_v35 }
 0x2b1   :  { %7112 = vmatprep.subr.bf16.mxu0 %v8923_v43  ;;  %v342_v43 = vld [vmem:[#allocation6 + $0x650] sm:$0xff] }
 0x2b2   :  { %v8578_v3 = vcombine.low %v342_v43, %v346_v45 }
 0x2b3   :  { %6990 = vmatpush1.bf16.msra.mxu1 %v8538_v54  ;;  %v8579_v54 = vcombine.high %v342_v43, %v346_v45  ;;  %v766_v43 = vld [vmem:[#allocation6 + $0x1390] sm:$0xff] }
 0x2b4   :  { %7113 = vmatpush1.bf16.msra.mxu0 %v8922_v55  ;;  %6991 = vmatprep.subr.bf16.mxu1 %v8547_v59  ;;  %v350_v59 = vld [vmem:[#allocation6 + $0x690] sm:$0xff] }
 0x2b5   :  { %v6687_v52 = vpop.f32.mrb[20].mxu1  ;;  %7114 = vmatprep.subr.bf16.mxu0 %v8931_v34  ;;  %v354_v34 = vld [vmem:[#allocation6 + $0x6b0] sm:$0xff] }
 0x2b6   :  { %v6688_v8 = vadd.f32 %v6687_v52, %v10328_v4  ;;  %v6689_v17 = vpop.f32.mrb[21].mxu1  ;;  %v10358_v56 = vpop.f32.mrb[20].mxu0  ;;  %v8563_v4 = vcombine.high %v326_v14, %v330_v15  ;;  %v362_v52 = vld [vmem:[#allocation6 + $0x6f0] sm:$0xff]  ;;  %v8586_v15 = vcombine.low %v350_v59, %v354_v34 }
 0x2b7   :  { %v6690_v19 = vadd.f32 %v6689_v17, %v10331_v63  ;;  %v6691_v20 = vpop.f32.mrb[22].mxu1  ;;  %6992 = vmatpush1.bf16.msra.mxu1 %v8546_v44  ;;  %v10361_v22 = vpop.f32.mrb[21].mxu0  ;;  %v334_v63 = vld [vmem:[#allocation6 + $0x610] sm:$0xff]  ;;  %v8587_v44 = vcombine.high %v350_v59, %v354_v34 }
 0x2b8   :  { %v10364_v23 = vadd.f32 %v10346_v10, %v6688_v8  ;;  %7115 = vmatpush1.bf16.msra.mxu0 %v8930_v9  ;;  %v6692_v40 = vpop.f32.mrb[23].mxu1  ;;  %6993 = vmatprep.subr.bf16.mxu1 %v8555_v11  ;;  %v6814_v25 = vpop.f32.mrb[22].mxu0  ;;  %v8946_v10 = vcombine.low %v710_v18, %v714_v60  ;;  %v8571_v38 = vcombine.high %v334_v63, %v338_v29  ;;  %v358_v11 = vld [vmem:[#allocation6 + $0x6d0] sm:$0xff] }
 0x2b9   :  { %v10367_v26 = vadd.f32 %v10351_v6, %v6690_v19  ;;  %7116 = vmatprep.subr.bf16.mxu0 %v8939_v47  ;;  %v6815_v30 = vpop.f32.mrb[23].mxu0  ;;  %v730_v6 = vld [vmem:[#allocation6 + $0x1270] sm:$0xff]  ;;  %v8570_v48 = vcombine.low %v334_v63, %v338_v29  ;;  %v8971_v9 = vcombine.high %v734_v62, %v738_v0  ;;  %v8970_v8 = vcombine.low %v734_v62, %v738_v0 }
 0x2ba   :  { %v8963_v55 = vcombine.high %v726_v46, %v730_v6  ;;  %v8962_v5 = vcombine.low %v726_v46, %v730_v6  ;;  %v742_v47 = vld [vmem:[#allocation6 + $0x12d0] sm:$0xff]  ;;  %v8595_v17 = vcombine.high %v358_v11, %v362_v52  ;;  %v8594_v40 = vcombine.low %v358_v11, %v362_v52 }
 0x2bb   :  { %6994 = vmatpush1.bf16.msra.mxu1 %v8554_v12  ;;  %v746_v14 = vld [vmem:[#allocation6 + $0x12f0] sm:$0xff] }
 0x2bc   :  { %7117 = vmatpush1.bf16.msra.mxu0 %v8938_v24  ;;  %6995 = vmatprep.subr.bf16.mxu1 %v8563_v4  ;;  %v8979_v18 = vcombine.high %v742_v47, %v746_v14  ;;  %v366_v60 = vld [vmem:[#allocation6 + $0x710] sm:$0xff]  ;;  %v8978_v24 = vcombine.low %v742_v47, %v746_v14 }
 0x2bd   :  { %7118 = vmatprep.subr.bf16.mxu0 %v8947_v27  ;;  %v370_v19 = vld [vmem:[#allocation6 + $0x730] sm:$0xff] }
 0x2be   :  { %v750_v20 = vld [vmem:[#allocation6 + $0x1310] sm:$0xff]  ;;  %v8603_v4 = vcombine.high %v366_v60, %v370_v19  ;;  %v8602_v33 = vcombine.low %v366_v60, %v370_v19 }
 0x2bf   :  { %6996 = vmatpush1.bf16.msra.mxu1 %v8562_v36  ;;  %v754_v12 = vld [vmem:[#allocation6 + $0x1330] sm:$0xff] }
 0x2c0   :  { %7119 = vmatpush1.bf16.msra.mxu0 %v8946_v10  ;;  %6997 = vmatprep.subr.bf16.mxu1 %v8571_v38  ;;  %v8987_v25 = vcombine.high %v750_v20, %v754_v12  ;;  %v374_v27 = vld [vmem:[#allocation6 + $0x750] sm:$0xff]  ;;  %v8986_v35 = vcombine.low %v750_v20, %v754_v12 }
 0x2c1   :  { %7120 = vmatprep.subr.bf16.mxu0 %v8955_v42  ;;  %v378_v63 = vld [vmem:[#allocation6 + $0x770] sm:$0xff] }
 0x2c2   :  { %v758_v29 = vld [vmem:[#allocation6 + $0x1350] sm:$0xff]  ;;  %v8611_v36 = vcombine.high %v374_v27, %v378_v63  ;;  %v8610_v46 = vcombine.low %v374_v27, %v378_v63 }
 0x2c3   :  { %6998 = vmatpush1.bf16.msra.mxu1 %v8570_v48  ;;  %v762_v30 = vld [vmem:[#allocation6 + $0x1370] sm:$0xff] }
 0x2c4   :  { %7121 = vmatpush1.bf16.msra.mxu0 %v8954_v53  ;;  %6999 = vmatprep.subr.bf16.mxu1 %v8579_v54  ;;  %v8995_v10 = vcombine.high %v758_v29, %v762_v30  ;;  %v382_v38 = vld [vmem:[#allocation6 + $0x790] sm:$0xff]  ;;  %v8994_v6 = vcombine.low %v758_v29, %v762_v30 }
 0x2c5   :  { %7122 = vmatprep.subr.bf16.mxu0 %v8963_v55  ;;  %v386_v42 = vld [vmem:[#allocation6 + $0x7b0] sm:$0xff] }
 0x2c6   :  { %v770_v45 = vld [vmem:[#allocation6 + $0x13b0] sm:$0xff]  ;;  %v8619_v48 = vcombine.high %v382_v38, %v386_v42  ;;  %v8618_v62 = vcombine.low %v382_v38, %v386_v42 }
 0x2c7   :  { %7000 = vmatpush1.bf16.msra.mxu1 %v8578_v3  ;;  %v9003_v53 = vcombine.high %v766_v43, %v770_v45  ;;  %v390_v54 = vld [vmem:[#allocation6 + $0x7d0] sm:$0xff]  ;;  %v9002_v0 = vcombine.low %v766_v43, %v770_v45 }
 0x2c8   :  { %7123 = vmatpush1.bf16.msra.mxu0 %v8962_v5  ;;  %7001 = vmatprep.subr.bf16.mxu1 %v8587_v44  ;;  %v394_v55 = vld [vmem:[#allocation6 + $0x7f0] sm:$0xff] }
 0x2c9   :  { %7124 = vmatprep.subr.bf16.mxu0 %v8971_v9  ;;  %v774_v59 = vld [vmem:[#allocation6 + $0x13d0] sm:$0xff]  ;;  %v8627_v3 = vcombine.high %v390_v54, %v394_v55  ;;  %v8626_v47 = vcombine.low %v390_v54, %v394_v55 }
 0x2ca   :  { %v778_v34 = vld [vmem:[#allocation6 + $0x13f0] sm:$0xff] }
 0x2cb   :  { %7002 = vmatpush1.bf16.msra.mxu1 %v8586_v15  ;;  %v9011_v5 = vcombine.high %v774_v59, %v778_v34  ;;  %v526_v44 = vld [vmem:[#allocation6 + $0xc10] sm:$0xff]  ;;  %v9010_v14 = vcombine.low %v774_v59, %v778_v34 }
 0x2cc   :  { %7125 = vmatpush1.bf16.msra.mxu0 %v8970_v8  ;;  %7003 = vmatprep.subr.bf16.mxu1 %v8595_v17  ;;  %v530_v9 = vld [vmem:[#allocation6 + $0xc30] sm:$0xff] }
 0x2cd   :  { %7126 = vmatprep.subr.bf16.mxu0 %v8979_v18  ;;  %v910_v11 = vld [vmem:[#allocation6 + $0x1810] sm:$0xff]  ;;  %v8763_v15 = vcombine.high %v526_v44, %v530_v9  ;;  %v8762_v20 = vcombine.low %v526_v44, %v530_v9 }
 0x2ce   :  { %v914_v52 = vld [vmem:[#allocation6 + $0x1830] sm:$0xff] }
 0x2cf   :  { %7004 = vmatpush1.bf16.msra.mxu1 %v8594_v40  ;;  %v9147_v8 = vcombine.high %v910_v11, %v914_v52  ;;  %v534_v17 = vld [vmem:[#allocation6 + $0xc50] sm:$0xff]  ;;  %v9146_v12 = vcombine.low %v910_v11, %v914_v52 }
 0x2d0   :  { %7127 = vmatpush1.bf16.msra.mxu0 %v8978_v24  ;;  %7005 = vmatprep.subr.bf16.mxu1 %v8603_v4  ;;  %v538_v18 = vld [vmem:[#allocation6 + $0xc70] sm:$0xff] }
 0x2d1   :  { %7128 = vmatprep.subr.bf16.mxu0 %v8987_v25  ;;  %v918_v60 = vld [vmem:[#allocation6 + $0x1850] sm:$0xff]  ;;  %v8771_v40 = vcombine.high %v534_v17, %v538_v18  ;;  %v8770_v29 = vcombine.low %v534_v17, %v538_v18 }
 0x2d2   :  { %v922_v19 = vld [vmem:[#allocation6 + $0x1870] sm:$0xff] }
 0x2d3   :  { %7006 = vmatpush1.bf16.msra.mxu1 %v8602_v33  ;;  %v9155_v24 = vcombine.high %v918_v60, %v922_v19  ;;  %v542_v4 = vld [vmem:[#allocation6 + $0xc90] sm:$0xff]  ;;  %v9154_v30 = vcombine.low %v918_v60, %v922_v19 }
 0x2d4   :  { %7129 = vmatpush1.bf16.msra.mxu0 %v8986_v35  ;;  %7007 = vmatprep.subr.bf16.mxu1 %v8611_v36  ;;  %v546_v25 = vld [vmem:[#allocation6 + $0xcb0] sm:$0xff] }
 0x2d5   :  { %7130 = vmatprep.subr.bf16.mxu0 %v8995_v10  ;;  %v926_v27 = vld [vmem:[#allocation6 + $0x1890] sm:$0xff]  ;;  %v8779_v33 = vcombine.high %v542_v4, %v546_v25  ;;  %v8778_v43 = vcombine.low %v542_v4, %v546_v25 }
 0x2d6   :  { %v930_v63 = vld [vmem:[#allocation6 + $0x18b0] sm:$0xff] }
 0x2d7   :  { %7008 = vmatpush1.bf16.msra.mxu1 %v8610_v46  ;;  %v9163_v35 = vcombine.high %v926_v27, %v930_v63  ;;  %v550_v36 = vld [vmem:[#allocation6 + $0xcd0] sm:$0xff]  ;;  %v9162_v45 = vcombine.low %v926_v27, %v930_v63 }
 0x2d8   :  { %7131 = vmatpush1.bf16.msra.mxu0 %v8994_v6  ;;  %7009 = vmatprep.subr.bf16.mxu1 %v8619_v48  ;;  %v554_v10 = vld [vmem:[#allocation6 + $0xcf0] sm:$0xff] }
 0x2d9   :  { %7132 = vmatprep.subr.bf16.mxu0 %v9003_v53  ;;  %v934_v38 = vld [vmem:[#allocation6 + $0x18d0] sm:$0xff]  ;;  %v8787_v46 = vcombine.high %v550_v36, %v554_v10  ;;  %v8786_v59 = vcombine.low %v550_v36, %v554_v10 }
 0x2da   :  { %v938_v42 = vld [vmem:[#allocation6 + $0x18f0] sm:$0xff] }
 0x2db   :  { %7010 = vmatpush1.bf16.msra.mxu1 %v8618_v62  ;;  %v9171_v6 = vcombine.high %v934_v38, %v938_v42  ;;  %v558_v48 = vld [vmem:[#allocation6 + $0xd10] sm:$0xff]  ;;  %v9170_v34 = vcombine.low %v934_v38, %v938_v42 }
 0x2dc   :  { %7133 = vmatpush1.bf16.msra.mxu0 %v9002_v0  ;;  %7011 = vmatprep.subr.bf16.mxu1 %v8627_v3  ;;  %v562_v53 = vld [vmem:[#allocation6 + $0xd30] sm:$0xff] }
 0x2dd   :  { %7134 = vmatprep.subr.bf16.mxu0 %v9011_v5  ;;  %v942_v54 = vld [vmem:[#allocation6 + $0x1910] sm:$0xff]  ;;  %v8795_v62 = vcombine.high %v558_v48, %v562_v53  ;;  %v8794_v11 = vcombine.low %v558_v48, %v562_v53 }
 0x2de   :  { %v946_v55 = vld [vmem:[#allocation6 + $0x1930] sm:$0xff] }
 0x2df   :  { %7012 = vmatpush1.bf16.msra.mxu1 %v8626_v47  ;;  %v9179_v0 = vcombine.high %v942_v54, %v946_v55  ;;  %v566_v3 = vld [vmem:[#allocation6 + $0xd50] sm:$0xff]  ;;  %v9178_v52 = vcombine.low %v942_v54, %v946_v55 }
 0x2e0   :  { %7135 = vmatpush1.bf16.msra.mxu0 %v9010_v14  ;;  %7063 = vmatprep.subr.bf16.mxu1 %v8763_v15  ;;  %v570_v5 = vld [vmem:[#allocation6 + $0xd70] sm:$0xff] }
 0x2e1   :  { %7186 = vmatprep.subr.bf16.mxu0 %v9147_v8  ;;  %v950_v44 = vld [vmem:[#allocation6 + $0x1950] sm:$0xff]  ;;  %v8803_v47 = vcombine.high %v566_v3, %v570_v5  ;;  %v8802_v60 = vcombine.low %v566_v3, %v570_v5 }
 0x2e2   :  { %7014 = vmatmul.mubr.bf16.vlgmr.msra.gmra.mrb[36].mxu1 %v10251_v39  ;;  %v954_v9 = vld [vmem:[#allocation6 + $0x1970] sm:$0xff] }
 0x2e3   :  { %7064 = vmatpush1.bf16.msra.mxu1 %v8762_v20  ;;  %7137 = vmatmul.mubr.bf16.vlgmr.msra.gmra.mrb[36].mxu0 %v10253_v41  ;;  %v9187_v14 = vcombine.high %v950_v44, %v954_v9  ;;  %v574_v15 = vld [vmem:[#allocation6 + $0xd90] sm:$0xff]  ;;  %v9186_v19 = vcombine.low %v950_v44, %v954_v9 }
 0x2e4   :  { %7187 = vmatpush1.bf16.msra.mxu0 %v9146_v12  ;;  %7065 = vmatprep.subr.bf16.mxu1 %v8771_v40  ;;  %v578_v8 = vld [vmem:[#allocation6 + $0xdb0] sm:$0xff] }
 0x2e5   :  { %7188 = vmatprep.subr.bf16.mxu0 %v9155_v24  ;;  %7095 = vmatprep.mubr.bf16.mxu1 %v10255_v50  ;;  %v958_v17 = vld [vmem:[#allocation6 + $0x1990] sm:$0xff]  ;;  %v8811_v20 = vcombine.high %v574_v15, %v578_v8  ;;  %v8810_v36 = vcombine.low %v574_v15, %v578_v8 }
 0x2e6   :  { %7218 = vmatprep.mubr.bf16.mxu0 %v10258_v51  ;;  %v962_v18 = vld [vmem:[#allocation6 + $0x19b0] sm:$0xff] }
 0x2e7   :  { %7066 = vmatpush1.bf16.msra.mxu1 %v8770_v29  ;;  %v9195_v40 = vcombine.high %v958_v17, %v962_v18  ;;  %v582_v24 = vld [vmem:[#allocation6 + $0xdd0] sm:$0xff] }
 0x2e8   :  { %7189 = vmatpush1.bf16.msra.mxu0 %v9154_v30  ;;  %7067 = vmatprep.subr.bf16.mxu1 %v8779_v33  ;;  %v586_v4 = vld [vmem:[#allocation6 + $0xdf0] sm:$0xff] }
 0x2e9   :  { %7190 = vmatprep.subr.bf16.mxu0 %v9163_v35  ;;  %v966_v63 = vld [vmem:[#allocation6 + $0x19d0] sm:$0xff] }
 0x2ea   :  { %v970_v29 = vld [vmem:[#allocation6 + $0x19f0] sm:$0xff] }
 0x2eb   :  { %7068 = vmatpush1.bf16.msra.mxu1 %v8778_v43  ;;  %v9194_v43 = vcombine.low %v958_v17, %v962_v18  ;;  %v594_v48 = vld [vmem:[#allocation6 + $0xe30] sm:$0xff] }
 0x2ec   :  { %7191 = vmatpush1.bf16.msra.mxu0 %v9162_v45  ;;  %7069 = vmatprep.subr.bf16.mxu1 %v8787_v46  ;;  %v974_v54 = vld [vmem:[#allocation6 + $0x1a10] sm:$0xff] }
 0x2ed   :  { %7192 = vmatprep.subr.bf16.mxu0 %v9171_v6  ;;  %v9203_v6 = vcombine.high %v966_v63, %v970_v29  ;;  %v978_v55 = vld [vmem:[#allocation6 + $0x1a30] sm:$0xff] }
 0x2ee   :  { %v602_v3 = vld [vmem:[#allocation6 + $0xe70] sm:$0xff]  ;;  %v9210_v9 = vcombine.low %v974_v54, %v978_v55 }
 0x2ef   :  { %7070 = vmatpush1.bf16.msra.mxu1 %v8786_v59  ;;  %v8818_v59 = vcombine.low %v582_v24, %v586_v4  ;;  %v982_v5 = vld [vmem:[#allocation6 + $0x1a50] sm:$0xff] }
 0x2f0   :  { %7193 = vmatpush1.bf16.msra.mxu0 %v9170_v34  ;;  %7071 = vmatprep.subr.bf16.mxu1 %v8795_v62  ;;  %v9211_v62 = vcombine.high %v974_v54, %v978_v55  ;;  %v990_v15 = vld [vmem:[#allocation6 + $0x1a90] sm:$0xff] }
 0x2f1   :  { %7194 = vmatprep.subr.bf16.mxu0 %v9179_v0  ;;  %v598_v0 = vld [vmem:[#allocation6 + $0xe50] sm:$0xff] }
 0x2f2   :  { %v994_v8 = vld [vmem:[#allocation6 + $0x1ab0] sm:$0xff]  ;;  %v8834_v17 = vcombine.low %v598_v0, %v602_v3 }
 0x2f3   :  { %7072 = vmatpush1.bf16.msra.mxu1 %v8794_v11  ;;  %v8835_v11 = vcombine.high %v598_v0, %v602_v3  ;;  %v1022_v0 = vld [vmem:[#allocation6 + $0x1b90] sm:$0xff] }
 0x2f4   :  { %7195 = vmatpush1.bf16.msra.mxu0 %v9178_v52  ;;  %7073 = vmatprep.subr.bf16.mxu1 %v8803_v47  ;;  %v606_v47 = vld [vmem:[#allocation6 + $0xe90] sm:$0xff] }
 0x2f5   :  { %v6769_v12 = vpop.f32.mrb[24].mxu1  ;;  %7196 = vmatprep.subr.bf16.mxu0 %v9187_v14  ;;  %v610_v14 = vld [vmem:[#allocation6 + $0xeb0] sm:$0xff] }
 0x2f6   :  { %v6770_v25 = vadd.f32 %v6769_v12, %v10364_v23  ;;  %v6771_v27 = vpop.f32.mrb[25].mxu1  ;;  %v10374_v30 = vpop.f32.mrb[24].mxu0  ;;  %v8819_v23 = vcombine.high %v582_v24, %v586_v4  ;;  %v618_v12 = vld [vmem:[#allocation6 + $0xef0] sm:$0xff]  ;;  %v8842_v4 = vcombine.low %v606_v47, %v610_v14 }
 0x2f7   :  { %v6772_v33 = vadd.f32 %v6771_v27, %v10367_v26  ;;  %v6773_v35 = vpop.f32.mrb[26].mxu1  ;;  %7074 = vmatpush1.bf16.msra.mxu1 %v8802_v60  ;;  %v10377_v10 = vpop.f32.mrb[25].mxu0  ;;  %v590_v26 = vld [vmem:[#allocation6 + $0xe10] sm:$0xff]  ;;  %v8843_v60 = vcombine.high %v606_v47, %v610_v14 }
 0x2f8   :  { %v10380_v38 = vadd.f32 %v10358_v56, %v6770_v25  ;;  %7197 = vmatpush1.bf16.msra.mxu0 %v9186_v19  ;;  %v6774_v42 = vpop.f32.mrb[27].mxu1  ;;  %7075 = vmatprep.subr.bf16.mxu1 %v8811_v20  ;;  %v6896_v45 = vpop.f32.mrb[26].mxu0  ;;  %v9202_v56 = vcombine.low %v966_v63, %v970_v29  ;;  %v8827_v34 = vcombine.high %v590_v26, %v594_v48  ;;  %v614_v20 = vld [vmem:[#allocation6 + $0xed0] sm:$0xff] }
 0x2f9   :  { %v10383_v46 = vadd.f32 %v10361_v22, %v6772_v33  ;;  %7198 = vmatprep.subr.bf16.mxu0 %v9195_v40  ;;  %v6897_v53 = vpop.f32.mrb[27].mxu0  ;;  %v986_v22 = vld [vmem:[#allocation6 + $0x1a70] sm:$0xff]  ;;  %v8826_v44 = vcombine.low %v590_v26, %v594_v48  ;;  %v9227_v19 = vcombine.high %v990_v15, %v994_v8  ;;  %v9226_v25 = vcombine.low %v990_v15, %v994_v8 }
 0x2fa   :  { %v9219_v52 = vcombine.high %v982_v5, %v986_v22  ;;  %v9218_v18 = vcombine.low %v982_v5, %v986_v22  ;;  %v998_v40 = vld [vmem:[#allocation6 + $0x1ad0] sm:$0xff]  ;;  %v8851_v27 = vcombine.high %v614_v20, %v618_v12  ;;  %v8850_v42 = vcombine.low %v614_v20, %v618_v12  ;;  %v143_v20 = vld [vmem:[#allocation6 + $0x18] sm:$0xff] }
 0x2fb   :  { %7076 = vmatpush1.bf16.msra.mxu1 %v8810_v36  ;;  %v1002_v24 = vld [vmem:[#allocation6 + $0x1af0] sm:$0xff]  ;;  %v147_v12 = vld [vmem:[#allocation6 + $0x38] sm:$0xff] }
 0x2fc   :  { %7199 = vmatpush1.bf16.msra.mxu0 %v9194_v43  ;;  %7077 = vmatprep.subr.bf16.mxu1 %v8819_v23  ;;  %v9235_v63 = vcombine.high %v998_v40, %v1002_v24  ;;  %v622_v29 = vld [vmem:[#allocation6 + $0xf10] sm:$0xff]  ;;  %v9234_v43 = vcombine.low %v998_v40, %v1002_v24 }
 0x2fd   :  { %7200 = vmatprep.subr.bf16.mxu0 %v9203_v6  ;;  %v626_v33 = vld [vmem:[#allocation6 + $0xf30] sm:$0xff] }
 0x2fe   :  { %v1006_v35 = vld [vmem:[#allocation6 + $0x1b10] sm:$0xff]  ;;  %v8859_v23 = vcombine.high %v622_v29, %v626_v33  ;;  %v8858_v54 = vcombine.low %v622_v29, %v626_v33  ;;  %v151_v29 = vld [vmem:[#allocation6 + $0x58] sm:$0xff] }
 0x2ff   :  { %7078 = vmatpush1.bf16.msra.mxu1 %v8818_v59  ;;  %v1010_v36 = vld [vmem:[#allocation6 + $0x1b30] sm:$0xff]  ;;  %v155_v33 = vld [vmem:[#allocation6 + $0x78] sm:$0xff] }
 0x300   :  { %7201 = vmatpush1.bf16.msra.mxu0 %v9202_v56  ;;  %7079 = vmatprep.subr.bf16.mxu1 %v8827_v34  ;;  %v9243_v45 = vcombine.high %v1006_v35, %v1010_v36  ;;  %v630_v6 = vld [vmem:[#allocation6 + $0xf50] sm:$0xff]  ;;  %v9242_v55 = vcombine.low %v1006_v35, %v1010_v36  ;;  %v8380_v36 = vcombine.low %v143_v20, %v147_v12 }
 0x301   :  { %7202 = vmatprep.subr.bf16.mxu0 %v9211_v62  ;;  %v634_v26 = vld [vmem:[#allocation6 + $0xf70] sm:$0xff] }
 0x302   :  { %v1014_v48 = vld [vmem:[#allocation6 + $0x1b50] sm:$0xff]  ;;  %v8867_v59 = vcombine.high %v630_v6, %v634_v26  ;;  %v8866_v5 = vcombine.low %v630_v6, %v634_v26  ;;  %v159_v6 = vld [vmem:[#allocation6 + $0x98] sm:$0xff] }
 0x303   :  { %7080 = vmatpush1.bf16.msra.mxu1 %v8826_v44  ;;  %v1018_v53 = vld [vmem:[#allocation6 + $0x1b70] sm:$0xff]  ;;  %v163_v26 = vld [vmem:[#allocation6 + $0xb8] sm:$0xff] }
 0x304   :  { %7203 = vmatpush1.bf16.msra.mxu0 %v9210_v9  ;;  %7081 = vmatprep.subr.bf16.mxu1 %v8835_v11  ;;  %v9251_v56 = vcombine.high %v1014_v48, %v1018_v53  ;;  %v638_v34 = vld [vmem:[#allocation6 + $0xf90] sm:$0xff]  ;;  %v9250_v22 = vcombine.low %v1014_v48, %v1018_v53  ;;  %v8388_v53 = vcombine.low %v151_v29, %v155_v33 }
 0x305   :  { %7204 = vmatprep.subr.bf16.mxu0 %v9219_v52  ;;  %v642_v62 = vld [vmem:[#allocation6 + $0xfb0] sm:$0xff] }
 0x306   :  { %v1026_v3 = vld [vmem:[#allocation6 + $0x1bb0] sm:$0xff]  ;;  %v8875_v44 = vcombine.high %v638_v34, %v642_v62  ;;  %v8874_v15 = vcombine.low %v638_v34, %v642_v62  ;;  %v167_v34 = vld [vmem:[#allocation6 + $0xd8] sm:$0xff] }
 0x307   :  { %7082 = vmatpush1.bf16.msra.mxu1 %v8834_v17  ;;  %v9259_v9 = vcombine.high %v1022_v0, %v1026_v3  ;;  %v646_v11 = vld [vmem:[#allocation6 + $0xfd0] sm:$0xff]  ;;  %v9258_v8 = vcombine.low %v1022_v0, %v1026_v3  ;;  %v171_v62 = vld [vmem:[#allocation6 + $0xf8] sm:$0xff]  ;;  %v8396_v3 = vcombine.low %v159_v6, %v163_v26 }
 0x308   :  { %7205 = vmatpush1.bf16.msra.mxu0 %v9218_v18  ;;  %7083 = vmatprep.subr.bf16.mxu1 %v8843_v60  ;;  %v650_v52 = vld [vmem:[#allocation6 + $0xff0] sm:$0xff] }
 0x309   :  { %7206 = vmatprep.subr.bf16.mxu0 %v9227_v19  ;;  %v1030_v47 = vld [vmem:[#allocation6 + $0x1bd0] sm:$0xff]  ;;  %v8883_v17 = vcombine.high %v646_v11, %v650_v52  ;;  %v8882_v40 = vcombine.low %v646_v11, %v650_v52  ;;  %v175_v11 = vld [vmem:[#allocation6 + $0x118] sm:$0xff] }
 0x30a   :  { %v1034_v14 = vld [vmem:[#allocation6 + $0x1bf0] sm:$0xff]  ;;  %v179_v52 = vld [vmem:[#allocation6 + $0x138] sm:$0xff] }
 0x30b   :  { %7084 = vmatpush1.bf16.msra.mxu1 %v8842_v4  ;;  %v9267_v18 = vcombine.high %v1030_v47, %v1034_v14  ;;  %v782_v60 = vld [vmem:[#allocation6 + $0x1410] sm:$0xff]  ;;  %v9266_v24 = vcombine.low %v1030_v47, %v1034_v14  ;;  %v8404_v14 = vcombine.low %v167_v34, %v171_v62 }
 0x30c   :  { %7207 = vmatpush1.bf16.msra.mxu0 %v9226_v25  ;;  %7085 = vmatprep.subr.bf16.mxu1 %v8851_v27  ;;  %v786_v19 = vld [vmem:[#allocation6 + $0x1430] sm:$0xff]  ;;  %v8381_v25 = vcombine.high %v143_v20, %v147_v12  ;;  %v8412_v20 = vcombine.low %v175_v11, %v179_v52 }
 0x30d   :  { %7208 = vmatprep.subr.bf16.mxu0 %v9235_v63  ;;  %v9019_v4 = vcombine.high %v782_v60, %v786_v19  ;;  %v790_v27 = vld [vmem:[#allocation6 + $0x1450] sm:$0xff]  ;;  %v9018_v35 = vcombine.low %v782_v60, %v786_v19  ;;  %v187_v60 = vld [vmem:[#allocation6 + $0x178] sm:$0xff] }
 0x30e   :  { %v794_v63 = vld [vmem:[#allocation6 + $0x1470] sm:$0xff] }
 0x30f   :  { %7086 = vmatpush1.bf16.msra.mxu1 %v8850_v42  ;;  %v9027_v42 = vcombine.high %v790_v27, %v794_v63  ;;  %v9026_v48 = vcombine.low %v790_v27, %v794_v63  ;;  %v195_v27 = vld [vmem:[#allocation6 + $0x1b8] sm:$0xff] }
 0x310   :  { %7209 = vmatpush1.bf16.msra.mxu0 %v9234_v43  ;;  %7087 = vmatprep.subr.bf16.mxu1 %v8859_v23  ;;  %v8389_v43 = vcombine.high %v151_v29, %v155_v33  ;;  %v798_v23 = vld [vmem:[#allocation6 + $0x1490] sm:$0xff] }
 0x311   :  { %7210 = vmatprep.subr.bf16.mxu0 %v9243_v45  ;;  %v802_v45 = vld [vmem:[#allocation6 + $0x14b0] sm:$0xff] }
 0x312   :  { %v9034_v0 = vcombine.low %v798_v23, %v802_v45 }
 0x313   :  { %7088 = vmatpush1.bf16.msra.mxu1 %v8858_v54  ;;  %v9035_v54 = vcombine.high %v798_v23, %v802_v45 }
 0x314   :  { %7211 = vmatpush1.bf16.msra.mxu0 %v9242_v55  ;;  %7089 = vmatprep.subr.bf16.mxu1 %v8867_v59  ;;  %v8397_v55 = vcombine.high %v159_v6, %v163_v26  ;;  %v806_v59 = vld [vmem:[#allocation6 + $0x14d0] sm:$0xff]  ;;  %v199_v6 = vld [vmem:[#allocation6 + $0x1d8] sm:$0xff] }
 0x315   :  { %7212 = vmatprep.subr.bf16.mxu0 %v9251_v56  ;;  %v810_v56 = vld [vmem:[#allocation6 + $0x14f0] sm:$0xff]  ;;  %v203_v26 = vld [vmem:[#allocation6 + $0x1f8] sm:$0xff] }
 0x316   :  { %v9042_v47 = vcombine.low %v806_v59, %v810_v56 }
 0x317   :  { %7090 = vmatpush1.bf16.msra.mxu1 %v8866_v5  ;;  %v9043_v5 = vcombine.high %v806_v59, %v810_v56 }
 0x318   :  { %7213 = vmatpush1.bf16.msra.mxu0 %v9250_v22  ;;  %7091 = vmatprep.subr.bf16.mxu1 %v8875_v44  ;;  %v8405_v22 = vcombine.high %v167_v34, %v171_v62  ;;  %v814_v44 = vld [vmem:[#allocation6 + $0x1510] sm:$0xff] }
 0x319   :  { %7214 = vmatprep.subr.bf16.mxu0 %v9259_v9  ;;  %v818_v9 = vld [vmem:[#allocation6 + $0x1530] sm:$0xff] }
 0x31a   :  { %v9050_v19 = vcombine.low %v814_v44, %v818_v9 }
 0x31b   :  { %7092 = vmatpush1.bf16.msra.mxu1 %v8874_v15  ;;  %v9051_v15 = vcombine.high %v814_v44, %v818_v9  ;;  %v207_v9 = vld [vmem:[#allocation6 + $0x218] sm:$0xff] }
 0x31c   :  { %7215 = vmatpush1.bf16.msra.mxu0 %v9258_v8  ;;  %7093 = vmatprep.subr.bf16.mxu1 %v8883_v17  ;;  %v822_v8 = vld [vmem:[#allocation6 + $0x1550] sm:$0xff] }
 0x31d   :  { %7216 = vmatprep.subr.bf16.mxu0 %v9267_v18  ;;  %v826_v17 = vld [vmem:[#allocation6 + $0x1570] sm:$0xff]  ;;  %v183_v18 = vld [vmem:[#allocation6 + $0x158] sm:$0xff] }
 0x31e   :  { %v9059_v12 = vcombine.high %v822_v8, %v826_v17  ;;  %v9058_v63 = vcombine.low %v822_v8, %v826_v17  ;;  %v8420_v29 = vcombine.low %v183_v18, %v187_v60  ;;  %v215_v8 = vld [vmem:[#allocation6 + $0x258] sm:$0xff] }
 0x31f   :  { %7094 = vmatpush1.bf16.msra.mxu1 %v8882_v40  ;;  %v8421_v40 = vcombine.high %v183_v18, %v187_v60 }
 0x320   :  { %7217 = vmatpush1.bf16.msra.mxu0 %v9266_v24  ;;  %7145 = vmatprep.subr.bf16.mxu1 %v9019_v4  ;;  %v830_v24 = vld [vmem:[#allocation6 + $0x1590] sm:$0xff] }
 0x321   :  { %7268 = vmatprep.subr.bf16.mxu0 %v8381_v25  ;;  %v834_v4 = vld [vmem:[#allocation6 + $0x15b0] sm:$0xff]  ;;  %v191_v25 = vld [vmem:[#allocation6 + $0x198] sm:$0xff] }
 0x322   :  { %7096 = vmatmul.mubr.bf16.vlgmr.msra.gmra.mrb[40].mxu1 %v10263_v2  ;;  %v9067_v33 = vcombine.high %v830_v24, %v834_v4  ;;  %v8428_v62 = vcombine.low %v191_v25, %v195_v27 }
 0x323   :  { %7146 = vmatpush1.bf16.msra.mxu1 %v9018_v35  ;;  %7219 = vmatmul.mubr.bf16.vlgmr.msra.gmra.mrb[40].mxu0 %v10265_v7 }
 0x324   :  { %7269 = vmatpush1.bf16.msra.mxu0 %v8380_v36  ;;  %7147 = vmatprep.subr.bf16.mxu1 %v9027_v42  ;;  %v8429_v36 = vcombine.high %v191_v25, %v195_v27  ;;  %v838_v42 = vld [vmem:[#allocation6 + $0x15d0] sm:$0xff] }
 0x325   :  { %7270 = vmatprep.subr.bf16.mxu0 %v8389_v43  ;;  %7177 = vmatprep.mubr.bf16.mxu1 %v10267_v13  ;;  %v842_v43 = vld [vmem:[#allocation6 + $0x15f0] sm:$0xff] }
 0x326   :  { %7300 = vmatprep.mubr.bf16.mxu0 %v10233_v57  ;;  %v8413_v57 = vcombine.high %v175_v11, %v179_v52  ;;  %v211_v11 = vld [vmem:[#allocation6 + $0x238] sm:$0xff]  ;;  %v9074_v52 = vcombine.low %v838_v42, %v842_v43 }
 0x327   :  { %7148 = vmatpush1.bf16.msra.mxu1 %v9026_v48  ;;  %v8444_v18 = vcombine.low %v207_v9, %v211_v11 }
 0x328   :  { %7271 = vmatpush1.bf16.msra.mxu0 %v8388_v53  ;;  %7149 = vmatprep.subr.bf16.mxu1 %v9035_v54 }
 0x329   :  { %7272 = vmatprep.subr.bf16.mxu0 %v8397_v55  ;;  %v9066_v55 = vcombine.low %v830_v24, %v834_v4  ;;  %v227_v24 = vld [vmem:[#allocation6 + $0x2b8] sm:$0xff] }
 0x32b   :  { %7150 = vmatpush1.bf16.msra.mxu1 %v9034_v0 }
 0x32c   :  { %7273 = vmatpush1.bf16.msra.mxu0 %v8396_v3  ;;  %7151 = vmatprep.subr.bf16.mxu1 %v9043_v5  ;;  %v8437_v5 = vcombine.high %v199_v6, %v203_v26 }
 0x32d   :  { %7274 = vmatprep.subr.bf16.mxu0 %v8405_v22  ;;  %v850_v22 = vld [vmem:[#allocation6 + $0x1630] sm:$0xff] }
 0x32f   :  { %7152 = vmatpush1.bf16.msra.mxu1 %v9042_v47 }
 0x330   :  { %7275 = vmatpush1.bf16.msra.mxu0 %v8404_v14  ;;  %7153 = vmatprep.subr.bf16.mxu1 %v9051_v15  ;;  %v8445_v14 = vcombine.high %v207_v9, %v211_v11  ;;  %v854_v15 = vld [vmem:[#allocation6 + $0x1650] sm:$0xff] }
 0x331   :  { %7276 = vmatprep.subr.bf16.mxu0 %v8413_v57  ;;  %v858_v57 = vld [vmem:[#allocation6 + $0x1670] sm:$0xff] }
 0x332   :  { %v9091_v60 = vcombine.high %v854_v15, %v858_v57  ;;  %v9090_v4 = vcombine.low %v854_v15, %v858_v57  ;;  %v259_v15 = vld [vmem:[#allocation6 + $0x3b8] sm:$0xff] }
 0x333   :  { %7154 = vmatpush1.bf16.msra.mxu1 %v9050_v19 }
 0x334   :  { %7277 = vmatpush1.bf16.msra.mxu0 %v8412_v20  ;;  %7155 = vmatprep.subr.bf16.mxu1 %v9059_v12  ;;  %v862_v20 = vld [vmem:[#allocation6 + $0x1690] sm:$0xff] }
 0x335   :  { %v6851_v35 = vpop.f32.mrb[28].mxu1  ;;  %7278 = vmatprep.subr.bf16.mxu0 %v8421_v40  ;;  %v866_v12 = vld [vmem:[#allocation6 + $0x16b0] sm:$0xff]  ;;  %v223_v40 = vld [vmem:[#allocation6 + $0x298] sm:$0xff] }
 0x336   :  { %v6852_v23 = vadd.f32 %v6851_v35, %v10380_v38  ;;  %v6853_v45 = vpop.f32.mrb[29].mxu1  ;;  %v10390_v48 = vpop.f32.mrb[28].mxu0  ;;  %v9075_v38 = vcombine.high %v838_v42, %v842_v43  ;;  %v9099_v27 = vcombine.high %v862_v20, %v866_v12  ;;  %v231_v35 = vld [vmem:[#allocation6 + $0x2d8] sm:$0xff]  ;;  %v9098_v42 = vcombine.low %v862_v20, %v866_v12 }
 0x337   :  { %v6854_v53 = vadd.f32 %v6853_v45, %v10383_v46  ;;  %v6855_v54 = vpop.f32.mrb[30].mxu1  ;;  %7156 = vmatpush1.bf16.msra.mxu1 %v9058_v63  ;;  %v10393_v59 = vpop.f32.mrb[29].mxu0  ;;  %v846_v46 = vld [vmem:[#allocation6 + $0x1610] sm:$0xff]  ;;  %v8461_v63 = vcombine.high %v223_v40, %v227_v24  ;;  %v8460_v43 = vcombine.low %v223_v40, %v227_v24  ;;  %v267_v20 = vld [vmem:[#allocation6 + $0x3f8] sm:$0xff] }
 0x338   :  { %v10396_v56 = vadd.f32 %v10374_v30, %v6852_v23  ;;  %7279 = vmatpush1.bf16.msra.mxu0 %v8420_v29  ;;  %v6856_v34 = vpop.f32.mrb[31].mxu1  ;;  %7157 = vmatprep.subr.bf16.mxu1 %v9067_v33  ;;  %v6978_v0 = vpop.f32.mrb[30].mxu0  ;;  %v8436_v30 = vcombine.low %v199_v6, %v203_v26  ;;  %v9083_v47 = vcombine.high %v846_v46, %v850_v22  ;;  %v870_v29 = vld [vmem:[#allocation6 + $0x16d0] sm:$0xff]  ;;  %v243_v54 = vld [vmem:[#allocation6 + $0x338] sm:$0xff] }
 0x339   :  { %v10399_v3 = vadd.f32 %v10377_v10, %v6854_v53  ;;  %7280 = vmatprep.subr.bf16.mxu0 %v8429_v36  ;;  %v6979_v44 = vpop.f32.mrb[31].mxu0  ;;  %v219_v10 = vld [vmem:[#allocation6 + $0x278] sm:$0xff]  ;;  %v9082_v17 = vcombine.low %v846_v46, %v850_v22  ;;  %v874_v33 = vld [vmem:[#allocation6 + $0x16f0] sm:$0xff] }
 0x33a   :  { %v8453_v19 = vcombine.high %v215_v8, %v219_v10  ;;  %v8452_v25 = vcombine.low %v215_v8, %v219_v10  ;;  %v235_v36 = vld [vmem:[#allocation6 + $0x2f8] sm:$0xff]  ;;  %v9107_v23 = vcombine.high %v870_v29, %v874_v33  ;;  %v878_v6 = vld [vmem:[#allocation6 + $0x1710] sm:$0xff] }
 0x33b   :  { %7158 = vmatpush1.bf16.msra.mxu1 %v9066_v55  ;;  %v8469_v45 = vcombine.high %v231_v35, %v235_v36  ;;  %v882_v26 = vld [vmem:[#allocation6 + $0x1730] sm:$0xff]  ;;  %v239_v53 = vld [vmem:[#allocation6 + $0x318] sm:$0xff]  ;;  %v9106_v55 = vcombine.low %v870_v29, %v874_v33  ;;  %v8468_v34 = vcombine.low %v231_v35, %v235_v36 }
 0x33c   :  { %7281 = vmatpush1.bf16.msra.mxu0 %v8428_v62  ;;  %7159 = vmatprep.subr.bf16.mxu1 %v9075_v38  ;;  %v9115_v62 = vcombine.high %v878_v6, %v882_v26  ;;  %v8477_v38 = vcombine.high %v239_v53, %v243_v54  ;;  %v886_v0 = vld [vmem:[#allocation6 + $0x1750] sm:$0xff]  ;;  %v247_v46 = vld [vmem:[#allocation6 + $0x358] sm:$0xff]  ;;  %v9114_v44 = vcombine.low %v878_v6, %v882_v26 }
 0x33d   :  { %7282 = vmatprep.subr.bf16.mxu0 %v8437_v5  ;;  %v890_v5 = vld [vmem:[#allocation6 + $0x1770] sm:$0xff]  ;;  %v251_v22 = vld [vmem:[#allocation6 + $0x378] sm:$0xff]  ;;  %v8476_v9 = vcombine.low %v239_v53, %v243_v54 }
 0x33e   :  { %v9123_v11 = vcombine.high %v886_v0, %v890_v5  ;;  %v9122_v57 = vcombine.low %v886_v0, %v890_v5  ;;  %v8484_v8 = vcombine.low %v247_v46, %v251_v22  ;;  %v403_v29 = vld [vmem:[#allocation6 + $0x838] sm:$0xff] }
 0x33f   :  { %7160 = vmatpush1.bf16.msra.mxu1 %v9074_v52  ;;  %v8485_v52 = vcombine.high %v247_v46, %v251_v22  ;;  %v411_v6 = vld [vmem:[#allocation6 + $0x878] sm:$0xff] }
 0x340   :  { %7283 = vmatpush1.bf16.msra.mxu0 %v8436_v30  ;;  %7161 = vmatprep.subr.bf16.mxu1 %v9083_v47  ;;  %v894_v30 = vld [vmem:[#allocation6 + $0x1790] sm:$0xff]  ;;  %v419_v0 = vld [vmem:[#allocation6 + $0x8b8] sm:$0xff] }
 0x341   :  { %7284 = vmatprep.subr.bf16.mxu0 %v8445_v14  ;;  %v898_v47 = vld [vmem:[#allocation6 + $0x17b0] sm:$0xff]  ;;  %v255_v14 = vld [vmem:[#allocation6 + $0x398] sm:$0xff] }
 0x342   :  { %v9131_v10 = vcombine.high %v894_v30, %v898_v47  ;;  %v9130_v12 = vcombine.low %v894_v30, %v898_v47  ;;  %v8492_v40 = vcombine.low %v255_v14, %v259_v15  ;;  %v427_v30 = vld [vmem:[#allocation6 + $0x8f8] sm:$0xff] }
 0x343   :  { %7162 = vmatpush1.bf16.msra.mxu1 %v9082_v17  ;;  %v8493_v17 = vcombine.high %v255_v14, %v259_v15 }
 0x344   :  { %7285 = vmatpush1.bf16.msra.mxu0 %v8444_v18  ;;  %7163 = vmatprep.subr.bf16.mxu1 %v9091_v60  ;;  %v902_v18 = vld [vmem:[#allocation6 + $0x17d0] sm:$0xff] }
 0x345   :  { %7286 = vmatprep.subr.bf16.mxu0 %v8453_v19  ;;  %v906_v60 = vld [vmem:[#allocation6 + $0x17f0] sm:$0xff]  ;;  %v263_v19 = vld [vmem:[#allocation6 + $0x3d8] sm:$0xff] }
 0x346   :  { %v9139_v24 = vcombine.high %v902_v18, %v906_v60  ;;  %v9138_v33 = vcombine.low %v902_v18, %v906_v60  ;;  %v8500_v35 = vcombine.low %v263_v19, %v267_v20 }
 0x347   :  { %7164 = vmatpush1.bf16.msra.mxu1 %v9090_v4  ;;  %v8501_v4 = vcombine.high %v263_v19, %v267_v20  ;;  %v1078_v20 = vld [vmem:[#allocation6 + $0x1d50] sm:$0xff] }
 0x348   :  { %7287 = vmatpush1.bf16.msra.mxu0 %v8452_v25  ;;  %7165 = vmatprep.subr.bf16.mxu1 %v9099_v27  ;;  %v1038_v25 = vld [vmem:[#allocation6 + $0x1c10] sm:$0xff] }
 0x349   :  { %7288 = vmatprep.subr.bf16.mxu0 %v8461_v63  ;;  %v1042_v27 = vld [vmem:[#allocation6 + $0x1c30] sm:$0xff]  ;;  %v399_v63 = vld [vmem:[#allocation6 + $0x818] sm:$0xff] }
 0x34a   :  { %v9275_v36 = vcombine.high %v1038_v25, %v1042_v27  ;;  %v9274_v26 = vcombine.low %v1038_v25, %v1042_v27  ;;  %v8636_v53 = vcombine.low %v399_v63, %v403_v29 }
 0x34b   :  { %7166 = vmatpush1.bf16.msra.mxu1 %v9098_v42  ;;  %v8637_v42 = vcombine.high %v399_v63, %v403_v29  ;;  %v1086_v29 = vld [vmem:[#allocation6 + $0x1d90] sm:$0xff] }
 0x34c   :  { %7289 = vmatpush1.bf16.msra.mxu0 %v8460_v43  ;;  %7167 = vmatprep.subr.bf16.mxu1 %v9107_v23  ;;  %v1046_v43 = vld [vmem:[#allocation6 + $0x1c50] sm:$0xff] }
 0x34d   :  { %7290 = vmatprep.subr.bf16.mxu0 %v8469_v45  ;;  %v1050_v23 = vld [vmem:[#allocation6 + $0x1c70] sm:$0xff]  ;;  %v407_v45 = vld [vmem:[#allocation6 + $0x858] sm:$0xff] }
 0x34e   :  { %v9283_v54 = vcombine.high %v1046_v43, %v1050_v23  ;;  %v9282_v5 = vcombine.low %v1046_v43, %v1050_v23  ;;  %v8644_v46 = vcombine.low %v407_v45, %v411_v6 }
 0x34f   :  { %7168 = vmatpush1.bf16.msra.mxu1 %v9106_v55  ;;  %v8645_v55 = vcombine.high %v407_v45, %v411_v6 }
 0x350   :  { %7291 = vmatpush1.bf16.msra.mxu0 %v8468_v34  ;;  %7169 = vmatprep.subr.bf16.mxu1 %v9115_v62  ;;  %v1054_v34 = vld [vmem:[#allocation6 + $0x1c90] sm:$0xff] }
 0x351   :  { %7292 = vmatprep.subr.bf16.mxu0 %v8477_v38  ;;  %v1058_v62 = vld [vmem:[#allocation6 + $0x1cb0] sm:$0xff]  ;;  %v415_v38 = vld [vmem:[#allocation6 + $0x898] sm:$0xff] }
 0x352   :  { %v9291_v22 = vcombine.high %v1054_v34, %v1058_v62  ;;  %v9290_v47 = vcombine.low %v1054_v34, %v1058_v62  ;;  %v455_v34 = vld [vmem:[#allocation6 + $0x9d8] sm:$0xff] }
 0x353   :  { %7170 = vmatpush1.bf16.msra.mxu1 %v9114_v44  ;;  %v8653_v44 = vcombine.high %v415_v38, %v419_v0  ;;  %v459_v62 = vld [vmem:[#allocation6 + $0x9f8] sm:$0xff] }
 0x354   :  { %7293 = vmatpush1.bf16.msra.mxu0 %v8476_v9  ;;  %7171 = vmatprep.subr.bf16.mxu1 %v9123_v11  ;;  %v1062_v9 = vld [vmem:[#allocation6 + $0x1cd0] sm:$0xff] }
 0x355   :  { %7294 = vmatprep.subr.bf16.mxu0 %v8485_v52  ;;  %v1066_v11 = vld [vmem:[#allocation6 + $0x1cf0] sm:$0xff]  ;;  %v423_v52 = vld [vmem:[#allocation6 + $0x8d8] sm:$0xff] }
 0x356   :  { %v9299_v14 = vcombine.high %v1062_v9, %v1066_v11  ;;  %v8661_v15 = vcombine.high %v423_v52, %v427_v30  ;;  %v9298_v18 = vcombine.low %v1062_v9, %v1066_v11  ;;  %v8660_v60 = vcombine.low %v423_v52, %v427_v30  ;;  %v1102_v30 = vld [vmem:[#allocation6 + $0x1e10] sm:$0xff] }
 0x357   :  { %7172 = vmatpush1.bf16.msra.mxu1 %v9122_v57  ;;  %v1070_v57 = vld [vmem:[#allocation6 + $0x1d10] sm:$0xff]  ;;  %v8693_v52 = vcombine.high %v455_v34, %v459_v62 }
 0x358   :  { %7295 = vmatpush1.bf16.msra.mxu0 %v8484_v8  ;;  %7173 = vmatprep.subr.bf16.mxu1 %v9131_v10  ;;  %v1074_v8 = vld [vmem:[#allocation6 + $0x1d30] sm:$0xff]  ;;  %v431_v10 = vld [vmem:[#allocation6 + $0x918] sm:$0xff] }
 0x359   :  { %7296 = vmatprep.subr.bf16.mxu0 %v8493_v17  ;;  %v435_v17 = vld [vmem:[#allocation6 + $0x938] sm:$0xff]  ;;  %v9307_v19 = vcombine.high %v1070_v57, %v1074_v8 }
 0x35a   :  { %v8668_v25 = vcombine.low %v431_v10, %v435_v17 }
 0x35b   :  { %7174 = vmatpush1.bf16.msra.mxu1 %v9130_v12  ;;  %v1082_v12 = vld [vmem:[#allocation6 + $0x1d70] sm:$0xff] }
 0x35c   :  { %7297 = vmatpush1.bf16.msra.mxu0 %v8492_v40  ;;  %7175 = vmatprep.subr.bf16.mxu1 %v9139_v24  ;;  %v439_v40 = vld [vmem:[#allocation6 + $0x958] sm:$0xff]  ;;  %v9315_v27 = vcombine.high %v1078_v20, %v1082_v12 }
 0x35d   :  { %7298 = vmatprep.subr.bf16.mxu0 %v8501_v4  ;;  %v443_v24 = vld [vmem:[#allocation6 + $0x978] sm:$0xff]  ;;  %v9306_v4 = vcombine.low %v1070_v57, %v1074_v8  ;;  %v8692_v57 = vcombine.low %v455_v34, %v459_v62  ;;  %v1138_v34 = vld [vmem:[#allocation6 + $0x1f30] sm:$0xff] }
 0x35e   :  { %v8677_v63 = vcombine.high %v439_v40, %v443_v24  ;;  %v8676_v43 = vcombine.low %v439_v40, %v443_v24  ;;  %v1118_v24 = vld [vmem:[#allocation6 + $0x1e90] sm:$0xff]  ;;  %v495_v62 = vld [vmem:[#allocation6 + $0xb18] sm:$0xff] }
 0x35f   :  { %7176 = vmatpush1.bf16.msra.mxu1 %v9138_v33  ;;  %v1090_v33 = vld [vmem:[#allocation6 + $0x1db0] sm:$0xff] }
 0x360   :  { %7299 = vmatpush1.bf16.msra.mxu0 %v8500_v35  ;;  %7227 = vmatprep.subr.bf16.mxu1 %v9275_v36  ;;  %v447_v35 = vld [vmem:[#allocation6 + $0x998] sm:$0xff]  ;;  %v9323_v23 = vcombine.high %v1086_v29, %v1090_v33 }
 0x361   :  { %7350 = vmatprep.subr.bf16.mxu0 %v8637_v42  ;;  %v451_v36 = vld [vmem:[#allocation6 + $0x9b8] sm:$0xff]  ;;  %v9314_v42 = vcombine.low %v1078_v20, %v1082_v12 }
 0x362   :  { %7178 = vmatmul.mubr.bf16.vlgmr.msra.gmra.mrb[44].mxu1 %v10273_v37  ;;  %v8685_v6 = vcombine.high %v447_v35, %v451_v36  ;;  %v8684_v9 = vcombine.low %v447_v35, %v451_v36  ;;  %v1126_v36 = vld [vmem:[#allocation6 + $0x1ed0] sm:$0xff] }
 0x363   :  { %7228 = vmatpush1.bf16.msra.mxu1 %v9274_v26  ;;  %7301 = vmatmul.mubr.bf16.vlgmr.msra.gmra.mrb[44].mxu0 %v10239_v16  ;;  %v8652_v16 = vcombine.low %v415_v38, %v419_v0  ;;  %v1094_v26 = vld [vmem:[#allocation6 + $0x1dd0] sm:$0xff] }
 0x364   :  { %7351 = vmatpush1.bf16.msra.mxu0 %v8636_v53  ;;  %7229 = vmatprep.subr.bf16.mxu1 %v9283_v54  ;;  %v1098_v53 = vld [vmem:[#allocation6 + $0x1df0] sm:$0xff] }
 0x365   :  { %7352 = vmatprep.subr.bf16.mxu0 %v8645_v55  ;;  %7259 = vmatprep.mubr.bf16.mxu1 %v10275_v49  ;;  %v9331_v11 = vcombine.high %v1094_v26, %v1098_v53 }
 0x366   :  { %7382 = vmatprep.mubr.bf16.mxu0 %v10235_v61  ;;  %v8669_v61 = vcombine.high %v431_v10, %v435_v17  ;;  %v1110_v17 = vld [vmem:[#allocation6 + $0x1e50] sm:$0xff] }
 0x367   :  { %7230 = vmatpush1.bf16.msra.mxu1 %v9282_v5 }
 0x368   :  { %7353 = vmatpush1.bf16.msra.mxu0 %v8644_v46  ;;  %7231 = vmatprep.subr.bf16.mxu1 %v9291_v22  ;;  %v9322_v46 = vcombine.low %v1086_v29, %v1090_v33 }
 0x369   :  { %7354 = vmatprep.subr.bf16.mxu0 %v8653_v44 }
 0x36b   :  { %7232 = vmatpush1.bf16.msra.mxu1 %v9290_v47  ;;  %v1106_v47 = vld [vmem:[#allocation6 + $0x1e30] sm:$0xff] }
 0x36c   :  { %7355 = vmatpush1.bf16.msra.mxu0 %v8652_v16  ;;  %7233 = vmatprep.subr.bf16.mxu1 %v9299_v14  ;;  %v463_v14 = vld [vmem:[#allocation6 + $0xa18] sm:$0xff]  ;;  %v9339_v8 = vcombine.high %v1102_v30, %v1106_v47 }
 0x36d   :  { %7356 = vmatprep.subr.bf16.mxu0 %v8661_v15  ;;  %v467_v15 = vld [vmem:[#allocation6 + $0xa38] sm:$0xff] }
 0x36e   :  { %v8701_v10 = vcombine.high %v463_v14, %v467_v15  ;;  %v8700_v20 = vcombine.low %v463_v14, %v467_v15 }
 0x36f   :  { %7234 = vmatpush1.bf16.msra.mxu1 %v9298_v18  ;;  %v1114_v18 = vld [vmem:[#allocation6 + $0x1e70] sm:$0xff] }
 0x370   :  { %7357 = vmatpush1.bf16.msra.mxu0 %v8660_v60  ;;  %7235 = vmatprep.subr.bf16.mxu1 %v9307_v19  ;;  %v471_v60 = vld [vmem:[#allocation6 + $0xa58] sm:$0xff]  ;;  %v9347_v12 = vcombine.high %v1110_v17, %v1114_v18 }
 0x371   :  { %7358 = vmatprep.subr.bf16.mxu0 %v8669_v61  ;;  %v475_v19 = vld [vmem:[#allocation6 + $0xa78] sm:$0xff]  ;;  %v9338_v61 = vcombine.low %v1102_v30, %v1106_v47 }
 0x372   :  { %v8709_v40 = vcombine.high %v471_v60, %v475_v19  ;;  %v8708_v29 = vcombine.low %v471_v60, %v475_v19  ;;  %v503_v30 = vld [vmem:[#allocation6 + $0xb58] sm:$0xff] }
 0x373   :  { %7236 = vmatpush1.bf16.msra.mxu1 %v9306_v4  ;;  %v1122_v4 = vld [vmem:[#allocation6 + $0x1eb0] sm:$0xff]  ;;  %v507_v47 = vld [vmem:[#allocation6 + $0xb78] sm:$0xff] }
 0x374   :  { %7359 = vmatpush1.bf16.msra.mxu0 %v8668_v25  ;;  %7237 = vmatprep.subr.bf16.mxu1 %v9315_v27  ;;  %v479_v25 = vld [vmem:[#allocation6 + $0xa98] sm:$0xff]  ;;  %v9355_v33 = vcombine.high %v1118_v24, %v1122_v4  ;;  %v8740_v60 = vcombine.low %v503_v30, %v507_v47 }
 0x375   :  { %v6933_v45 = vpop.f32.mrb[32].mxu1  ;;  %7360 = vmatprep.subr.bf16.mxu0 %v8677_v63  ;;  %v483_v27 = vld [vmem:[#allocation6 + $0xab8] sm:$0xff]  ;;  %v9346_v63 = vcombine.low %v1110_v17, %v1114_v18 }
 0x376   :  { %v10406_v54 = vadd.f32 %v6933_v45, %v10396_v56  ;;  %v6935_v55 = vpop.f32.mrb[33].mxu1  ;;  %v10408_v38 = vpop.f32.mrb[32].mxu0  ;;  %v8717_v35 = vcombine.high %v479_v25, %v483_v27  ;;  %v9354_v45 = vcombine.low %v1118_v24, %v1122_v4  ;;  %v515_v17 = vld [vmem:[#allocation6 + $0xbb8] sm:$0xff] }
 0x377   :  { %v10411_v0 = vadd.f32 %v6935_v55, %v10399_v3  ;;  %v6937_v5 = vpop.f32.mrb[34].mxu1  ;;  %7238 = vmatpush1.bf16.msra.mxu1 %v9314_v42  ;;  %v10413_v22 = vpop.f32.mrb[33].mxu0  ;;  %v9330_v3 = vcombine.low %v1094_v26, %v1098_v53  ;;  %v1130_v42 = vld [vmem:[#allocation6 + $0x1ef0] sm:$0xff]  ;;  %v523_v24 = vld [vmem:[#allocation6 + $0xbf8] sm:$0xff] }
 0x378   :  { %7361 = vmatpush1.bf16.msra.mxu0 %v8676_v43  ;;  %v6938_v44 = vpop.f32.mrb[35].mxu1  ;;  %7239 = vmatprep.subr.bf16.mxu1 %v9323_v23  ;;  %v7060_v56 = vpop.f32.mrb[34].mxu0  ;;  %v487_v43 = vld [vmem:[#allocation6 + $0xad8] sm:$0xff]  ;;  %v9363_v26 = vcombine.high %v1126_v36, %v1130_v42  ;;  %v1134_v55 = vld [vmem:[#allocation6 + $0x1f10] sm:$0xff] }
 0x379   :  { %7362 = vmatprep.subr.bf16.mxu0 %v8685_v6  ;;  %v7061_v16 = vpop.f32.mrb[35].mxu0  ;;  %v491_v23 = vld [vmem:[#allocation6 + $0xaf8] sm:$0xff]  ;;  %v8716_v6 = vcombine.low %v479_v25, %v483_v27  ;;  %v1142_v56 = vld [vmem:[#allocation6 + $0x1f50] sm:$0xff] }
 0x37a   :  { %v8725_v53 = vcombine.high %v487_v43, %v491_v23  ;;  %v499_v5 = vld [vmem:[#allocation6 + $0xb38] sm:$0xff]  ;;  %v8724_v44 = vcombine.low %v487_v43, %v491_v23  ;;  %v9370_v16 = vcombine.low %v1134_v55, %v1138_v34 }
 0x37b   :  { %7240 = vmatpush1.bf16.msra.mxu1 %v9322_v46  ;;  %v9362_v46 = vcombine.low %v1126_v36, %v1130_v42  ;;  %v8732_v14 = vcombine.low %v495_v62, %v499_v5  ;;  %v659_v36 = vld [vmem:[#allocation6 + $0x1038] sm:$0xff] }
 0x37c   :  { %7363 = vmatpush1.bf16.msra.mxu0 %v8684_v9  ;;  %7241 = vmatprep.subr.bf16.mxu1 %v9331_v11  ;;  %v9371_v9 = vcombine.high %v1134_v55, %v1138_v34  ;;  %v8733_v11 = vcombine.high %v495_v62, %v499_v5  ;;  %v667_v55 = vld [vmem:[#allocation6 + $0x1078] sm:$0xff] }
 0x37d   :  { %7364 = vmatprep.subr.bf16.mxu0 %v8693_v52  ;;  %v1146_v52 = vld [vmem:[#allocation6 + $0x1f70] sm:$0xff] }
 0x37e   :  { %v9379_v15 = vcombine.high %v1142_v56, %v1146_v52  ;;  %v9378_v18 = vcombine.low %v1142_v56, %v1146_v52  ;;  %v675_v56 = vld [vmem:[#allocation6 + $0x10b8] sm:$0xff] }
 0x37f   :  { %7242 = vmatpush1.bf16.msra.mxu1 %v9330_v3  ;;  %v8741_v3 = vcombine.high %v503_v30, %v507_v47 }
 0x380   :  { %7365 = vmatpush1.bf16.msra.mxu0 %v8692_v57  ;;  %7243 = vmatprep.subr.bf16.mxu1 %v9339_v8  ;;  %v1150_v57 = vld [vmem:[#allocation6 + $0x1f90] sm:$0xff] }
 0x381   :  { %7366 = vmatprep.subr.bf16.mxu0 %v8701_v10  ;;  %v1154_v8 = vld [vmem:[#allocation6 + $0x1fb0] sm:$0xff]  ;;  %v511_v10 = vld [vmem:[#allocation6 + $0xb98] sm:$0xff] }
 0x382   :  { %v9387_v19 = vcombine.high %v1150_v57, %v1154_v8  ;;  %v9386_v4 = vcombine.low %v1150_v57, %v1154_v8  ;;  %v8748_v25 = vcombine.low %v511_v10, %v515_v17  ;;  %v683_v57 = vld [vmem:[#allocation6 + $0x10f8] sm:$0xff] }
 0x383   :  { %7244 = vmatpush1.bf16.msra.mxu1 %v9338_v61  ;;  %v8749_v61 = vcombine.high %v511_v10, %v515_v17 }
 0x384   :  { %7367 = vmatpush1.bf16.msra.mxu0 %v8700_v20  ;;  %7245 = vmatprep.subr.bf16.mxu1 %v9347_v12  ;;  %v1158_v20 = vld [vmem:[#allocation6 + $0x1fd0] sm:$0xff] }
 0x385   :  { %7368 = vmatprep.subr.bf16.mxu0 %v8709_v40  ;;  %v1162_v12 = vld [vmem:[#allocation6 + $0x1ff0] sm:$0xff]  ;;  %v519_v40 = vld [vmem:[#allocation6 + $0xbd8] sm:$0xff] }
 0x386   :  { %v9395_v27 = vcombine.high %v1158_v20, %v1162_v12  ;;  %v9394_v42 = vcombine.low %v1158_v20, %v1162_v12  ;;  %v8756_v43 = vcombine.low %v519_v40, %v523_v24 }
 0x387   :  { %7246 = vmatpush1.bf16.msra.mxu1 %v9346_v63  ;;  %v8757_v63 = vcombine.high %v519_v40, %v523_v24  ;;  %v311_v40 = vld [vmem:[#allocation6 + $0x558] sm:$0xff] }
 0x388   :  { %7369 = vmatpush1.bf16.msra.mxu0 %v8708_v29  ;;  %7247 = vmatprep.subr.bf16.mxu1 %v9355_v33  ;;  %v271_v29 = vld [vmem:[#allocation6 + $0x418] sm:$0xff] }
 0x389   :  { %7370 = vmatprep.subr.bf16.mxu0 %v8717_v35  ;;  %v275_v33 = vld [vmem:[#allocation6 + $0x438] sm:$0xff] }
 0x38a   :  { %v655_v35 = vld [vmem:[#allocation6 + $0x1018] sm:$0xff]  ;;  %v8509_v23 = vcombine.high %v271_v29, %v275_v33  ;;  %v8508_v34 = vcombine.low %v271_v29, %v275_v33 }
 0x38b   :  { %7248 = vmatpush1.bf16.msra.mxu1 %v9354_v45  ;;  %v8893_v45 = vcombine.high %v655_v35, %v659_v36  ;;  %v8892_v62 = vcombine.low %v655_v35, %v659_v36  ;;  %v315_v24 = vld [vmem:[#allocation6 + $0x578] sm:$0xff] }
 0x38c   :  { %7371 = vmatpush1.bf16.msra.mxu0 %v8716_v6  ;;  %7249 = vmatprep.subr.bf16.mxu1 %v9363_v26  ;;  %v279_v6 = vld [vmem:[#allocation6 + $0x458] sm:$0xff]  ;;  %v8549_v29 = vcombine.high %v311_v40, %v315_v24 }
 0x38d   :  { %7372 = vmatprep.subr.bf16.mxu0 %v8725_v53  ;;  %v283_v26 = vld [vmem:[#allocation6 + $0x478] sm:$0xff] }
 0x38e   :  { %v663_v53 = vld [vmem:[#allocation6 + $0x1058] sm:$0xff]  ;;  %v8517_v5 = vcombine.high %v279_v6, %v283_v26  ;;  %v8516_v52 = vcombine.low %v279_v6, %v283_v26 }
 0x38f   :  { %7250 = vmatpush1.bf16.msra.mxu1 %v9362_v46  ;;  %v8901_v46 = vcombine.high %v663_v53, %v667_v55  ;;  %v8900_v30 = vcombine.low %v663_v53, %v667_v55  ;;  %v319_v35 = vld [vmem:[#allocation6 + $0x598] sm:$0xff] }
 0x390   :  { %7373 = vmatpush1.bf16.msra.mxu0 %v8724_v44  ;;  %7251 = vmatprep.subr.bf16.mxu1 %v9371_v9  ;;  %v287_v44 = vld [vmem:[#allocation6 + $0x498] sm:$0xff] }
 0x391   :  { %7374 = vmatprep.subr.bf16.mxu0 %v8733_v11  ;;  %v291_v9 = vld [vmem:[#allocation6 + $0x4b8] sm:$0xff] }
 0x392   :  { %v671_v11 = vld [vmem:[#allocation6 + $0x1098] sm:$0xff]  ;;  %v8525_v47 = vcombine.high %v287_v44, %v291_v9  ;;  %v8524_v8 = vcombine.low %v287_v44, %v291_v9 }
 0x393   :  { %7252 = vmatpush1.bf16.msra.mxu1 %v9370_v16  ;;  %v8909_v16 = vcombine.high %v671_v11, %v675_v56  ;;  %v323_v36 = vld [vmem:[#allocation6 + $0x5b8] sm:$0xff] }
 0x394   :  { %7375 = vmatpush1.bf16.msra.mxu0 %v8732_v14  ;;  %7253 = vmatprep.subr.bf16.mxu1 %v9379_v15  ;;  %v295_v14 = vld [vmem:[#allocation6 + $0x4d8] sm:$0xff]  ;;  %v8557_v6 = vcombine.high %v319_v35, %v323_v36 }
 0x395   :  { %7376 = vmatprep.subr.bf16.mxu0 %v8741_v3  ;;  %v299_v15 = vld [vmem:[#allocation6 + $0x4f8] sm:$0xff] }
 0x396   :  { %v679_v3 = vld [vmem:[#allocation6 + $0x10d8] sm:$0xff]  ;;  %v8533_v10 = vcombine.high %v295_v14, %v299_v15  ;;  %v8532_v20 = vcombine.low %v295_v14, %v299_v15 }
 0x397   :  { %7254 = vmatpush1.bf16.msra.mxu1 %v9378_v18  ;;  %v8917_v17 = vcombine.high %v679_v3, %v683_v57  ;;  %v303_v18 = vld [vmem:[#allocation6 + $0x518] sm:$0xff] }
 0x398   :  { %7377 = vmatpush1.bf16.msra.mxu0 %v8740_v60  ;;  %7255 = vmatprep.subr.bf16.mxu1 %v9387_v19  ;;  %v307_v60 = vld [vmem:[#allocation6 + $0x538] sm:$0xff] }
 0x399   :  { %7378 = vmatprep.subr.bf16.mxu0 %v8749_v61  ;;  %v687_v19 = vld [vmem:[#allocation6 + $0x1118] sm:$0xff]  ;;  %v8541_v12 = vcombine.high %v303_v18, %v307_v60 }
 0x39a   :  { %v691_v61 = vld [vmem:[#allocation6 + $0x1138] sm:$0xff] }
 0x39b   :  { %7256 = vmatpush1.bf16.msra.mxu1 %v9386_v4  ;;  %v695_v4 = vld [vmem:[#allocation6 + $0x1158] sm:$0xff] }
 0x39c   :  { %7379 = vmatpush1.bf16.msra.mxu0 %v8748_v25  ;;  %7257 = vmatprep.subr.bf16.mxu1 %v9395_v27  ;;  %v699_v25 = vld [vmem:[#allocation6 + $0x1178] sm:$0xff]  ;;  %v8540_v27 = vcombine.low %v303_v18, %v307_v60 }
 0x39d   :  { %7380 = vmatprep.subr.bf16.mxu0 %v8757_v63  ;;  %v8924_v63 = vcombine.low %v687_v19, %v691_v61  ;;  %v8933_v33 = vcombine.high %v695_v4, %v699_v25  ;;  %v327_v55 = vld [vmem:[#allocation6 + $0x5d8] sm:$0xff] }
 0x39e   :  { %v715_v44 = vld [vmem:[#allocation6 + $0x11f8] sm:$0xff] }
 0x39f   :  { %7258 = vmatpush1.bf16.msra.mxu1 %v9394_v42  ;;  %v703_v42 = vld [vmem:[#allocation6 + $0x1198] sm:$0xff] }
 0x3a0   :  { %7381 = vmatpush1.bf16.msra.mxu0 %v8756_v43  ;;  %7309 = vmatprep.subr.bf16.mxu1 %v8509_v23  ;;  %v707_v43 = vld [vmem:[#allocation6 + $0x11b8] sm:$0xff]  ;;  %v8548_v23 = vcombine.low %v311_v40, %v315_v24 }
 0x3a1   :  { %7432 = vmatprep.subr.bf16.mxu0 %v8893_v45  ;;  %v8932_v45 = vcombine.low %v695_v4, %v699_v25  ;;  %v8941_v53 = vcombine.high %v703_v42, %v707_v43  ;;  %v8940_v14 = vcombine.low %v703_v42, %v707_v43  ;;  %v351_v4 = vld [vmem:[#allocation6 + $0x698] sm:$0xff] }
 0x3a2   :  { %7260 = vmatmul.mubr.bf16.vlgmr.msra.gmra.mrb[48].mxu1 %v10289_v32  ;;  %v355_v25 = vld [vmem:[#allocation6 + $0x6b8] sm:$0xff] }
 0x3a3   :  { %7310 = vmatpush1.bf16.msra.mxu1 %v8508_v34  ;;  %7383 = vmatmul.mubr.bf16.vlgmr.msra.gmra.mrb[48].mxu0 %v10241_v21  ;;  %v8908_v21 = vcombine.low %v671_v11, %v675_v56  ;;  %v331_v34 = vld [vmem:[#allocation6 + $0x5f8] sm:$0xff] }
 0x3a4   :  { %7433 = vmatpush1.bf16.msra.mxu0 %v8892_v62  ;;  %7311 = vmatprep.subr.bf16.mxu1 %v8517_v5  ;;  %v8564_v18 = vcombine.low %v327_v55, %v331_v34  ;;  %v359_v42 = vld [vmem:[#allocation6 + $0x6d8] sm:$0xff] }
 0x3a5   :  { %7434 = vmatprep.subr.bf16.mxu0 %v8901_v46  ;;  %7341 = vmatprep.mubr.bf16.mxu1 %v10243_v28  ;;  %v8916_v28 = vcombine.low %v679_v3, %v683_v57  ;;  %v711_v46 = vld [vmem:[#allocation6 + $0x11d8] sm:$0xff] }
 0x3a6   :  { %7464 = vmatprep.mubr.bf16.mxu0 %v10246_v31  ;;  %v8925_v31 = vcombine.high %v687_v19, %v691_v61  ;;  %v8949_v57 = vcombine.high %v711_v46, %v715_v44  ;;  %v343_v61 = vld [vmem:[#allocation6 + $0x658] sm:$0xff] }
 0x3a7   :  { %7312 = vmatpush1.bf16.msra.mxu1 %v8516_v52  ;;  %v8556_v52 = vcombine.low %v319_v35, %v323_v36  ;;  %v8589_v35 = vcombine.high %v351_v4, %v355_v25  ;;  %v363_v43 = vld [vmem:[#allocation6 + $0x6f8] sm:$0xff] }
 0x3a8   :  { %7435 = vmatpush1.bf16.msra.mxu0 %v8900_v30  ;;  %7313 = vmatprep.subr.bf16.mxu1 %v8525_v47 }
 0x3a9   :  { %7436 = vmatprep.subr.bf16.mxu0 %v8909_v16 }
 0x3ab   :  { %7314 = vmatpush1.bf16.msra.mxu1 %v8524_v8  ;;  %v339_v8 = vld [vmem:[#allocation6 + $0x638] sm:$0xff] }
 0x3ac   :  { %7437 = vmatpush1.bf16.msra.mxu0 %v8908_v21  ;;  %7315 = vmatprep.subr.bf16.mxu1 %v8533_v10  ;;  %v719_v10 = vld [vmem:[#allocation6 + $0x1218] sm:$0xff] }
 0x3ad   :  { %7438 = vmatprep.subr.bf16.mxu0 %v8917_v17  ;;  %v723_v17 = vld [vmem:[#allocation6 + $0x1238] sm:$0xff] }
 0x3ae   :  { %v8957_v19 = vcombine.high %v719_v10, %v723_v17 }
 0x3af   :  { %7316 = vmatpush1.bf16.msra.mxu1 %v8532_v20  ;;  %v347_v20 = vld [vmem:[#allocation6 + $0x678] sm:$0xff] }
 0x3b0   :  { %7439 = vmatpush1.bf16.msra.mxu0 %v8916_v28  ;;  %7317 = vmatprep.subr.bf16.mxu1 %v8541_v12  ;;  %v727_v28 = vld [vmem:[#allocation6 + $0x1258] sm:$0xff]  ;;  %v8581_v40 = vcombine.high %v343_v61, %v347_v20 }
 0x3b1   :  { %7440 = vmatprep.subr.bf16.mxu0 %v8925_v31  ;;  %v8956_v31 = vcombine.low %v719_v10, %v723_v17  ;;  %v383_v10 = vld [vmem:[#allocation6 + $0x798] sm:$0xff] }
 0x3b2   :  { %v387_v17 = vld [vmem:[#allocation6 + $0x7b8] sm:$0xff] }
 0x3b3   :  { %7318 = vmatpush1.bf16.msra.mxu1 %v8540_v27  ;;  %v735_v27 = vld [vmem:[#allocation6 + $0x1298] sm:$0xff] }
 0x3b4   :  { %7441 = vmatpush1.bf16.msra.mxu0 %v8924_v63  ;;  %7319 = vmatprep.subr.bf16.mxu1 %v8549_v29  ;;  %v739_v63 = vld [vmem:[#allocation6 + $0x12b8] sm:$0xff]  ;;  %v8580_v29 = vcombine.low %v343_v61, %v347_v20  ;;  %v8621_v61 = vcombine.high %v383_v10, %v387_v17 }
 0x3b5   :  { %v7015_v26 = vpop.f32.mrb[36].mxu1  ;;  %7442 = vmatprep.subr.bf16.mxu0 %v8933_v33  ;;  %v8973_v36 = vcombine.high %v735_v27, %v739_v63 }
 0x3b6   :  { %v7016_v62 = vadd.f32 %v7015_v26, %v10390_v48  ;;  %v7017_v5 = vpop.f32.mrb[37].mxu1  ;;  %v10420_v9 = vpop.f32.mrb[36].mxu0  ;;  %v8565_v48 = vcombine.high %v327_v55, %v331_v34  ;;  %v8972_v26 = vcombine.low %v735_v27, %v739_v63  ;;  %v367_v34 = vld [vmem:[#allocation6 + $0x718] sm:$0xff] }
 0x3b7   :  { %v7018_v11 = vadd.f32 %v7017_v5, %v10393_v59  ;;  %v7019_v56 = vpop.f32.mrb[38].mxu1  ;;  %7320 = vmatpush1.bf16.msra.mxu1 %v8548_v23  ;;  %v10423_v30 = vpop.f32.mrb[37].mxu0  ;;  %v335_v59 = vld [vmem:[#allocation6 + $0x618] sm:$0xff] }
 0x3b8   :  { %v10426_v47 = vadd.f32 %v10408_v38, %v7016_v62  ;;  %7443 = vmatpush1.bf16.msra.mxu0 %v8932_v45  ;;  %v7020_v16 = vpop.f32.mrb[39].mxu1  ;;  %7321 = vmatprep.subr.bf16.mxu1 %v8557_v6  ;;  %v7142_v15 = vpop.f32.mrb[38].mxu0  ;;  %v8948_v38 = vcombine.low %v711_v46, %v715_v44  ;;  %v8573_v60 = vcombine.high %v335_v59, %v339_v8  ;;  %v743_v23 = vld [vmem:[#allocation6 + $0x12d8] sm:$0xff] }
 0x3b9   :  { %v10429_v3 = vadd.f32 %v10413_v22, %v7018_v11  ;;  %7444 = vmatprep.subr.bf16.mxu0 %v8941_v53  ;;  %v7143_v21 = vpop.f32.mrb[39].mxu0  ;;  %v731_v22 = vld [vmem:[#allocation6 + $0x1278] sm:$0xff]  ;;  %v8572_v12 = vcombine.low %v335_v59, %v339_v8  ;;  %v8588_v6 = vcombine.low %v351_v4, %v355_v25  ;;  %v8597_v53 = vcombine.high %v359_v42, %v363_v43 }
 0x3ba   :  { %v8965_v24 = vcombine.high %v727_v28, %v731_v22  ;;  %v8964_v33 = vcombine.low %v727_v28, %v731_v22  ;;  %v747_v45 = vld [vmem:[#allocation6 + $0x12f8] sm:$0xff]  ;;  %v8596_v44 = vcombine.low %v359_v42, %v363_v43 }
 0x3bb   :  { %7322 = vmatpush1.bf16.msra.mxu1 %v8556_v52  ;;  %v8981_v55 = vcombine.high %v743_v23, %v747_v45  ;;  %v371_v62 = vld [vmem:[#allocation6 + $0x738] sm:$0xff]  ;;  %v8980_v11 = vcombine.low %v743_v23, %v747_v45 }
 0x3bc   :  { %7445 = vmatpush1.bf16.msra.mxu0 %v8940_v14  ;;  %7323 = vmatprep.subr.bf16.mxu1 %v8565_v48  ;;  %v751_v5 = vld [vmem:[#allocation6 + $0x1318] sm:$0xff]  ;;  %v8605_v56 = vcombine.high %v367_v34, %v371_v62 }
 0x3bd   :  { %7446 = vmatprep.subr.bf16.mxu0 %v8949_v57  ;;  %v755_v46 = vld [vmem:[#allocation6 + $0x1338] sm:$0xff]  ;;  %v8604_v57 = vcombine.low %v367_v34, %v371_v62 }
 0x3be   :  { %v8989_v52 = vcombine.high %v751_v5, %v755_v46  ;;  %v375_v16 = vld [vmem:[#allocation6 + $0x758] sm:$0xff]  ;;  %v8988_v59 = vcombine.low %v751_v5, %v755_v46 }
 0x3bf   :  { %7324 = vmatpush1.bf16.msra.mxu1 %v8564_v18  ;;  %v379_v14 = vld [vmem:[#allocation6 + $0x778] sm:$0xff] }
 0x3c0   :  { %7447 = vmatpush1.bf16.msra.mxu0 %v8948_v38  ;;  %7325 = vmatprep.subr.bf16.mxu1 %v8573_v60  ;;  %v759_v48 = vld [vmem:[#allocation6 + $0x1358] sm:$0xff]  ;;  %v8613_v8 = vcombine.high %v375_v16, %v379_v14  ;;  %v8612_v60 = vcombine.low %v375_v16, %v379_v14 }
 0x3c1   :  { %7448 = vmatprep.subr.bf16.mxu0 %v8957_v19  ;;  %v763_v15 = vld [vmem:[#allocation6 + $0x1378] sm:$0xff] }
 0x3c2   :  { %v8997_v21 = vcombine.high %v759_v48, %v763_v15  ;;  %v767_v18 = vld [vmem:[#allocation6 + $0x1398] sm:$0xff]  ;;  %v8996_v19 = vcombine.low %v759_v48, %v763_v15 }
 0x3c3   :  { %7326 = vmatpush1.bf16.msra.mxu1 %v8572_v12  ;;  %v771_v38 = vld [vmem:[#allocation6 + $0x13b8] sm:$0xff] }
 0x3c4   :  { %7449 = vmatpush1.bf16.msra.mxu0 %v8956_v31  ;;  %7327 = vmatprep.subr.bf16.mxu1 %v8581_v40  ;;  %v9005_v20 = vcombine.high %v767_v18, %v771_v38  ;;  %v391_v28 = vld [vmem:[#allocation6 + $0x7d8] sm:$0xff]  ;;  %v8620_v40 = vcombine.low %v383_v10, %v387_v17 }
 0x3c5   :  { %7450 = vmatprep.subr.bf16.mxu0 %v8965_v24  ;;  %v395_v22 = vld [vmem:[#allocation6 + $0x7f8] sm:$0xff]  ;;  %v9004_v24 = vcombine.low %v767_v18, %v771_v38 }
 0x3c6   :  { %v775_v12 = vld [vmem:[#allocation6 + $0x13d8] sm:$0xff]  ;;  %v8629_v4 = vcombine.high %v391_v28, %v395_v22 }
 0x3c7   :  { %7328 = vmatpush1.bf16.msra.mxu1 %v8580_v29  ;;  %v779_v31 = vld [vmem:[#allocation6 + $0x13f8] sm:$0xff] }
 0x3c8   :  { %7451 = vmatpush1.bf16.msra.mxu0 %v8964_v33  ;;  %7329 = vmatprep.subr.bf16.mxu1 %v8589_v35  ;;  %v9013_v25 = vcombine.high %v775_v12, %v779_v31  ;;  %v527_v27 = vld [vmem:[#allocation6 + $0xc18] sm:$0xff]  ;;  %v8628_v35 = vcombine.low %v391_v28, %v395_v22 }
 0x3c9   :  { %7452 = vmatprep.subr.bf16.mxu0 %v8973_v36  ;;  %v531_v63 = vld [vmem:[#allocation6 + $0xc38] sm:$0xff]  ;;  %v9012_v36 = vcombine.low %v775_v12, %v779_v31 }
 0x3ca   :  { %v911_v29 = vld [vmem:[#allocation6 + $0x1818] sm:$0xff]  ;;  %v8765_v42 = vcombine.high %v527_v27, %v531_v63 }
 0x3cb   :  { %7330 = vmatpush1.bf16.msra.mxu1 %v8588_v6  ;;  %v915_v33 = vld [vmem:[#allocation6 + $0x1838] sm:$0xff] }
 0x3cc   :  { %7453 = vmatpush1.bf16.msra.mxu0 %v8972_v26  ;;  %7331 = vmatprep.subr.bf16.mxu1 %v8597_v53  ;;  %v9149_v43 = vcombine.high %v911_v29, %v915_v33  ;;  %v535_v23 = vld [vmem:[#allocation6 + $0xc58] sm:$0xff]  ;;  %v8764_v53 = vcombine.low %v527_v27, %v531_v63 }
 0x3cd   :  { %7454 = vmatprep.subr.bf16.mxu0 %v8981_v55  ;;  %v539_v45 = vld [vmem:[#allocation6 + $0xc78] sm:$0xff]  ;;  %v9148_v55 = vcombine.low %v911_v29, %v915_v33 }
 0x3ce   :  { %v919_v6 = vld [vmem:[#allocation6 + $0x1858] sm:$0xff]  ;;  %v8773_v34 = vcombine.high %v535_v23, %v539_v45 }
 0x3cf   :  { %7332 = vmatpush1.bf16.msra.mxu1 %v8596_v44  ;;  %v923_v26 = vld [vmem:[#allocation6 + $0x1878] sm:$0xff] }
 0x3d0   :  { %7455 = vmatpush1.bf16.msra.mxu0 %v8980_v11  ;;  %7333 = vmatprep.subr.bf16.mxu1 %v8605_v56  ;;  %v9157_v62 = vcombine.high %v919_v6, %v923_v26  ;;  %v543_v5 = vld [vmem:[#allocation6 + $0xc98] sm:$0xff]  ;;  %v8772_v56 = vcombine.low %v535_v23, %v539_v45 }
 0x3d1   :  { %7456 = vmatprep.subr.bf16.mxu0 %v8989_v52  ;;  %v547_v46 = vld [vmem:[#allocation6 + $0xcb8] sm:$0xff]  ;;  %v9156_v52 = vcombine.low %v919_v6, %v923_v26 }
 0x3d2   :  { %v927_v44 = vld [vmem:[#allocation6 + $0x1898] sm:$0xff]  ;;  %v8781_v16 = vcombine.high %v543_v5, %v547_v46 }
 0x3d3   :  { %7334 = vmatpush1.bf16.msra.mxu1 %v8604_v57  ;;  %v931_v11 = vld [vmem:[#allocation6 + $0x18b8] sm:$0xff] }
 0x3d4   :  { %7457 = vmatpush1.bf16.msra.mxu0 %v8988_v59  ;;  %7335 = vmatprep.subr.bf16.mxu1 %v8613_v8  ;;  %v9165_v14 = vcombine.high %v927_v44, %v931_v11  ;;  %v551_v48 = vld [vmem:[#allocation6 + $0xcd8] sm:$0xff] }
 0x3d5   :  { %7458 = vmatprep.subr.bf16.mxu0 %v8997_v21  ;;  %v555_v15 = vld [vmem:[#allocation6 + $0xcf8] sm:$0xff] }
 0x3d6   :  { %v935_v57 = vld [vmem:[#allocation6 + $0x18d8] sm:$0xff]  ;;  %v8789_v8 = vcombine.high %v551_v48, %v555_v15 }
 0x3d7   :  { %7336 = vmatpush1.bf16.msra.mxu1 %v8612_v60  ;;  %v939_v59 = vld [vmem:[#allocation6 + $0x18f8] sm:$0xff]  ;;  %v8788_v60 = vcombine.low %v551_v48, %v555_v15 }
 0x3d8   :  { %7459 = vmatpush1.bf16.msra.mxu0 %v8996_v19  ;;  %7337 = vmatprep.subr.bf16.mxu1 %v8621_v61  ;;  %v9173_v21 = vcombine.high %v935_v57, %v939_v59  ;;  %v559_v10 = vld [vmem:[#allocation6 + $0xd18] sm:$0xff] }
 0x3d9   :  { %7460 = vmatprep.subr.bf16.mxu0 %v9005_v20  ;;  %v563_v17 = vld [vmem:[#allocation6 + $0xd38] sm:$0xff] }
 0x3da   :  { %v943_v18 = vld [vmem:[#allocation6 + $0x1918] sm:$0xff]  ;;  %v8797_v19 = vcombine.high %v559_v10, %v563_v17  ;;  %v8796_v12 = vcombine.low %v559_v10, %v563_v17 }
 0x3db   :  { %7338 = vmatpush1.bf16.msra.mxu1 %v8620_v40  ;;  %v947_v38 = vld [vmem:[#allocation6 + $0x1938] sm:$0xff] }
 0x3dc   :  { %7461 = vmatpush1.bf16.msra.mxu0 %v9004_v24  ;;  %7339 = vmatprep.subr.bf16.mxu1 %v8629_v4  ;;  %v567_v61 = vld [vmem:[#allocation6 + $0xd58] sm:$0xff]  ;;  %v9180_v31 = vcombine.low %v943_v18, %v947_v38 }
 0x3dd   :  { %7462 = vmatprep.subr.bf16.mxu0 %v9013_v25  ;;  %v571_v20 = vld [vmem:[#allocation6 + $0xd78] sm:$0xff] }
 0x3de   :  { %v951_v28 = vld [vmem:[#allocation6 + $0x1958] sm:$0xff]  ;;  %v8805_v40 = vcombine.high %v567_v61, %v571_v20  ;;  %v8804_v29 = vcombine.low %v567_v61, %v571_v20 }
 0x3df   :  { %7340 = vmatpush1.bf16.msra.mxu1 %v8628_v35  ;;  %v955_v22 = vld [vmem:[#allocation6 + $0x1978] sm:$0xff] }
 0x3e0   :  { %7463 = vmatpush1.bf16.msra.mxu0 %v9012_v36  ;;  %7391 = vmatprep.subr.bf16.mxu1 %v8765_v42  ;;  %v9189_v24 = vcombine.high %v951_v28, %v955_v22  ;;  %v575_v4 = vld [vmem:[#allocation6 + $0xd98] sm:$0xff]  ;;  %v9188_v33 = vcombine.low %v951_v28, %v955_v22 }
 0x3e1   :  { %7514 = vmatprep.subr.bf16.mxu0 %v9149_v43  ;;  %v579_v25 = vld [vmem:[#allocation6 + $0xdb8] sm:$0xff] }
 0x3e2   :  { %7342 = vmatmul.mubr.bf16.vlgmr.msra.gmra.mrb[52].mxu1 %v10251_v39  ;;  %v8780_v39 = vcombine.low %v543_v5, %v547_v46  ;;  %v959_v27 = vld [vmem:[#allocation6 + $0x1998] sm:$0xff]  ;;  %v8813_v35 = vcombine.high %v575_v4, %v579_v25  ;;  %v8812_v5 = vcombine.low %v575_v4, %v579_v25 }
 0x3e3   :  { %7392 = vmatpush1.bf16.msra.mxu1 %v8764_v53  ;;  %7465 = vmatmul.mubr.bf16.vlgmr.msra.gmra.mrb[52].mxu0 %v10253_v41  ;;  %v9164_v41 = vcombine.low %v927_v44, %v931_v11  ;;  %v963_v63 = vld [vmem:[#allocation6 + $0x19b8] sm:$0xff] }
 0x3e4   :  { %7515 = vmatpush1.bf16.msra.mxu0 %v9148_v55  ;;  %7393 = vmatprep.subr.bf16.mxu1 %v8773_v34  ;;  %v9197_v42 = vcombine.high %v959_v27, %v963_v63  ;;  %v583_v43 = vld [vmem:[#allocation6 + $0xdd8] sm:$0xff] }
 0x3e5   :  { %7516 = vmatprep.subr.bf16.mxu0 %v9157_v62  ;;  %7423 = vmatprep.mubr.bf16.mxu1 %v10255_v50  ;;  %v9172_v50 = vcombine.low %v935_v57, %v939_v59  ;;  %v587_v23 = vld [vmem:[#allocation6 + $0xdf8] sm:$0xff] }
 0x3e6   :  { %7546 = vmatprep.mubr.bf16.mxu0 %v10258_v51  ;;  %v9181_v51 = vcombine.high %v943_v18, %v947_v38  ;;  %v967_v26 = vld [vmem:[#allocation6 + $0x19d8] sm:$0xff] }
 0x3e7   :  { %7394 = vmatpush1.bf16.msra.mxu1 %v8772_v56  ;;  %v971_v53 = vld [vmem:[#allocation6 + $0x19f8] sm:$0xff]  ;;  %v9196_v56 = vcombine.low %v959_v27, %v963_v63 }
 0x3e8   :  { %7517 = vmatpush1.bf16.msra.mxu0 %v9156_v52  ;;  %7395 = vmatprep.subr.bf16.mxu1 %v8781_v16  ;;  %v595_v48 = vld [vmem:[#allocation6 + $0xe38] sm:$0xff] }
 0x3e9   :  { %7518 = vmatprep.subr.bf16.mxu0 %v9165_v14  ;;  %v9205_v14 = vcombine.high %v967_v26, %v971_v53  ;;  %v975_v57 = vld [vmem:[#allocation6 + $0x1a18] sm:$0xff] }
 0x3ea   :  { %v979_v59 = vld [vmem:[#allocation6 + $0x1a38] sm:$0xff] }
 0x3eb   :  { %7396 = vmatpush1.bf16.msra.mxu1 %v8780_v39  ;;  %v8820_v39 = vcombine.low %v583_v43, %v587_v23  ;;  %v603_v10 = vld [vmem:[#allocation6 + $0xe78] sm:$0xff]  ;;  %v9212_v38 = vcombine.low %v975_v57, %v979_v59 }
 0x3ec   :  { %7519 = vmatpush1.bf16.msra.mxu0 %v9164_v41  ;;  %7397 = vmatprep.subr.bf16.mxu1 %v8789_v8  ;;  %v9213_v8 = vcombine.high %v975_v57, %v979_v59  ;;  %v983_v17 = vld [vmem:[#allocation6 + $0x1a58] sm:$0xff]  ;;  %v7625_v59 = vlaneseq }
 0x3ed   :  { %7520 = vmatprep.subr.bf16.mxu0 %v9173_v21  ;;  %v599_v21 = vld [vmem:[#allocation6 + $0xe58] sm:$0xff] }
 0x3ee   :  { %v991_v61 = vld [vmem:[#allocation6 + $0x1a98] sm:$0xff]  ;;  %v8836_v28 = vcombine.low %v599_v21, %v603_v10 }
 0x3ef   :  { %7398 = vmatpush1.bf16.msra.mxu1 %v8788_v60  ;;  %v8837_v60 = vcombine.high %v599_v21, %v603_v10  ;;  %v995_v20 = vld [vmem:[#allocation6 + $0x1ab8] sm:$0xff] }
 0x3f0   :  { %7521 = vmatpush1.bf16.msra.mxu0 %v9172_v50  ;;  %7399 = vmatprep.subr.bf16.mxu1 %v8797_v19  ;;  %v607_v19 = vld [vmem:[#allocation6 + $0xe98] sm:$0xff]  ;;  %v9228_v63 = vcombine.low %v991_v61, %v995_v20 }
 0x3f1   :  { %7522 = vmatprep.subr.bf16.mxu0 %v9181_v51  ;;  %v611_v51 = vld [vmem:[#allocation6 + $0xeb8] sm:$0xff] }
 0x3f2   :  { %v999_v4 = vld [vmem:[#allocation6 + $0x1ad8] sm:$0xff]  ;;  %v8844_v27 = vcombine.low %v607_v19, %v611_v51 }
 0x3f3   :  { %7400 = vmatpush1.bf16.msra.mxu1 %v8796_v12  ;;  %v8845_v12 = vcombine.high %v607_v19, %v611_v51  ;;  %v1003_v25 = vld [vmem:[#allocation6 + $0x1af8] sm:$0xff] }
 0x3f4   :  { %7523 = vmatpush1.bf16.msra.mxu0 %v9180_v31  ;;  %7401 = vmatprep.subr.bf16.mxu1 %v8805_v40  ;;  %v9229_v31 = vcombine.high %v991_v61, %v995_v20  ;;  %v615_v40 = vld [vmem:[#allocation6 + $0xed8] sm:$0xff] }
 0x3f5   :  { %v7097_v36 = vpop.f32.mrb[40].mxu1  ;;  %7524 = vmatprep.subr.bf16.mxu0 %v9189_v24  ;;  %v619_v24 = vld [vmem:[#allocation6 + $0xef8] sm:$0xff] }
 0x3f6   :  { %v7098_v45 = vadd.f32 %v7097_v36, %v10426_v47  ;;  %v7099_v6 = vpop.f32.mrb[41].mxu1  ;;  %v10436_v55 = vpop.f32.mrb[40].mxu0  ;;  %v8821_v47 = vcombine.high %v583_v43, %v587_v23  ;;  %v627_v36 = vld [vmem:[#allocation6 + $0xf38] sm:$0xff]  ;;  %v8852_v23 = vcombine.low %v615_v40, %v619_v24 }
 0x3f7   :  { %v7100_v34 = vadd.f32 %v7099_v6, %v10429_v3  ;;  %v7101_v62 = vpop.f32.mrb[42].mxu1  ;;  %7402 = vmatpush1.bf16.msra.mxu1 %v8804_v29  ;;  %v10439_v46 = vpop.f32.mrb[41].mxu0  ;;  %v591_v3 = vld [vmem:[#allocation6 + $0xe18] sm:$0xff]  ;;  %v8853_v29 = vcombine.high %v615_v40, %v619_v24 }
 0x3f8   :  { %v10442_v44 = vadd.f32 %v10420_v9, %v7098_v45  ;;  %7525 = vmatpush1.bf16.msra.mxu0 %v9188_v33  ;;  %v7102_v11 = vpop.f32.mrb[43].mxu1  ;;  %7403 = vmatprep.subr.bf16.mxu1 %v8813_v35  ;;  %v7224_v52 = vpop.f32.mrb[42].mxu0  ;;  %v9204_v9 = vcombine.low %v967_v26, %v971_v53  ;;  %v8829_v41 = vcombine.high %v591_v3, %v595_v48  ;;  %v623_v35 = vld [vmem:[#allocation6 + $0xf18] sm:$0xff] }
 0x3f9   :  { %v10445_v16 = vadd.f32 %v10423_v30, %v7100_v34  ;;  %7526 = vmatprep.subr.bf16.mxu0 %v9197_v42  ;;  %v7225_v15 = vpop.f32.mrb[43].mxu0  ;;  %v987_v30 = vld [vmem:[#allocation6 + $0x1a78] sm:$0xff]  ;;  %v8828_v18 = vcombine.low %v591_v3, %v595_v48  ;;  %v9237_v33 = vcombine.high %v999_v4, %v1003_v25  ;;  %v9236_v45 = vcombine.low %v999_v4, %v1003_v25 }
 0x3fa   :  { %v9221_v50 = vcombine.high %v983_v17, %v987_v30  ;;  %v9220_v22 = vcombine.low %v983_v17, %v987_v30  ;;  %v1007_v42 = vld [vmem:[#allocation6 + $0x1b18] sm:$0xff]  ;;  %v8861_v6 = vcombine.high %v623_v35, %v627_v36  ;;  %v8860_v11 = vcombine.low %v623_v35, %v627_v36 }
 0x3fb   :  { %7404 = vmatpush1.bf16.msra.mxu1 %v8812_v5  ;;  %v1011_v43 = vld [vmem:[#allocation6 + $0x1b38] sm:$0xff] }
 0x3fc   :  { %7527 = vmatpush1.bf16.msra.mxu0 %v9196_v56  ;;  %7405 = vmatprep.subr.bf16.mxu1 %v8821_v47  ;;  %v9245_v26 = vcombine.high %v1007_v42, %v1011_v43  ;;  %v631_v53 = vld [vmem:[#allocation6 + $0xf58] sm:$0xff]  ;;  %v9244_v56 = vcombine.low %v1007_v42, %v1011_v43 }
 0x3fd   :  { %7528 = vmatprep.subr.bf16.mxu0 %v9205_v14  ;;  %v635_v34 = vld [vmem:[#allocation6 + $0xf78] sm:$0xff] }
 0x3fe   :  { %v1015_v62 = vld [vmem:[#allocation6 + $0x1b58] sm:$0xff]  ;;  %v8869_v47 = vcombine.high %v631_v53, %v635_v34  ;;  %v8868_v57 = vcombine.low %v631_v53, %v635_v34 }
 0x3ff   :  { %7406 = vmatpush1.bf16.msra.mxu1 %v8820_v39  ;;  %v1019_v5 = vld [vmem:[#allocation6 + $0x1b78] sm:$0xff] }
 0x400   :  { %7529 = vmatpush1.bf16.msra.mxu0 %v9204_v9  ;;  %7407 = vmatprep.subr.bf16.mxu1 %v8829_v41  ;;  %v9253_v52 = vcombine.high %v1015_v62, %v1019_v5  ;;  %v639_v14 = vld [vmem:[#allocation6 + $0xf98] sm:$0xff]  ;;  %v9252_v39 = vcombine.low %v1015_v62, %v1019_v5 }
 0x401   :  { %7530 = vmatprep.subr.bf16.mxu0 %v9213_v8  ;;  %v643_v3 = vld [vmem:[#allocation6 + $0xfb8] sm:$0xff] }
 0x402   :  { %v1023_v48 = vld [vmem:[#allocation6 + $0x1b98] sm:$0xff]  ;;  %v8877_v9 = vcombine.high %v639_v14, %v643_v3  ;;  %v8876_v30 = vcombine.low %v639_v14, %v643_v3  ;;  %v9814_v3 = vld [vmem:[#allocation9 + $0x140] ss:$8 sps:$4 sm:$0xff]  }
 0x403   :  { %7408 = vmatpush1.bf16.msra.mxu1 %v8828_v18  ;;  %v1027_v15 = vld [vmem:[#allocation6 + $0x1bb8] sm:$0xff]  ;;  %v10447_v18 = vshrl.u32 %v7625_v59, 7 }
 0x404   :  { %7531 = vmatpush1.bf16.msra.mxu0 %v9212_v38  ;;  %7409 = vmatprep.subr.bf16.mxu1 %v8837_v60  ;;  %v9261_v41 = vcombine.high %v1023_v48, %v1027_v15  ;;  %v647_v8 = vld [vmem:[#allocation6 + $0xfd8] sm:$0xff]  ;;  %v9260_v38 = vcombine.low %v1023_v48, %v1027_v15 }
 0x405   :  { %7532 = vmatprep.subr.bf16.mxu0 %v9221_v50  ;;  %v651_v21 = vld [vmem:[#allocation6 + $0xff8] sm:$0xff]  ;;  %v7639_v61 = vsub.s32 3, %v10447_v18 }
 0x406   :  { %v1031_v10 = vld [vmem:[#allocation6 + $0x1bd8] sm:$0xff]  ;;  %v8885_v60 = vcombine.high %v647_v8, %v651_v21  ;;  %v8884_v20 = vcombine.low %v647_v8, %v651_v21  ;;  %v9818_v21 = vld [vmem:[#allocation9 + $0x164] ss:$8 sps:$4 sm:$0xff]  }
 0x407   :  { %7410 = vmatpush1.bf16.msra.mxu1 %v8836_v28  ;;  %v1035_v17 = vld [vmem:[#allocation6 + $0x1bf8] sm:$0xff] }
 0x408   :  { %7533 = vmatpush1.bf16.msra.mxu0 %v9220_v22  ;;  %7411 = vmatprep.subr.bf16.mxu1 %v8845_v12  ;;  %v9269_v50 = vcombine.high %v1031_v10, %v1035_v17  ;;  %v783_v19 = vld [vmem:[#allocation6 + $0x1418] sm:$0xff]  ;;  %v9268_v28 = vcombine.low %v1031_v10, %v1035_v17  ;;  %v10450_v12 = vld [vmem:[#allocation8] sm:$0xff] }
 0x409   :  { %7534 = vmatprep.subr.bf16.mxu0 %v9229_v31  ;;  %v787_v51 = vld [vmem:[#allocation6 + $0x1438] sm:$0xff]  ;;  %v9800_v31 = vld [vmem:[#allocation9 + $0x104] ss:$8 sps:$4 sm:$0xff]   ;;  %v7640_v40 = vrot.slane %v10450_v12, %v7639_v61 }
 0x40a   :  { %v9021_v22 = vcombine.high %v783_v19, %v787_v51  ;;  %v791_v24 = vld [vmem:[#allocation6 + $0x1458] sm:$0xff]  ;;  %v9020_v25 = vcombine.low %v783_v19, %v787_v51 }
 0x40b   :  { %7412 = vmatpush1.bf16.msra.mxu1 %v8844_v27  ;;  %v795_v4 = vld [vmem:[#allocation6 + $0x1478] sm:$0xff]  ;;  %v9802_v27 = vld [vmem:[#allocation9 + $0x100] ss:$8 sps:$4 sm:$0xff]   ;;  %v7668_v36 = vadd.f32 %v7640_v40, %v10411_v0 }
 0x40c   :  { %7535 = vmatpush1.bf16.msra.mxu0 %v9228_v63  ;;  %7413 = vmatprep.subr.bf16.mxu1 %v8853_v29  ;;  %v9029_v63 = vcombine.high %v791_v24, %v795_v4  ;;  %v9803_v29 = vld [vmem:[#allocation9 + $0x114] ss:$8 sps:$4 sm:$0xff]   ;;  %v9028_v42 = vcombine.low %v791_v24, %v795_v4  ;;  %v9805_v43 = vld [vmem:[#allocation9 + $0x110] ss:$8 sps:$4 sm:$0xff]  }
 0x40d   :  { %7536 = vmatprep.subr.bf16.mxu0 %v9237_v33  ;;  %v799_v33 = vld [vmem:[#allocation6 + $0x1498] sm:$0xff] }
 0x40e   :  { %v803_v35 = vld [vmem:[#allocation6 + $0x14b8] sm:$0xff] }
 0x40f   :  { %7414 = vmatpush1.bf16.msra.mxu1 %v8852_v23  ;;  %v9037_v23 = vcombine.high %v799_v33, %v803_v35  ;;  %v9036_v53 = vcombine.low %v799_v33, %v803_v35  ;;  %v815_v34 = vld [vmem:[#allocation6 + $0x1518] sm:$0xff] }
 0x410   :  { %7537 = vmatpush1.bf16.msra.mxu0 %v9236_v45  ;;  %7415 = vmatprep.subr.bf16.mxu1 %v8861_v6  ;;  %v9806_v45 = vld [vmem:[#allocation9 + $0x124] ss:$8 sps:$4 sm:$0xff]   ;;  %v807_v6 = vld [vmem:[#allocation6 + $0x14d8] sm:$0xff] }
 0x411   :  { %7538 = vmatprep.subr.bf16.mxu0 %v9245_v26  ;;  %v811_v26 = vld [vmem:[#allocation6 + $0x14f8] sm:$0xff] }
 0x412   :  { %v9045_v0 = vcombine.high %v807_v6, %v811_v26  ;;  %v819_v62 = vld [vmem:[#allocation6 + $0x1538] sm:$0xff]  ;;  %v9044_v5 = vcombine.low %v807_v6, %v811_v26 }
 0x413   :  { %7416 = vmatpush1.bf16.msra.mxu1 %v8860_v11  ;;  %v9811_v11 = vld [vmem:[#allocation9 + $0x130] ss:$8 sps:$4 sm:$0xff]   ;;  %v9052_v14 = vcombine.low %v815_v34, %v819_v62  ;;  %v9815_v15 = vld [vmem:[#allocation9 + $0x154] ss:$8 sps:$4 sm:$0xff]  }
 0x414   :  { %7539 = vmatpush1.bf16.msra.mxu0 %v9244_v56  ;;  %7417 = vmatprep.subr.bf16.mxu1 %v8869_v47  ;;  %v9053_v56 = vcombine.high %v815_v34, %v819_v62  ;;  %v9812_v47 = vld [vmem:[#allocation9 + $0x144] ss:$8 sps:$4 sm:$0xff]   ;;  %v835_v59 = vld [vmem:[#allocation6 + $0x15b8] sm:$0xff]  ;;  %v9832_v62 = vld [vmem:[#allocation9 + $0x1a0] ss:$8 sps:$4 sm:$0xff]  }
 0x415   :  { %7540 = vmatprep.subr.bf16.mxu0 %v9253_v52  ;;  %v823_v52 = vld [vmem:[#allocation6 + $0x1558] sm:$0xff] }
 0x416   :  { %v839_v10 = vld [vmem:[#allocation6 + $0x15d8] sm:$0xff] }
 0x417   :  { %7418 = vmatpush1.bf16.msra.mxu1 %v8868_v57  ;;  %v831_v57 = vld [vmem:[#allocation6 + $0x1598] sm:$0xff] }
 0x418   :  { %7541 = vmatpush1.bf16.msra.mxu0 %v9252_v39  ;;  %7419 = vmatprep.subr.bf16.mxu1 %v8877_v9  ;;  %v9817_v9 = vld [vmem:[#allocation9 + $0x150] ss:$8 sps:$4 sm:$0xff]   ;;  %v9068_v51 = vcombine.low %v831_v57, %v835_v59  ;;  %v9821_v24 = vld [vmem:[#allocation9 + $0x174] ss:$8 sps:$4 sm:$0xff]  }
 0x419   :  { %7542 = vmatprep.subr.bf16.mxu0 %v9261_v41  ;;  %v9069_v41 = vcombine.high %v831_v57, %v835_v59  ;;  %v843_v17 = vld [vmem:[#allocation6 + $0x15f8] sm:$0xff]  ;;  %v9838_v59 = vld [vmem:[#allocation9 + $0x1c0] ss:$8 sps:$4 sm:$0xff]  }
 0x41a   :  { %v851_v4 = vld [vmem:[#allocation6 + $0x1638] sm:$0xff] }
 0x41b   :  { %7420 = vmatpush1.bf16.msra.mxu1 %v8876_v30  ;;  %v855_v33 = vld [vmem:[#allocation6 + $0x1658] sm:$0xff] }
 0x41c   :  { %7543 = vmatpush1.bf16.msra.mxu0 %v9260_v38  ;;  %7421 = vmatprep.subr.bf16.mxu1 %v8885_v60  ;;  %v859_v35 = vld [vmem:[#allocation6 + $0x1678] sm:$0xff] }
 0x41d   :  { %7544 = vmatprep.subr.bf16.mxu0 %v9269_v50  ;;  %v9092_v6 = vcombine.low %v855_v33, %v859_v35  ;;  %v9829_v26 = vld [vmem:[#allocation9 + $0x190] ss:$8 sps:$4 sm:$0xff]  }
 0x41f   :  { %7422 = vmatpush1.bf16.msra.mxu1 %v8884_v20 }
 0x420   :  { %7545 = vmatpush1.bf16.msra.mxu0 %v9268_v28  ;;  %7473 = vmatprep.subr.bf16.mxu1 %v9021_v22  ;;  %v9820_v22 = vld [vmem:[#allocation9 + $0x160] ss:$8 sps:$4 sm:$0xff]  }
 0x421   :  { %9463 = vmatprep.subr.bf16.mxu0 %v9800_v31  ;;  %v9077_v31 = vcombine.high %v839_v10, %v843_v17 }
 0x422   :  { %7424 = vmatmul.mubr.bf16.vlgmr.msra.gmra.mrb[56].mxu1 %v10263_v2  ;;  %v9808_v2 = vld [vmem:[#allocation9 + $0x120] ss:$8 sps:$4 sm:$0xff]  }
 0x423   :  { %7547 = vmatmul.mubr.bf16.vlgmr.msra.gmra.mrb[56].mxu0 %v10265_v7  ;;  %7474 = vmatpush1.bf16.msra.mxu1 %v9020_v25  ;;  %v9809_v7 = vld [vmem:[#allocation9 + $0x134] ss:$8 sps:$4 sm:$0xff]  }
 0x424   :  { %9465 = vmatpush1.bf16.msra.mxu0 %v9802_v27  ;;  %8204 = vmatprep.mubr.f32.mxu0 %v7668_v36  ;;  %v9076_v27 = vcombine.low %v839_v10, %v843_v17  ;;  %v9841_v10 = vld [vmem:[#allocation9 + $0x1d0] ss:$8 sps:$4 sm:$0xff]  }
 0x425   :  { %7475 = vmatprep.subr.bf16.mxu1 %v9029_v63  ;;  %9467 = vmatprep.subr.bf16.mxu0 %v9803_v29  ;;  %v9824_v29 = vld [vmem:[#allocation9 + $0x184] ss:$8 sps:$4 sm:$0xff]  }
 0x426   :  { %7505 = vmatprep.mubr.bf16.mxu1 %v10267_v13  ;;  %v827_v13 = vld [vmem:[#allocation6 + $0x1578] sm:$0xff] }
 0x427   :  { %7476 = vmatpush1.bf16.msra.mxu1 %v9028_v42  ;;  %v9061_v48 = vcombine.high %v823_v52, %v827_v13  ;;  %v9060_v39 = vcombine.low %v823_v52, %v827_v13  ;;  %v9093_v42 = vcombine.high %v855_v33, %v859_v35  ;;  %v9835_v13 = vld [vmem:[#allocation9 + $0x1b0] ss:$8 sps:$4 sm:$0xff]   ;;  %v9850_v35 = vld [vmem:[#allocation9 + $0x200] ss:$8 sps:$4 sm:$0xff]  }
 0x428   :  { %9469 = vmatpush1.bf16.msra.mxu0 %v9805_v43  ;;  %7477 = vmatprep.subr.bf16.mxu1 %v9037_v23  ;;  %v9827_v43 = vld [vmem:[#allocation9 + $0x194] ss:$8 sps:$4 sm:$0xff]  }
 0x429   :  { %9471 = vmatprep.subr.bf16.mxu0 %v9806_v45  ;;  %v863_v23 = vld [vmem:[#allocation6 + $0x1698] sm:$0xff] }
 0x42a   :  { %v867_v45 = vld [vmem:[#allocation6 + $0x16b8] sm:$0xff] }
 0x42b   :  { %7478 = vmatpush1.bf16.msra.mxu1 %v9036_v53  ;;  %v9101_v53 = vcombine.high %v863_v23, %v867_v45  ;;  %v9100_v34 = vcombine.low %v863_v23, %v867_v45  ;;  %v1059_v23 = vld [vmem:[#allocation6 + $0x1cb8] sm:$0xff] }
 0x42c   :  { %9473 = vmatpush1.bf16.msra.mxu0 %v9808_v2  ;;  %7479 = vmatprep.subr.bf16.mxu1 %v9045_v0  ;;  %v9830_v2 = vld [vmem:[#allocation9 + $0x1a4] ss:$8 sps:$4 sm:$0xff]   ;;  %v871_v0 = vld [vmem:[#allocation6 + $0x16d8] sm:$0xff] }
 0x42d   :  { %9475 = vmatprep.subr.bf16.mxu0 %v9809_v7  ;;  %v875_v7 = vld [vmem:[#allocation6 + $0x16f8] sm:$0xff] }
 0x42e   :  { %v9108_v52 = vcombine.low %v871_v0, %v875_v7 }
 0x42f   :  { %7480 = vmatpush1.bf16.msra.mxu1 %v9044_v5  ;;  %v9109_v5 = vcombine.high %v871_v0, %v875_v7  ;;  %v1067_v0 = vld [vmem:[#allocation6 + $0x1cf8] sm:$0xff]  ;;  %v9856_v7 = vld [vmem:[#allocation9 + $0x220] ss:$8 sps:$4 sm:$0xff]  }
 0x430   :  { %9477 = vmatpush1.bf16.msra.mxu0 %v9811_v11  ;;  %7481 = vmatprep.subr.bf16.mxu1 %v9053_v56  ;;  %v9833_v11 = vld [vmem:[#allocation9 + $0x1b4] ss:$8 sps:$4 sm:$0xff]  }
 0x431   :  { %9479 = vmatprep.subr.bf16.mxu0 %v9812_v47  ;;  %v879_v56 = vld [vmem:[#allocation6 + $0x1718] sm:$0xff] }
 0x432   :  { %v883_v47 = vld [vmem:[#allocation6 + $0x1738] sm:$0xff] }
 0x433   :  { %7482 = vmatpush1.bf16.msra.mxu1 %v9052_v14  ;;  %v9117_v14 = vcombine.high %v879_v56, %v883_v47  ;;  %v9116_v57 = vcombine.low %v879_v56, %v883_v47  ;;  %v9859_v56 = vld [vmem:[#allocation9 + $0x230] ss:$8 sps:$4 sm:$0xff]  }
 0x434   :  { %9481 = vmatpush1.bf16.msra.mxu0 %v9814_v3  ;;  %7483 = vmatprep.subr.bf16.mxu1 %v9061_v48  ;;  %v9836_v3 = vld [vmem:[#allocation9 + $0x1c4] ss:$8 sps:$4 sm:$0xff]   ;;  %v887_v48 = vld [vmem:[#allocation6 + $0x1758] sm:$0xff] }
 0x435   :  { %v7179_v8 = vpop.f32.mrb[44].mxu1  ;;  %9483 = vmatprep.subr.bf16.mxu0 %v9815_v15  ;;  %v891_v15 = vld [vmem:[#allocation6 + $0x1778] sm:$0xff] }
 0x436   :  { %v7180_v30 = vadd.f32 %v7179_v8, %v10442_v44  ;;  %v7181_v38 = vpop.f32.mrb[45].mxu1  ;;  %v10458_v60 = vpop.f32.mrb[44].mxu0  ;;  %v899_v8 = vld [vmem:[#allocation6 + $0x17b8] sm:$0xff] }
 0x437   :  { %v7182_v50 = vadd.f32 %v7181_v38, %v10445_v16  ;;  %v7183_v19 = vpop.f32.mrb[46].mxu1  ;;  %7484 = vmatpush1.bf16.msra.mxu1 %v9060_v39  ;;  %v10461_v61 = vpop.f32.mrb[45].mxu0  ;;  %v847_v16 = vld [vmem:[#allocation6 + $0x1618] sm:$0xff]  ;;  %v9125_v39 = vcombine.high %v887_v48, %v891_v15 }
 0x438   :  { %v10464_v20 = vadd.f32 %v10436_v55, %v7180_v30  ;;  %9485 = vmatpush1.bf16.msra.mxu0 %v9817_v9  ;;  %v7184_v28 = vpop.f32.mrb[47].mxu1  ;;  %7485 = vmatprep.subr.bf16.mxu1 %v9069_v41  ;;  %v7306_v40 = vpop.f32.mrb[46].mxu0  ;;  %v9823_v55 = vld [vmem:[#allocation9 + $0x170] ss:$8 sps:$4 sm:$0xff]   ;;  %v9085_v63 = vcombine.high %v847_v16, %v851_v4  ;;  %v9084_v36 = vcombine.low %v847_v16, %v851_v4  ;;  %v9839_v9 = vld [vmem:[#allocation9 + $0x1d4] ss:$8 sps:$4 sm:$0xff]  }
 0x439   :  { %v10467_v44 = vadd.f32 %v10439_v46, %v7182_v50  ;;  %9487 = vmatprep.subr.bf16.mxu0 %v9818_v21  ;;  %v7307_v25 = vpop.f32.mrb[47].mxu0  ;;  %v9826_v46 = vld [vmem:[#allocation9 + $0x180] ss:$8 sps:$4 sm:$0xff]   ;;  %v895_v41 = vld [vmem:[#allocation6 + $0x1798] sm:$0xff]  ;;  %v9124_v21 = vcombine.low %v887_v48, %v891_v15  ;;  %v9842_v30 = vld [vmem:[#allocation9 + $0x1e4] ss:$8 sps:$4 sm:$0xff]  }
 0x43a   :  { %v9133_v17 = vcombine.high %v895_v41, %v899_v8  ;;  %v903_v38 = vld [vmem:[#allocation6 + $0x17d8] sm:$0xff]  ;;  %v9132_v19 = vcombine.low %v895_v41, %v899_v8  ;;  %v7647_v15 = vsub.s32 5, %v10447_v18 }
 0x43b   :  { %7486 = vmatpush1.bf16.msra.mxu1 %v9068_v51  ;;  %v907_v50 = vld [vmem:[#allocation6 + $0x17f8] sm:$0xff]  ;;  %v9844_v51 = vld [vmem:[#allocation9 + $0x1e0] ss:$8 sps:$4 sm:$0xff]  }
 0x43c   :  { %9489 = vmatpush1.bf16.msra.mxu0 %v9820_v22  ;;  %7487 = vmatprep.subr.bf16.mxu1 %v9077_v31  ;;  %v9141_v28 = vcombine.high %v903_v38, %v907_v50  ;;  %v7635_v22 = vsub.s32 2, %v10447_v18  ;;  %v9845_v31 = vld [vmem:[#allocation9 + $0x1f4] ss:$8 sps:$4 sm:$0xff]   ;;  %v9140_v16 = vcombine.low %v903_v38, %v907_v50  ;;  %v9847_v4 = vld [vmem:[#allocation9 + $0x1f0] ss:$8 sps:$4 sm:$0xff]  }
 0x43d   :  { %9491 = vmatprep.subr.bf16.mxu0 %v9821_v24  ;;  %v1039_v40 = vld [vmem:[#allocation6 + $0x1c18] sm:$0xff] }
 0x43e   :  { %v1043_v24 = vld [vmem:[#allocation6 + $0x1c38] sm:$0xff] }
 0x43f   :  { %7488 = vmatpush1.bf16.msra.mxu1 %v9076_v27  ;;  %v9277_v25 = vcombine.high %v1039_v40, %v1043_v24  ;;  %v7636_v27 = vrot.slane %v10450_v12, %v7635_v22  ;;  %v9276_v33 = vcombine.low %v1039_v40, %v1043_v24  ;;  %v9865_v41 = vld [vmem:[#allocation9 + $0x250] ss:$8 sps:$4 sm:$0xff]  }
 0x440   :  { %9493 = vmatpush1.bf16.msra.mxu0 %v9823_v55  ;;  %7489 = vmatprep.subr.bf16.mxu1 %v9085_v63  ;;  %v9848_v55 = vld [vmem:[#allocation9 + $0x204] ss:$8 sps:$4 sm:$0xff]   ;;  %v1047_v63 = vld [vmem:[#allocation6 + $0x1c58] sm:$0xff] }
 0x441   :  { %9495 = vmatprep.subr.bf16.mxu0 %v9824_v29  ;;  %v1051_v29 = vld [vmem:[#allocation6 + $0x1c78] sm:$0xff] }
 0x442   :  { %v9284_v45 = vcombine.low %v1047_v63, %v1051_v29  ;;  %v1099_v38 = vld [vmem:[#allocation6 + $0x1df8] sm:$0xff] }
 0x443   :  { %7490 = vmatpush1.bf16.msra.mxu1 %v9084_v36  ;;  %v9285_v36 = vcombine.high %v1047_v63, %v1051_v29  ;;  %v1107_v63 = vld [vmem:[#allocation6 + $0x1e38] sm:$0xff] }
 0x444   :  { %9497 = vmatpush1.bf16.msra.mxu0 %v9826_v46  ;;  %7491 = vmatprep.subr.bf16.mxu1 %v9093_v42  ;;  %v7667_v46 = vadd.f32 %v7636_v27, %v10406_v54  ;;  %v9851_v42 = vld [vmem:[#allocation9 + $0x214] ss:$8 sps:$4 sm:$0xff]  }
 0x445   :  { %9499 = vmatprep.subr.bf16.mxu0 %v9827_v43  ;;  %v1055_v43 = vld [vmem:[#allocation6 + $0x1c98] sm:$0xff] }
 0x446   :  { %v9292_v54 = vcombine.low %v1055_v43, %v1059_v23 }
 0x447   :  { %7492 = vmatpush1.bf16.msra.mxu1 %v9092_v6  ;;  %v9853_v6 = vld [vmem:[#allocation9 + $0x210] ss:$8 sps:$4 sm:$0xff]  }
 0x448   :  { %9501 = vmatpush1.bf16.msra.mxu0 %v9829_v26  ;;  %7493 = vmatprep.subr.bf16.mxu1 %v9101_v53  ;;  %v9293_v26 = vcombine.high %v1055_v43, %v1059_v23  ;;  %v9854_v53 = vld [vmem:[#allocation9 + $0x224] ss:$8 sps:$4 sm:$0xff]   ;;  %v9874_v23 = vld [vmem:[#allocation9 + $0x280] ss:$8 sps:$4 sm:$0xff]  }
 0x449   :  { %9503 = vmatprep.subr.bf16.mxu0 %v9830_v2  ;;  %v1063_v2 = vld [vmem:[#allocation6 + $0x1cd8] sm:$0xff] }
 0x44b   :  { %7494 = vmatpush1.bf16.msra.mxu1 %v9100_v34  ;;  %v9301_v34 = vcombine.high %v1063_v2, %v1067_v0 }
 0x44c   :  { %9505 = vmatpush1.bf16.msra.mxu0 %v9832_v62  ;;  %7495 = vmatprep.subr.bf16.mxu1 %v9109_v5  ;;  %v1071_v62 = vld [vmem:[#allocation6 + $0x1d18] sm:$0xff] }
 0x44d   :  { %9507 = vmatprep.subr.bf16.mxu0 %v9833_v11  ;;  %v1075_v5 = vld [vmem:[#allocation6 + $0x1d38] sm:$0xff]  ;;  %v9300_v11 = vcombine.low %v1063_v2, %v1067_v0 }
 0x44e   :  { %v9309_v47 = vcombine.high %v1071_v62, %v1075_v5  ;;  %v9877_v0 = vld [vmem:[#allocation9 + $0x290] ss:$8 sps:$4 sm:$0xff]  }
 0x44f   :  { %7496 = vmatpush1.bf16.msra.mxu1 %v9108_v52  ;;  %v9860_v52 = vld [vmem:[#allocation9 + $0x244] ss:$8 sps:$4 sm:$0xff]  }
 0x450   :  { %9509 = vmatpush1.bf16.msra.mxu0 %v9835_v13  ;;  %7497 = vmatprep.subr.bf16.mxu1 %v9117_v14  ;;  %v1079_v13 = vld [vmem:[#allocation6 + $0x1d58] sm:$0xff]  ;;  %v9308_v14 = vcombine.low %v1071_v62, %v1075_v5  ;;  %v9880_v5 = vld [vmem:[#allocation9 + $0x2a0] ss:$8 sps:$4 sm:$0xff]  }
 0x451   :  { %9511 = vmatprep.subr.bf16.mxu0 %v9836_v3  ;;  %v9862_v3 = vld [vmem:[#allocation9 + $0x240] ss:$8 sps:$4 sm:$0xff]  }
 0x453   :  { %7498 = vmatpush1.bf16.msra.mxu1 %v9116_v57  ;;  %v9863_v57 = vld [vmem:[#allocation9 + $0x254] ss:$8 sps:$4 sm:$0xff]  }
 0x454   :  { %9513 = vmatpush1.bf16.msra.mxu0 %v9838_v59  ;;  %7499 = vmatprep.subr.bf16.mxu1 %v9125_v39  ;;  %v1087_v59 = vld [vmem:[#allocation6 + $0x1d98] sm:$0xff] }
 0x455   :  { %9515 = vmatprep.subr.bf16.mxu0 %v9839_v9  ;;  %v1091_v39 = vld [vmem:[#allocation6 + $0x1db8] sm:$0xff] }
 0x456   :  { %v9325_v8 = vcombine.high %v1087_v59, %v1091_v39 }
 0x457   :  { %7500 = vmatpush1.bf16.msra.mxu1 %v9124_v21 }
 0x458   :  { %9517 = vmatpush1.bf16.msra.mxu0 %v9841_v10  ;;  %7501 = vmatprep.subr.bf16.mxu1 %v9133_v17  ;;  %v7648_v10 = vrot.slane %v10450_v12, %v7647_v15  ;;  %v9866_v17 = vld [vmem:[#allocation9 + $0x264] ss:$8 sps:$4 sm:$0xff]   ;;  %v1147_v15 = vld [vmem:[#allocation6 + $0x1f78] sm:$0xff] }
 0x459   :  { %9519 = vmatprep.subr.bf16.mxu0 %v9842_v30  ;;  %v1095_v30 = vld [vmem:[#allocation6 + $0x1dd8] sm:$0xff] }
 0x45b   :  { %7502 = vmatpush1.bf16.msra.mxu1 %v9132_v19 }
 0x45c   :  { %9521 = vmatpush1.bf16.msra.mxu0 %v9844_v51  ;;  %7503 = vmatprep.subr.bf16.mxu1 %v9141_v28 }
 0x45d   :  { %9523 = vmatprep.subr.bf16.mxu0 %v9845_v31  ;;  %v9324_v31 = vcombine.low %v1087_v59, %v1091_v39  ;;  %v9886_v59 = vld [vmem:[#allocation9 + $0x2c0] ss:$8 sps:$4 sm:$0xff]  }
 0x45f   :  { %7504 = vmatpush1.bf16.msra.mxu1 %v9140_v16  ;;  %v9868_v16 = vld [vmem:[#allocation9 + $0x260] ss:$8 sps:$4 sm:$0xff]  }
 0x460   :  { %9525 = vmatpush1.bf16.msra.mxu0 %v9847_v4  ;;  %7555 = vmatprep.subr.bf16.mxu1 %v9277_v25  ;;  %v9333_v4 = vcombine.high %v1095_v30, %v1099_v38 }
 0x461   :  { %9527 = vmatprep.subr.bf16.mxu0 %v9848_v55  ;;  %v1103_v55 = vld [vmem:[#allocation6 + $0x1e18] sm:$0xff] }
 0x462   :  { %7506 = vmatmul.mubr.bf16.vlgmr.msra.gmra.mrb[60].mxu1 %v10273_v37  ;;  %v9857_v37 = vld [vmem:[#allocation9 + $0x234] ss:$8 sps:$4 sm:$0xff]   ;;  %v9340_v43 = vcombine.low %v1103_v55, %v1107_v63 }
 0x463   :  { %8205 = vmatmul.mubr.f32.vlgmr.msra.gmra.mrb[60].mxu0 %v7667_v46  ;;  %7556 = vmatpush1.bf16.msra.mxu1 %v9276_v33  ;;  %v9871_v33 = vld [vmem:[#allocation9 + $0x270] ss:$8 sps:$4 sm:$0xff]  }
 0x464   :  { %9529 = vmatpush1.bf16.msra.mxu0 %v9850_v35  ;;  %7557 = vmatprep.subr.bf16.mxu1 %v9285_v36  ;;  %v9341_v35 = vcombine.high %v1103_v55, %v1107_v63  ;;  %v9872_v36 = vld [vmem:[#allocation9 + $0x284] ss:$8 sps:$4 sm:$0xff]   ;;  %v1111_v46 = vld [vmem:[#allocation6 + $0x1e58] sm:$0xff] }
 0x465   :  { %9531 = vmatprep.subr.bf16.mxu0 %v9851_v42  ;;  %7587 = vmatprep.mubr.bf16.mxu1 %v10275_v49  ;;  %v1083_v49 = vld [vmem:[#allocation6 + $0x1d78] sm:$0xff] }
 0x466   :  { %v9317_v48 = vcombine.high %v1079_v13, %v1083_v49  ;;  %v9316_v9 = vcombine.low %v1079_v13, %v1083_v49  ;;  %v1115_v42 = vld [vmem:[#allocation6 + $0x1e78] sm:$0xff] }
 0x467   :  { %7558 = vmatpush1.bf16.msra.mxu1 %v9284_v45  ;;  %v9349_v45 = vcombine.high %v1111_v46, %v1115_v42  ;;  %v9348_v2 = vcombine.low %v1111_v46, %v1115_v42  ;;  %v9883_v49 = vld [vmem:[#allocation9 + $0x2b0] ss:$8 sps:$4 sm:$0xff]   ;;  %v9902_v46 = vld [vmem:[#allocation9 + $0x24] ss:$8 sps:$4 sm:$0xff]   ;;  %v9904_v42 = vld [vmem:[#allocation9 + $0x20] ss:$8 sps:$4 sm:$0xff]  }
 0x468   :  { %9533 = vmatpush1.bf16.msra.mxu0 %v9853_v6  ;;  %7559 = vmatprep.subr.bf16.mxu1 %v9293_v26  ;;  %v9875_v6 = vld [vmem:[#allocation9 + $0x294] ss:$8 sps:$4 sm:$0xff]  }
 0x469   :  { %9535 = vmatprep.subr.bf16.mxu0 %v9854_v53  ;;  %v1119_v26 = vld [vmem:[#allocation6 + $0x1e98] sm:$0xff] }
 0x46a   :  { %v1123_v53 = vld [vmem:[#allocation6 + $0x1eb8] sm:$0xff] }
 0x46b   :  { %7560 = vmatpush1.bf16.msra.mxu1 %v9292_v54  ;;  %v9357_v54 = vcombine.high %v1119_v26, %v1123_v53  ;;  %v9356_v62 = vcombine.low %v1119_v26, %v1123_v53 }
 0x46c   :  { %9537 = vmatpush1.bf16.msra.mxu0 %v9856_v7  ;;  %7561 = vmatprep.subr.bf16.mxu1 %v9301_v34  ;;  %v9878_v7 = vld [vmem:[#allocation9 + $0x2a4] ss:$8 sps:$4 sm:$0xff]   ;;  %v1127_v34 = vld [vmem:[#allocation6 + $0x1ed8] sm:$0xff] }
 0x46d   :  { %9539 = vmatprep.subr.bf16.mxu0 %v9857_v37  ;;  %v1131_v37 = vld [vmem:[#allocation6 + $0x1ef8] sm:$0xff] }
 0x46e   :  { %v9364_v13 = vcombine.low %v1127_v34, %v1131_v37 }
 0x46f   :  { %7562 = vmatpush1.bf16.msra.mxu1 %v9300_v11  ;;  %v9365_v11 = vcombine.high %v1127_v34, %v1131_v37  ;;  %v9916_v34 = vld [vmem:[#allocation9 + $0x60] ss:$8 sps:$4 sm:$0xff]  }
 0x470   :  { %9541 = vmatpush1.bf16.msra.mxu0 %v9859_v56  ;;  %7563 = vmatprep.subr.bf16.mxu1 %v9309_v47  ;;  %v9881_v56 = vld [vmem:[#allocation9 + $0x2b4] ss:$8 sps:$4 sm:$0xff]  }
 0x471   :  { %9543 = vmatprep.subr.bf16.mxu0 %v9860_v52  ;;  %v1135_v47 = vld [vmem:[#allocation6 + $0x1f18] sm:$0xff] }
 0x472   :  { %v1139_v52 = vld [vmem:[#allocation6 + $0x1f38] sm:$0xff] }
 0x473   :  { %7564 = vmatpush1.bf16.msra.mxu1 %v9308_v14  ;;  %v9373_v14 = vcombine.high %v1135_v47, %v1139_v52 }
 0x474   :  { %9545 = vmatpush1.bf16.msra.mxu0 %v9862_v3  ;;  %7565 = vmatprep.subr.bf16.mxu1 %v9317_v48  ;;  %v9884_v3 = vld [vmem:[#allocation9 + $0x2c4] ss:$8 sps:$4 sm:$0xff]   ;;  %v1143_v48 = vld [vmem:[#allocation6 + $0x1f58] sm:$0xff] }
 0x475   :  { %v7261_v21 = vpop.f32.mrb[48].mxu1  ;;  %9547 = vmatprep.subr.bf16.mxu0 %v9863_v57  ;;  %v9372_v57 = vcombine.low %v1135_v47, %v1139_v52  ;;  %v9381_v39 = vcombine.high %v1143_v48, %v1147_v15  ;;  %v9944_v52 = vld [vmem:[#allocation9 + $0x304] ss:$8 sps:$4 sm:$0xff]  }
 0x476   :  { %v10477_v50 = vadd.f32 %v7261_v21, %v10464_v20  ;;  %v7263_v19 = vpop.f32.mrb[49].mxu1  ;;  %v10479_v51 = vpop.f32.mrb[48].mxu0  ;;  %v9869_v20 = vld [vmem:[#allocation9 + $0x274] ss:$8 sps:$4 sm:$0xff]   ;;  %v9380_v21 = vcombine.low %v1143_v48, %v1147_v15  ;;  %v9922_v48 = vld [vmem:[#allocation9 + $0x80] ss:$8 sps:$4 sm:$0xff]  }
 0x477   :  { %v7264_v28 = vadd.f32 %v7263_v19, %v10467_v44  ;;  %v7265_v22 = vpop.f32.mrb[50].mxu1  ;;  %7566 = vmatpush1.bf16.msra.mxu1 %v9316_v9  ;;  %v10482_v40 = vpop.f32.mrb[49].mxu0  ;;  %v9332_v44 = vcombine.low %v1095_v30, %v1099_v38  ;;  %v9887_v9 = vld [vmem:[#allocation9 + $0x2d4] ss:$8 sps:$4 sm:$0xff]   ;;  %v9890_v30 = vld [vmem:[#allocation9 + $0x2e4] ss:$8 sps:$4 sm:$0xff]  }
 0x478   :  { %9549 = vmatpush1.bf16.msra.mxu0 %v9865_v41  ;;  %v7266_v24 = vpop.f32.mrb[51].mxu1  ;;  %7567 = vmatprep.subr.bf16.mxu1 %v9325_v8  ;;  %v7388_v25 = vpop.f32.mrb[50].mxu0  ;;  %v1151_v41 = vld [vmem:[#allocation6 + $0x1f98] sm:$0xff]  ;;  %v9892_v22 = vld [vmem:[#allocation9 + $0x2e0] ss:$8 sps:$4 sm:$0xff]  }
 0x479   :  { %v7670_v27 = vadd.f32 %v7648_v10, %v7264_v28  ;;  %9551 = vmatprep.subr.bf16.mxu0 %v9866_v17  ;;  %v7389_v29 = vpop.f32.mrb[51].mxu0  ;;  %v1155_v8 = vld [vmem:[#allocation6 + $0x1fb8] sm:$0xff]  ;;  %v7643_v24 = vsub.s32 4, %v10447_v18 }
 0x47a   :  { %v9889_v10 = vld [vmem:[#allocation9 + $0x2d0] ss:$8 sps:$4 sm:$0xff]   ;;  %v9389_v17 = vcombine.high %v1151_v41, %v1155_v8  ;;  %v9388_v28 = vcombine.low %v1151_v41, %v1155_v8  ;;  %v9898_v29 = vld [vmem:[#allocation9] ss:$8 sps:$4 sm:$0xff]   ;;  %v9923_v15 = vld [vmem:[#allocation9 + $0x94] ss:$8 sps:$4 sm:$0xff]  }
 0x47b   :  { %7568 = vmatpush1.bf16.msra.mxu1 %v9324_v31  ;;  %8275 = vmatprep.mubr.f32.mxu0 %v7670_v27  ;;  %v1159_v38 = vld [vmem:[#allocation6 + $0x1fd8] sm:$0xff]  ;;  %v7644_v55 = vrot.slane %v10450_v12, %v7643_v24  ;;  %v9956_v41 = vld [vmem:[#allocation9 + $0x344] ss:$8 sps:$4 sm:$0xff]   ;;  %v9928_v8 = vld [vmem:[#allocation9 + $0xa0] ss:$8 sps:$4 sm:$0xff]  }
 0x47c   :  { %9553 = vmatpush1.bf16.msra.mxu0 %v9868_v16  ;;  %7569 = vmatprep.subr.bf16.mxu1 %v9333_v4  ;;  %v1163_v19 = vld [vmem:[#allocation6 + $0x1ff8] sm:$0xff]  ;;  %v7631_v4 = vsub.s32 1, %v10447_v18  ;;  %v9964_v24 = vld [vmem:[#allocation9 + $0x360] ss:$8 sps:$4 sm:$0xff]  }
 0x47d   :  { %9555 = vmatprep.subr.bf16.mxu0 %v9869_v20  ;;  %v9397_v31 = vcombine.high %v1159_v38, %v1163_v19  ;;  %v9893_v16 = vld [vmem:[#allocation9 + $0x2f4] ss:$8 sps:$4 sm:$0xff]   ;;  %v9396_v25 = vcombine.low %v1159_v38, %v1163_v19  ;;  %v9895_v27 = vld [vmem:[#allocation9 + $0x2f0] ss:$8 sps:$4 sm:$0xff]   ;;  %v9896_v20 = vld [vmem:[#allocation9 + $0x4] ss:$8 sps:$4 sm:$0xff]  }
 0x47e   :  { %v7632_v63 = vrot.slane %v10450_v12, %v7631_v4  ;;  %v9932_v38 = vld [vmem:[#allocation9 + $0xc4] ss:$8 sps:$4 sm:$0xff]   ;;  %v9961_v19 = vld [vmem:[#allocation9 + $0x350] ss:$8 sps:$4 sm:$0xff]  }
 0x47f   :  { %7570 = vmatpush1.bf16.msra.mxu1 %v9332_v44  ;;  %v9899_v44 = vld [vmem:[#allocation9 + $0x14] ss:$8 sps:$4 sm:$0xff]  }
 0x480   :  { %9557 = vmatpush1.bf16.msra.mxu0 %v9871_v33  ;;  %7571 = vmatprep.subr.bf16.mxu1 %v9341_v35  ;;  %v7669_v33 = vadd.f32 %v7644_v55, %v10477_v50  ;;  %v7666_v35 = vadd.f32 %v7632_v63, %v10349_v1  ;;  %v9910_v50 = vld [vmem:[#allocation9 + $0x40] ss:$8 sps:$4 sm:$0xff]   ;;  %v9911_v1 = vld [vmem:[#allocation9 + $0x54] ss:$8 sps:$4 sm:$0xff]   ;;  %v9968_v55 = vld [vmem:[#allocation9 + $0x384] ss:$8 sps:$4 sm:$0xff]  }
 0x481   :  { %9559 = vmatprep.subr.bf16.mxu0 %v9872_v36  ;;  %v9901_v36 = vld [vmem:[#allocation9 + $0x10] ss:$8 sps:$4 sm:$0xff]   ;;  %v9940_v63 = vld [vmem:[#allocation9 + $0xe0] ss:$8 sps:$4 sm:$0xff]  }
 0x483   :  { %7572 = vmatpush1.bf16.msra.mxu1 %v9340_v43  ;;  %v9905_v43 = vld [vmem:[#allocation9 + $0x34] ss:$8 sps:$4 sm:$0xff]  }
 0x484   :  { %9561 = vmatpush1.bf16.msra.mxu0 %v9874_v23  ;;  %7573 = vmatprep.subr.bf16.mxu1 %v9349_v45  ;;  %v9907_v23 = vld [vmem:[#allocation9 + $0x30] ss:$8 sps:$4 sm:$0xff]   ;;  %v9908_v45 = vld [vmem:[#allocation9 + $0x44] ss:$8 sps:$4 sm:$0xff]  }
 0x485   :  { %9563 = vmatprep.subr.bf16.mxu0 %v9875_v6  ;;  %v9914_v6 = vld [vmem:[#allocation9 + $0x64] ss:$8 sps:$4 sm:$0xff]  }
 0x487   :  { %7574 = vmatpush1.bf16.msra.mxu1 %v9348_v2 }
 0x488   :  { %9565 = vmatpush1.bf16.msra.mxu0 %v9877_v0  ;;  %7575 = vmatprep.subr.bf16.mxu1 %v9357_v54 }
 0x489   :  { %9567 = vmatprep.subr.bf16.mxu0 %v9878_v7 }
 0x48b   :  { %7576 = vmatpush1.bf16.msra.mxu1 %v9356_v62 }
 0x48c   :  { %9569 = vmatpush1.bf16.msra.mxu0 %v9880_v5  ;;  %7577 = vmatprep.subr.bf16.mxu1 %v9365_v11  ;;  %v9917_v11 = vld [vmem:[#allocation9 + $0x74] ss:$8 sps:$4 sm:$0xff]  }
 0x48d   :  { %9571 = vmatprep.subr.bf16.mxu0 %v9881_v56 }
 0x48f   :  { %7578 = vmatpush1.bf16.msra.mxu1 %v9364_v13  ;;  %v9946_v13 = vld [vmem:[#allocation9 + $0x300] ss:$8 sps:$4 sm:$0xff]  }
 0x490   :  { %9573 = vmatpush1.bf16.msra.mxu0 %v9883_v49  ;;  %7579 = vmatprep.subr.bf16.mxu1 %v9373_v14  ;;  %v9947_v49 = vld [vmem:[#allocation9 + $0x314] ss:$8 sps:$4 sm:$0xff]   ;;  %v9920_v14 = vld [vmem:[#allocation9 + $0x84] ss:$8 sps:$4 sm:$0xff]  }
 0x491   :  { %9575 = vmatprep.subr.bf16.mxu0 %v9884_v3  ;;  %v9949_v3 = vld [vmem:[#allocation9 + $0x310] ss:$8 sps:$4 sm:$0xff]  }
 0x493   :  { %7580 = vmatpush1.bf16.msra.mxu1 %v9372_v57  ;;  %v9953_v57 = vld [vmem:[#allocation9 + $0x334] ss:$8 sps:$4 sm:$0xff]  }
 0x494   :  { %9577 = vmatpush1.bf16.msra.mxu0 %v9886_v59  ;;  %7581 = vmatprep.subr.bf16.mxu1 %v9381_v39  ;;  %v9925_v59 = vld [vmem:[#allocation9 + $0x90] ss:$8 sps:$4 sm:$0xff]   ;;  %v9926_v39 = vld [vmem:[#allocation9 + $0xa4] ss:$8 sps:$4 sm:$0xff]  }
 0x495   :  { %9579 = vmatprep.subr.bf16.mxu0 %v9887_v9  ;;  %v9955_v9 = vld [vmem:[#allocation9 + $0x330] ss:$8 sps:$4 sm:$0xff]  }
 0x497   :  { %7582 = vmatpush1.bf16.msra.mxu1 %v9380_v21  ;;  %v9929_v21 = vld [vmem:[#allocation9 + $0xb4] ss:$8 sps:$4 sm:$0xff]  }
 0x498   :  { %9581 = vmatpush1.bf16.msra.mxu0 %v9889_v10  ;;  %7583 = vmatprep.subr.bf16.mxu1 %v9389_v17  ;;  %v9958_v10 = vld [vmem:[#allocation9 + $0x340] ss:$8 sps:$4 sm:$0xff]   ;;  %v9959_v17 = vld [vmem:[#allocation9 + $0x354] ss:$8 sps:$4 sm:$0xff]  }
 0x499   :  { %9583 = vmatprep.subr.bf16.mxu0 %v9890_v30  ;;  %v9931_v30 = vld [vmem:[#allocation9 + $0xb0] ss:$8 sps:$4 sm:$0xff]  }
 0x49b   :  { %7584 = vmatpush1.bf16.msra.mxu1 %v9388_v28  ;;  %v9962_v28 = vld [vmem:[#allocation9 + $0x364] ss:$8 sps:$4 sm:$0xff]  }
 0x49c   :  { %9585 = vmatpush1.bf16.msra.mxu0 %v9892_v22  ;;  %7585 = vmatprep.subr.bf16.mxu1 %v9397_v31  ;;  %v9934_v22 = vld [vmem:[#allocation9 + $0xc0] ss:$8 sps:$4 sm:$0xff]   ;;  %v9935_v31 = vld [vmem:[#allocation9 + $0xd4] ss:$8 sps:$4 sm:$0xff]  }
 0x49d   :  { %9587 = vmatprep.subr.bf16.mxu0 %v9893_v16  ;;  %v9965_v16 = vld [vmem:[#allocation9 + $0x374] ss:$8 sps:$4 sm:$0xff]  }
 0x49f   :  { %7586 = vmatpush1.bf16.msra.mxu1 %v9396_v25  ;;  %v9937_v25 = vld [vmem:[#allocation9 + $0xd0] ss:$8 sps:$4 sm:$0xff]  }
 0x4a0   :  { %9589 = vmatpush1.bf16.msra.mxu0 %v9895_v27  ;;  %9399 = vmatprep.subr.bf16.mxu1 %v9896_v20  ;;  %v9938_v27 = vld [vmem:[#allocation9 + $0xe4] ss:$8 sps:$4 sm:$0xff]   ;;  %v9967_v20 = vld [vmem:[#allocation9 + $0x370] ss:$8 sps:$4 sm:$0xff]  }
 0x4a1   :  { %9591 = vmatprep.subr.bf16.mxu0 %v9944_v52 }
 0x4a2   :  { %7588 = vmatmul.mubr.bf16.vlgmr.msra.gmra.mrb[64].mxu1 %v10289_v32  ;;  %v9913_v32 = vld [vmem:[#allocation9 + $0x50] ss:$8 sps:$4 sm:$0xff]  }
 0x4a3   :  { %8276 = vmatmul.mubr.f32.vlgmr.msra.gmra.mrb[60].mxu0 %v7669_v33  ;;  %9401 = vmatpush1.bf16.msra.mxu1 %v9898_v29  ;;  %v7627_v29 = vsub.s32 0, %v10447_v18  ;;  %v9970_v33 = vld [vmem:[#allocation9 + $0x380] ss:$8 sps:$4 sm:$0xff]  }
 0x4a4   :  { %8133 = vmatprep.mubr.f32.mxu1 %v7666_v35  ;;  %9403 = vmatprep.subr.bf16.mxu1 %v9899_v44  ;;  %v9941_v44 = vld [vmem:[#allocation9 + $0xf4] ss:$8 sps:$4 sm:$0xff]  }
 0x4a5   :  { %9593 = vmatpush1.bf16.msra.mxu0 %v9946_v13  ;;  %v9971_v35 = vld [vmem:[#allocation9 + $0x394] ss:$8 sps:$4 sm:$0xff]  }
 0x4a6   :  { %9595 = vmatprep.subr.bf16.mxu0 %v9947_v49 }
 0x4a7   :  { %9405 = vmatpush1.bf16.msra.mxu1 %v9901_v36  ;;  %v9943_v36 = vld [vmem:[#allocation9 + $0xf0] ss:$8 sps:$4 sm:$0xff]  }
 0x4a8   :  { %9407 = vmatprep.subr.bf16.mxu1 %v9902_v46  ;;  %v7628_v46 = vrot.slane %v10450_v12, %v7627_v29  ;;  %v9983_v12 = vld [vmem:[#allocation9 + $0x3d4] ss:$8 sps:$4 sm:$0xff]  }
 0x4a9   :  { %9597 = vmatpush1.bf16.msra.mxu0 %v9949_v3 }
 0x4ab   :  { %9409 = vmatpush1.bf16.msra.mxu1 %v9904_v42  ;;  %v9973_v42 = vld [vmem:[#allocation9 + $0x390] ss:$8 sps:$4 sm:$0xff]  }
 0x4ac   :  { %9411 = vmatprep.subr.bf16.mxu1 %v9905_v43  ;;  %v9974_v43 = vld [vmem:[#allocation9 + $0x3a4] ss:$8 sps:$4 sm:$0xff]  }
 0x4af   :  { %9413 = vmatpush1.bf16.msra.mxu1 %v9907_v23  ;;  %v7665_v23 = vadd.f32 %v7628_v46, %v10344_v58 }
 0x4b0   :  { %9415 = vmatprep.subr.bf16.mxu1 %v9908_v45  ;;  %v9976_v45 = vld [vmem:[#allocation9 + $0x3a0] ss:$8 sps:$4 sm:$0xff]  }
 0x4b3   :  { %9417 = vmatpush1.bf16.msra.mxu1 %v9910_v50  ;;  %v9977_v50 = vld [vmem:[#allocation9 + $0x3b4] ss:$8 sps:$4 sm:$0xff]  }
 0x4b4   :  { %9419 = vmatprep.subr.bf16.mxu1 %v9911_v1  ;;  %v9979_v1 = vld [vmem:[#allocation9 + $0x3b0] ss:$8 sps:$4 sm:$0xff]  }
 0x4b5   :  { %v7343_v26 = vpop.f32.mrb[52].mxu1 }
 0x4b6   :  { %v7344_v53 = vadd.f32 %v7343_v26, %v10458_v60  ;;  %v7345_v2 = vpop.f32.mrb[53].mxu1  ;;  %v10494_v0 = vpop.f32.mrb[52].mxu0  ;;  %v9985_v26 = vld [vmem:[#allocation9 + $0x3d0] ss:$8 sps:$4 sm:$0xff]  }
 0x4b7   :  { %v7346_v54 = vadd.f32 %v7345_v2, %v10461_v61  ;;  %v7347_v7 = vpop.f32.mrb[54].mxu1  ;;  %9421 = vmatpush1.bf16.msra.mxu1 %v9913_v32  ;;  %v10497_v37 = vpop.f32.mrb[53].mxu0  ;;  %v9919_v61 = vld [vmem:[#allocation9 + $0x70] ss:$8 sps:$4 sm:$0xff]   ;;  %v9980_v32 = vld [vmem:[#allocation9 + $0x3c4] ss:$8 sps:$4 sm:$0xff]  }
 0x4b8   :  { %v10500_v62 = vadd.f32 %v10479_v51, %v7344_v53  ;;  %v7348_v5 = vpop.f32.mrb[55].mxu1  ;;  %9423 = vmatprep.subr.bf16.mxu1 %v9914_v6  ;;  %v7470_v56 = vpop.f32.mrb[54].mxu0  ;;  %v9950_v51 = vld [vmem:[#allocation9 + $0x324] ss:$8 sps:$4 sm:$0xff]   ;;  %v9982_v6 = vld [vmem:[#allocation9 + $0x3c0] ss:$8 sps:$4 sm:$0xff]  }
 0x4b9   :  { %v10503_v47 = vadd.f32 %v10482_v40, %v7346_v54  ;;  %v7471_v60 = vpop.f32.mrb[55].mxu0  ;;  %v9952_v40 = vld [vmem:[#allocation9 + $0x320] ss:$8 sps:$4 sm:$0xff]   ;;  %9599 = vmatprep.subr.bf16.mxu0 %v9950_v51  ;;  %v9986_v53 = vld [vmem:[#allocation9 + $0x3e4] ss:$8 sps:$4 sm:$0xff]  }
 0x4ba   :  { %9601 = vmatpush1.bf16.msra.mxu0 %v9952_v40  ;;  %v9988_v2 = vld [vmem:[#allocation9 + $0x3e0] ss:$8 sps:$4 sm:$0xff]   ;;  %v9989_v60 = vld [vmem:[#allocation9 + $0x3f4] ss:$8 sps:$4 sm:$0xff]  }
 0x4bb   :  { %9425 = vmatpush1.bf16.msra.mxu1 %v9916_v34  ;;  %9603 = vmatprep.subr.bf16.mxu0 %v9953_v57 }
 0x4bc   :  { %9427 = vmatprep.subr.bf16.mxu1 %v9917_v11 }
 0x4be   :  { %9605 = vmatpush1.bf16.msra.mxu0 %v9955_v9 }
 0x4bf   :  { %9429 = vmatpush1.bf16.msra.mxu1 %v9919_v61  ;;  %9607 = vmatprep.subr.bf16.mxu0 %v9956_v41  ;;  %v9991_v61 = vld [vmem:[#allocation9 + $0x3f0] ss:$8 sps:$4 sm:$0xff]  }
 0x4c0   :  { %9431 = vmatprep.subr.bf16.mxu1 %v9920_v14  ;;  %v9992_v41 = vld [vmem:[#allocation8] sm:$0xff] }
 0x4c2   :  { %9609 = vmatpush1.bf16.msra.mxu0 %v9958_v10 }
 0x4c3   :  { %9433 = vmatpush1.bf16.msra.mxu1 %v9922_v48  ;;  %9611 = vmatprep.subr.bf16.mxu0 %v9959_v17 }
 0x4c4   :  { %9435 = vmatprep.subr.bf16.mxu1 %v9923_v15 }
 0x4c6   :  { %9613 = vmatpush1.bf16.msra.mxu0 %v9961_v19 }
 0x4c7   :  { %9437 = vmatpush1.bf16.msra.mxu1 %v9925_v59  ;;  %9615 = vmatprep.subr.bf16.mxu0 %v9962_v28 }
 0x4c8   :  { %9439 = vmatprep.subr.bf16.mxu1 %v9926_v39  ;;  %v7655_v39 = vsub.s32 7, %v10447_v18 }
 0x4ca   :  { %9617 = vmatpush1.bf16.msra.mxu0 %v9964_v24  ;;  %v8057_v24 = vld [vmem:[#allocation11] sm:$0x3] }
 0x4cb   :  { %9441 = vmatpush1.bf16.msra.mxu1 %v9928_v8  ;;  %9619 = vmatprep.subr.bf16.mxu0 %v9965_v16  ;;  %v7656_v8 = vrot.slane %v9992_v41, %v7655_v39  ;;  %v8062_v16 = vrot.slane %v8057_v24, %v7627_v29 }
 0x4cc   :  { %9443 = vmatprep.subr.bf16.mxu1 %v9929_v21 }
 0x4ce   :  { %9621 = vmatpush1.bf16.msra.mxu0 %v9967_v20 }
 0x4cf   :  { %9445 = vmatpush1.bf16.msra.mxu1 %v9931_v30  ;;  %9623 = vmatprep.subr.bf16.mxu0 %v9968_v55 }
 0x4d0   :  { %9447 = vmatprep.subr.bf16.mxu1 %v9932_v38 }
 0x4d2   :  { %9625 = vmatpush1.bf16.msra.mxu0 %v9970_v33 }
 0x4d3   :  { %9449 = vmatpush1.bf16.msra.mxu1 %v9934_v22  ;;  %9627 = vmatprep.subr.bf16.mxu0 %v9971_v35 }
 0x4d4   :  { %9451 = vmatprep.subr.bf16.mxu1 %v9935_v31 }
 0x4d6   :  { %9629 = vmatpush1.bf16.msra.mxu0 %v9973_v42 }
 0x4d7   :  { %9453 = vmatpush1.bf16.msra.mxu1 %v9937_v25  ;;  %9631 = vmatprep.subr.bf16.mxu0 %v9974_v43  ;;  %v8066_v25 = vrot.slane %v8057_v24, %v7631_v4 }
 0x4d8   :  { %9455 = vmatprep.subr.bf16.mxu1 %v9938_v27 }
 0x4da   :  { %9633 = vmatpush1.bf16.msra.mxu0 %v9976_v45 }
 0x4db   :  { %9457 = vmatpush1.bf16.msra.mxu1 %v9940_v63  ;;  %9635 = vmatprep.subr.bf16.mxu0 %v9977_v50 }
 0x4dc   :  { %9459 = vmatprep.subr.bf16.mxu1 %v9941_v44 }
 0x4de   :  { %9637 = vmatpush1.bf16.msra.mxu0 %v9979_v1 }
 0x4df   :  { %9461 = vmatpush1.bf16.msra.mxu1 %v9943_v36  ;;  %9639 = vmatprep.subr.bf16.mxu0 %v9980_v32 }
 0x4e2   :  { %8134 = vmatmul.mubr.f32.vlgmr.msra.gmra.mrb[68].mxu1 %v7665_v23  ;;  %9641 = vmatpush1.bf16.msra.mxu0 %v9982_v6 }
 0x4e3   :  { %9643 = vmatprep.subr.bf16.mxu0 %v9983_v12 }
 0x4e6   :  { %9645 = vmatpush1.bf16.msra.mxu0 %v9985_v26 }
 0x4e7   :  { %9647 = vmatprep.subr.bf16.mxu0 %v9986_v53 }
 0x4ea   :  { %9649 = vmatpush1.bf16.msra.mxu0 %v9988_v2 }
 0x4eb   :  { %9651 = vmatprep.subr.bf16.mxu0 %v9989_v60 }
 0x4ee   :  { %9653 = vmatpush1.bf16.msra.mxu0 %v9991_v61 }
 0x4f5   :  { %v7425_v58 = vpop.f32.mrb[56].mxu1 }
 0x4f6   :  { %v7426_v54 = vadd.f32 %v7425_v58, %v10500_v62  ;;  %v7427_v7 = vpop.f32.mrb[57].mxu1  ;;  %v7548_v34 = vpop.f32.mrb[56].mxu0 }
 0x4f7   :  { %v7428_v5 = vadd.f32 %v7427_v7, %v10503_v47  ;;  %v7429_v11 = vpop.f32.mrb[58].mxu1  ;;  %v7550_v56 = vpop.f32.mrb[57].mxu0 }
 0x4f8   :  { %v7467_v52 = vadd.f32 %v10494_v0, %v7426_v54  ;;  %v7430_v13 = vpop.f32.mrb[59].mxu1  ;;  %v7552_v49 = vpop.f32.mrb[58].mxu0  ;;  %v7651_v0 = vsub.s32 6, %v10447_v18 }
 0x4f9   :  { %v7469_v14 = vadd.f32 %v10497_v37, %v7428_v5  ;;  %v7553_v3 = vpop.f32.mrb[59].mxu0 }
 0x4fa   :  { %v7652_v37 = vrot.slane %v9992_v41, %v7651_v0 }
 0x535   :  { %v7507_v51 = vpop.f32.mrb[60].mxu1 }
 0x536   :  { %v7508_v48 = vadd.f32 %v7507_v51, %v7467_v52  ;;  %v7509_v62 = vpop.f32.mrb[61].mxu1 }
 0x537   :  { %v7510_v15 = vadd.f32 %v7509_v62, %v7469_v14  ;;  %v7511_v40 = vpop.f32.mrb[62].mxu1 }
 0x538   :  { %v7549_v57 = vadd.f32 %v7548_v34, %v7508_v48  ;;  %v7512_v47 = vpop.f32.mrb[63].mxu1 }
 0x539   :  { %v7551_v59 = vadd.f32 %v7550_v56, %v7510_v15 }
 0x575   :  { %v7589_v9 = vpop.f32.mrb[64].mxu1 }
 0x576   :  { %v7590_v21 = vadd.f32 %v7589_v9, %v7549_v57  ;;  %v7591_v10 = vpop.f32.mrb[65].mxu1 }
 0x577   :  { %v7592_v17 = vadd.f32 %v7591_v10, %v7551_v59  ;;  %v7593_v30 = vpop.f32.mrb[66].mxu1 }
 0x578   :  { %v7594_v38 = vpop.f32.mrb[67].mxu1  ;;  %v7671_v28 = vadd.f32 %v7652_v37, %v7590_v21 }
 0x579   :  { %v7672_v19 = vadd.f32 %v7656_v8, %v7592_v17 }
 0x57b   :  { %8346 = vmatprep.mubr.f32.mxu0 %v7672_v19 }
 0x57c   :  { %8347 = vmatmul.mubr.f32.vlgmr.msra.gmra.mrb[60].mxu0 %v7671_v28 }
 0x5b5   :  { %v8135_v22 = vpop.f32.mrb[68].mxu1 }
 0x5b6   :  { %v8137_v31 = vpop.f32.mrb[69].mxu1  ;;  %v8136_v27 = vadd.f32 %v8135_v22, %v8062_v16 }
 0x5b7   :  { %v8138_v20 = vadd.f32 %v8137_v31, %v8066_v25 }
 0x64f   :  { %v8348_v55 = vpop.f32.mrb[60].mxu0 }
 0x650   :  { %v9655_v63 = vadd.f32 %v8348_v55, %v8136_v27  ;;  %v8350_v44 = vpop.f32.mrb[61].mxu0 }
 0x651   :  { %v9657_v33 = vadd.f32 %v8350_v44, %v8138_v20 }
 0x652   :  { %8353 = vst [vmem:[#allocation12] sm:$0xff] %v9655_v63 }
 0x653   :  { %8354 = vst [vmem:[#allocation12 + $0x8] sm:$0xff] %v9657_v33 }
 0x654   :  { %10114 = shalt.err (!%p10111_p2)
}
 0x655   :  { %s10115_s3 = scalar_lea.hbm %s10537_s5, 256 }
 0x656   :  { %p10116_p3 = scmp.ne.s32.totalorder %s10537_s5, %s10115_s3  ;;  %p10119_p4 = scmp.lt.u32.totalorder %s10115_s3, %s10537_s5 }
 0x658   :  { %p10121_p5 = pnand %p10119_p4, %p10116_p3 }
 0x65a   :  { %10124 = shalt.err (!%p10121_p5)
}
 0x65b   :  { %8364 = dma.vmem_to_hbm [thread:$0]  %s8362_s27, 256, %s10537_s5, [#allocation5]  }
 0x65c   :  { %10131 = dma.done.wait [#allocation5], 256  }
 0x65d   :  { %10132 = vsyncadd [#allocation5], 4294967040 }
 0x65e   :  { %8368 = vsyncpa [#allocation4], 1 }
 0x65f   :  { %8369 = vsyncpa [#allocation7], 1 }
 0x660   :  { %8370 = vsyncpa [#allocation10], 1 }
 0x661   :  { %8371 = vsyncpa [#allocation5], 1 }

</bundles_post_ra>
